<compile_context>
chip_gen: v6e
topology: v6e:2x2x1
jax: 0.10.0
libtpu: 0.0.40
codegen_flags: <defaults>
</compile_context>

<pallas_src>
import functools

import jax
import jax.numpy as jnp
from jax.experimental import pallas as pl
from jax.experimental.pallas import tpu as pltpu


def _default_col_splits():
    # v7x exposes 2 TensorCores per chip that a "parallel" grid axis can be sharded
    # across; v5e / v6e are single-TC, where an extra leading axis is pure overhead.
    # TODO(synk): confirm with an xprof / per-core bundle dump that the axis actually
    # shards on v7x; if not, switch it to pltpu.CORE_PARALLEL or an explicit
    # pl.core_map over pltpu.create_tensorcore_mesh.
    try:
        kind = jax.devices()[0].device_kind.lower()
    except Exception:
        return 1
    return 2 if "v7" in kind else 1


def prepare_params(w_emb, b_emb, w_fc, b_fc):
    """One-time weight prep -- call OUTSIDE jit so the bf16 cast of the 8/16 MiB
    W_emb is not re-executed (and re-streamed through HBM) on every forward call."""
    d_in, d_emb = w_emb.shape
    return {
        "w_emb_bf16": jnp.asarray(w_emb, jnp.bfloat16),                   # [d_in, d_emb]
        "b_emb_row": jnp.asarray(b_emb, jnp.float32).reshape(1, d_emb),   # lane-dense row
        "w_fc_row": jnp.asarray(w_fc, jnp.float32).reshape(1, d_emb),     # lane-dense row
        "b_fc": jnp.asarray(b_fc, jnp.float32).reshape(1),                # SMEM scalar
    }


def _siamese_kernel(xc_ref, we_ref, be_ref, wfc_ref, bfc_ref, out_ref, acc_ref):
    # Grid: (col_splits ["parallel", per-TC on v7x], inner ["arbitrary" reduction]).
    c = pl.program_id(0)
    j = pl.program_id(1)

    @pl.when(j == 0)
    def _():
        acc_ref[...] = jnp.zeros_like(acc_ref)

    # One MXU matmul for both branches: rows [0, Bp) are x1, rows [Bp, 2*Bp) are x2.
    # Activations are cast to bf16 here (tiny VPU convert); accumulation is f32.
    x = xc_ref[...].astype(jnp.bfloat16)
    h = jnp.dot(x, we_ref[...], preferred_element_type=jnp.float32)
    h = jnp.maximum(h + be_ref[...], 0.0)                       # Linear + ReLU (f32)

    bp = acc_ref.shape[0]                                       # sublane-padded batch
    d = jnp.abs(h[:bp, :] - h[bp:, :])                          # |e1 - e2| on this tile
    prod = d * wfc_ref[...]                                     # fc weights (VPU, f32)

    # Fold this tile's 128-lane groups into a lane-dense [Bp, 128] accumulator with
    # static lane-tile-aligned slice adds: every per-step store stays an unmasked vst;
    # the lane-1 (masked) reduce+store happens once, at the last reduction step.
    part = prod[:, 0:128]
    for g in range(1, prod.shape[1] // 128):
        part = part + prod[:, g * 128:(g + 1) * 128]
    acc_ref[...] += part

    @pl.when(j == pl.num_programs(1) - 1)
    def _():
        score = jnp.sum(acc_ref[...], axis=-1, keepdims=True)   # [Bp, 1] (XLU, once)
        score = score + jnp.where(c == 0, bfc_ref[0], 0.0)      # fc bias, added once
        out_ref[...] = score[None, :, :]


@functools.partial(jax.jit, static_argnames=("tile", "col_splits"))
def _siamese_forward_jit(x1, x2, w_emb_bf16, b_emb_row, w_fc_row, b_fc, *,
                         tile, col_splits):
    B = x1.shape[0]
    x1f = x1.reshape(B, -1)
    x2f = x2.reshape(B, -1)
    d_in = x1f.shape[1]
    d_emb = w_emb_bf16.shape[1]

    # Keep the double-buffered bf16 weight tile well inside v7x's 64 MiB VMEM
    # (32 MiB scoped default); only shrinks if embedding_net's d_in is scaled way up.
    while tile > 1024 and 2 * (d_in * tile * 2) > 24 * 1024 * 1024:
        tile //= 2
    assert tile % 128 == 0
    assert d_emb % (tile * col_splits) == 0, (d_emb, tile, col_splits)
    inner = d_emb // (tile * col_splits)

    # Pad each branch's batch to a multiple of 8 (f32 sublane tile) so the in-kernel
    # split of the matmul output is sublane-aligned; padded rows contribute exactly 0
    # to the score (both branches see ReLU(b_emb), so |e1 - e2| = 0 there).
    SUB = 8
    Bp = ((B + SUB - 1) // SUB) * SUB
    x_cat = jnp.zeros((2 * Bp, d_in), jnp.float32)
    x_cat = x_cat.at[:B].set(x1f).at[Bp:Bp + B].set(x2f)        # [2*Bp, d_in] f32

    cost = pl.CostEstimate(
        flops=2 * (2 * Bp) * d_in * d_emb,
        transcendentals=0,
        bytes_accessed=(d_in * d_emb * 2            # bf16 W_emb stream (dominant)
                        + x_cat.size * 4            # f32 activations
                        + 2 * d_emb * 4             # b_emb + w_fc rows
                        + col_splits * Bp * 4),     # output
    )

    partials = pl.pallas_call(
        _siamese_kernel,
        out_shape=jax.ShapeDtypeStruct((col_splits, Bp, 1), jnp.float32),
        grid_spec=pltpu.PrefetchScalarGridSpec(
            num_scalar_prefetch=0,
            grid=(col_splits, inner),
            in_specs=[
                pl.BlockSpec((2 * Bp, d_in), lambda c, j: (0, 0)),            # x_cat (resident)
                pl.BlockSpec((d_in, tile), lambda c, j: (0, c * inner + j)),  # W_emb tile
                pl.BlockSpec((1, tile), lambda c, j: (0, c * inner + j)),     # b_emb row tile
                pl.BlockSpec((1, tile), lambda c, j: (0, c * inner + j)),     # W_fc row tile
                pl.BlockSpec(memory_space=pltpu.MemorySpace.SMEM),            # b_fc scalar
            ],
            out_specs=pl.BlockSpec((1, Bp, 1), lambda c, j: (c, 0, 0)),
            scratch_shapes=[pltpu.VMEM((Bp, 128), jnp.float32)],
        ),
        compiler_params=pltpu.CompilerParams(
            dimension_semantics=("parallel", "arbitrary"),
            vmem_limit_bytes=32 * 1024 * 1024),
        cost_estimate=cost,
    )(x_cat, w_emb_bf16, b_emb_row, w_fc_row, b_fc)

    if col_splits == 1:
        # Single TC: fc bias already added in-kernel, just drop padded rows.
        return partials[0, :B]
    # Multi-TC (v7x): sum per-core partials (bias was added on the c == 0 partial only).
    return jnp.sum(partials, axis=0)[:B]


def siamese_forward(x1, x2, params, *, tile=2048, col_splits=None):
    """x1, x2: [B, C, H, W] float32.  Returns score [B, 1] float32."""
    if col_splits is None:
        col_splits = _default_col_splits()
    return _siamese_forward_jit(
        x1, x2, params["w_emb_bf16"], params["b_emb_row"],
        params["w_fc_row"], params["b_fc"], tile=tile, col_splits=col_splits)


def _reference(x1, x2, w_emb, b_emb, w_fc, b_fc):
    B = x1.shape[0]
    x1f = x1.reshape(B, -1)
    x2f = x2.reshape(B, -1)
    hp = jax.lax.Precision.HIGHEST
    e1 = jnp.maximum(jnp.dot(x1f, w_emb, precision=hp) + b_emb, 0.0)
    e2 = jnp.maximum(jnp.dot(x2f, w_emb, precision=hp) + b_emb, 0.0)
    return jnp.dot(jnp.abs(e1 - e2), w_fc, precision=hp) + b_fc


if __name__ == "__main__":
    # Small deterministic setup: B=2, C=4, H=W=16  ->  flattened 1024 features.
    B, C, H, W = 2, 4, 16, 16
    D_IN = C * H * W          # 1024
    D_EMB = 4096              # SiameseNet.fc expects 4096-dim embeddings

    key = jax.random.PRNGKey(0)
    k1, k2, k3, k4, k5, k6 = jax.random.split(key, 6)

    x1 = jax.random.normal(k1, (B, C, H, W), jnp.float32)
    x2 = jax.random.normal(k2, (B, C, H, W), jnp.float32)

    # nn.Linear-style uniform(-1/sqrt(fan_in), 1/sqrt(fan_in)) init, deterministic.
    lim_e = 1.0 / (D_IN ** 0.5)
    w_emb = jax.random.uniform(k3, (D_IN, D_EMB), jnp.float32, -lim_e, lim_e)
    b_emb = jax.random.uniform(k4, (D_EMB,), jnp.float32, -lim_e, lim_e)
    lim_f = 1.0 / (D_EMB ** 0.5)
    w_fc = jax.random.uniform(k5, (D_EMB, 1), jnp.float32, -lim_f, lim_f)
    b_fc = jax.random.uniform(k6, (1,), jnp.float32, -lim_f, lim_f)

    # One-time, outside-jit weight prep (bf16 W_emb cast happens exactly once here).
    params = prepare_params(w_emb, b_emb, w_fc, b_fc)

    score = siamese_forward(x1, x2, params)
    score = jax.block_until_ready(score)

    ref = _reference(x1, x2, w_emb, b_emb, w_fc, b_fc)
    assert score.shape == (B, 1)
    # bf16 weights introduce ~1e-2 relative error vs. the f32 HIGHEST reference at
    # d_in=1024; the tolerance (and precision choice) should be revisited if the
    # embedding_net gets much wider.
    assert jnp.allclose(score, ref, rtol=2e-2, atol=2e-2), (score, ref)

    print("KERNEL_OK")
</pallas_src>

<mosaic_0001>
module attributes {stable_mosaic.version = 11 : i64} {
  func.func @_siamese_kernel(%arg0: i32, %arg1: i32, %arg2: memref<16x1024xf32, #tpu.memory_space<vmem>>, %arg3: memref<1024x2048xbf16, #tpu.memory_space<vmem>>, %arg4: memref<1x2048xf32, #tpu.memory_space<vmem>>, %arg5: memref<1x2048xf32, #tpu.memory_space<vmem>>, %arg6: memref<1xf32, #tpu.memory_space<smem>>, %arg7: memref<1x8x1xf32, #tpu.memory_space<vmem>>, %arg8: memref<8x128xf32, #tpu.memory_space<vmem>>) attributes {dimension_semantics = [#tpu.dimension_semantics<parallel>, #tpu.dimension_semantics<arbitrary>], iteration_bounds = array<i64: 1, 2>, scalar_prefetch = 0 : i64, scratch_operands = 1 : i64, tpu.core_type = #tpu.core_type<tc>, window_params = [{pipeline_mode = #tpu.pipeline_mode<synchronous>, transform_indices = @transform_0, window_bounds = array<i64: 16, 1024>}, {transform_indices = @transform_1, window_bounds = array<i64: 1024, 2048>}, {transform_indices = @transform_2, window_bounds = array<i64: 1, 2048>}, {transform_indices = @transform_3, window_bounds = array<i64: 1, 2048>}, {transform_indices = @transform_4, window_bounds = array<i64: 1>}, {transform_indices = @transform_5, window_bounds = array<i64: 1, 8, 1>}]} {
    %c0_i32 = arith.constant 0 : i32
    %0 = arith.cmpi eq, %arg1, %c0_i32 : i32
    %1 = arith.extui %0 : i1 to i32
    %c0_i32_0 = arith.constant 0 : i32
    %2 = arith.cmpi ne, %1, %c0_i32_0 : i32
    scf.if %2 {
      %cst_14 = arith.constant 0.000000e+00 : f32
      %56 = vector.broadcast %cst_14 : f32 to vector<8x128xf32>
      %c0_15 = arith.constant 0 : index
      %c0_16 = arith.constant 0 : index
      %57 = vector.load %arg8[%c0_15, %c0_16] : memref<8x128xf32, #tpu.memory_space<vmem>>, vector<8x128xf32>
      tpu.vector_store %arg8[%c0_15, %c0_16], %56 {strides = array<i32>} : memref<8x128xf32, #tpu.memory_space<vmem>>, vector<8x128xf32>,
    } else {
    }
    %c0 = arith.constant 0 : index
    %c0_1 = arith.constant 0 : index
    %3 = vector.load %arg2[%c0, %c0_1] : memref<16x1024xf32, #tpu.memory_space<vmem>>, vector<16x1024xf32>
    %4 = arith.truncf %3 : vector<16x1024xf32> to vector<16x1024xbf16>
    %c0_2 = arith.constant 0 : index
    %c0_3 = arith.constant 0 : index
    %5 = vector.load %arg3[%c0_2, %c0_3] : memref<1024x2048xbf16, #tpu.memory_space<vmem>>, vector<1024x2048xbf16>
    %cst = arith.constant dense<0.000000e+00> : vector<16x2048xf32>
    %6 = tpu.matmul %4, %5, %cst {dimension_numbers = #tpu.dot_dimension_numbers<[1], [0], [0], [1], [0, 0, 1, 1], [], []>} : vector<16x1024xbf16>, vector<1024x2048xbf16>, vector<16x2048xf32> -> vector<16x2048xf32>
    %c0_4 = arith.constant 0 : index
    %c0_5 = arith.constant 0 : index
    %7 = vector.load %arg4[%c0_4, %c0_5] : memref<1x2048xf32, #tpu.memory_space<vmem>>, vector<1x2048xf32>
    %8 = vector.broadcast %7 : vector<1x2048xf32> to vector<16x2048xf32>
    %9 = arith.addf %6, %8 : vector<16x2048xf32>
    %cst_6 = arith.constant 0.000000e+00 : f32
    %10 = vector.broadcast %cst_6 : f32 to vector<16x2048xf32>
    %11 = arith.maximumf %9, %10 : vector<16x2048xf32>
    %12 = vector.extract_strided_slice %11 {offsets = [0, 0], sizes = [8, 2048], strides = [1, 1]} : vector<16x2048xf32> to vector<8x2048xf32>
    %13 = vector.extract_strided_slice %11 {offsets = [8, 0], sizes = [8, 2048], strides = [1, 1]} : vector<16x2048xf32> to vector<8x2048xf32>
    %14 = arith.subf %12, %13 : vector<8x2048xf32>
    %15 = math.absf %14 : vector<8x2048xf32>
    %c0_7 = arith.constant 0 : index
    %c0_8 = arith.constant 0 : index
    %16 = vector.load %arg5[%c0_7, %c0_8] : memref<1x2048xf32, #tpu.memory_space<vmem>>, vector<1x2048xf32>
    %17 = vector.broadcast %16 : vector<1x2048xf32> to vector<8x2048xf32>
    %18 = arith.mulf %15, %17 : vector<8x2048xf32>
    %19 = vector.extract_strided_slice %18 {offsets = [0, 0], sizes = [8, 128], strides = [1, 1]} : vector<8x2048xf32> to vector<8x128xf32>
    %20 = vector.extract_strided_slice %18 {offsets = [0, 128], sizes = [8, 128], strides = [1, 1]} : vector<8x2048xf32> to vector<8x128xf32>
    %21 = arith.addf %19, %20 : vector<8x128xf32>
    %22 = vector.extract_strided_slice %18 {offsets = [0, 256], sizes = [8, 128], strides = [1, 1]} : vector<8x2048xf32> to vector<8x128xf32>
    %23 = arith.addf %21, %22 : vector<8x128xf32>
    %24 = vector.extract_strided_slice %18 {offsets = [0, 384], sizes = [8, 128], strides = [1, 1]} : vector<8x2048xf32> to vector<8x128xf32>
    %25 = arith.addf %23, %24 : vector<8x128xf32>
    %26 = vector.extract_strided_slice %18 {offsets = [0, 512], sizes = [8, 128], strides = [1, 1]} : vector<8x2048xf32> to vector<8x128xf32>
    %27 = arith.addf %25, %26 : vector<8x128xf32>
    %28 = vector.extract_strided_slice %18 {offsets = [0, 640], sizes = [8, 128], strides = [1, 1]} : vector<8x2048xf32> to vector<8x128xf32>
    %29 = arith.addf %27, %28 : vector<8x128xf32>
    %30 = vector.extract_strided_slice %18 {offsets = [0, 768], sizes = [8, 128], strides = [1, 1]} : vector<8x2048xf32> to vector<8x128xf32>
    %31 = arith.addf %29, %30 : vector<8x128xf32>
    %32 = vector.extract_strided_slice %18 {offsets = [0, 896], sizes = [8, 128], strides = [1, 1]} : vector<8x2048xf32> to vector<8x128xf32>
    %33 = arith.addf %31, %32 : vector<8x128xf32>
    %34 = vector.extract_strided_slice %18 {offsets = [0, 1024], sizes = [8, 128], strides = [1, 1]} : vector<8x2048xf32> to vector<8x128xf32>
    %35 = arith.addf %33, %34 : vector<8x128xf32>
    %36 = vector.extract_strided_slice %18 {offsets = [0, 1152], sizes = [8, 128], strides = [1, 1]} : vector<8x2048xf32> to vector<8x128xf32>
    %37 = arith.addf %35, %36 : vector<8x128xf32>
    %38 = vector.extract_strided_slice %18 {offsets = [0, 1280], sizes = [8, 128], strides = [1, 1]} : vector<8x2048xf32> to vector<8x128xf32>
    %39 = arith.addf %37, %38 : vector<8x128xf32>
    %40 = vector.extract_strided_slice %18 {offsets = [0, 1408], sizes = [8, 128], strides = [1, 1]} : vector<8x2048xf32> to vector<8x128xf32>
    %41 = arith.addf %39, %40 : vector<8x128xf32>
    %42 = vector.extract_strided_slice %18 {offsets = [0, 1536], sizes = [8, 128], strides = [1, 1]} : vector<8x2048xf32> to vector<8x128xf32>
    %43 = arith.addf %41, %42 : vector<8x128xf32>
    %44 = vector.extract_strided_slice %18 {offsets = [0, 1664], sizes = [8, 128], strides = [1, 1]} : vector<8x2048xf32> to vector<8x128xf32>
    %45 = arith.addf %43, %44 : vector<8x128xf32>
    %46 = vector.extract_strided_slice %18 {offsets = [0, 1792], sizes = [8, 128], strides = [1, 1]} : vector<8x2048xf32> to vector<8x128xf32>
    %47 = arith.addf %45, %46 : vector<8x128xf32>
    %48 = vector.extract_strided_slice %18 {offsets = [0, 1920], sizes = [8, 128], strides = [1, 1]} : vector<8x2048xf32> to vector<8x128xf32>
    %49 = arith.addf %47, %48 : vector<8x128xf32>
    %c0_9 = arith.constant 0 : index
    %c0_10 = arith.constant 0 : index
    %50 = vector.load %arg8[%c0_9, %c0_10] : memref<8x128xf32, #tpu.memory_space<vmem>>, vector<8x128xf32>
    %51 = arith.addf %50, %49 : vector<8x128xf32>
    %c0_11 = arith.constant 0 : index
    %c0_12 = arith.constant 0 : index
    %52 = vector.load %arg8[%c0_11, %c0_12] : memref<8x128xf32, #tpu.memory_space<vmem>>, vector<8x128xf32>
    tpu.vector_store %arg8[%c0_11, %c0_12], %51 {strides = array<i32>} : memref<8x128xf32, #tpu.memory_space<vmem>>, vector<8x128xf32>,
    %c1_i32 = arith.constant 1 : i32
    %53 = arith.cmpi eq, %arg1, %c1_i32 : i32
    %54 = arith.extui %53 : i1 to i32
    %c0_i32_13 = arith.constant 0 : i32
    %55 = arith.cmpi ne, %54, %c0_i32_13 : i32
    scf.if %55 {
      %c0_14 = arith.constant 0 : index
      %c0_15 = arith.constant 0 : index
      %56 = vector.load %arg8[%c0_14, %c0_15] : memref<8x128xf32, #tpu.memory_space<vmem>>, vector<8x128xf32>
      %cst_16 = arith.constant dense<0.000000e+00> : vector<8xf32>
      %57 = vector.multi_reduction <add>, %56, %cst_16 [1] : vector<8x128xf32> to vector<8xf32>
      %58 = vector.shape_cast %57 : vector<8xf32> to vector<8x1xf32>
      %c0_i32_17 = arith.constant 0 : i32
      %59 = arith.cmpi eq, %arg0, %c0_i32_17 : i32
      %c0_18 = arith.constant 0 : index
      %60 = memref.load %arg6[%c0_18] : memref<1xf32, #tpu.memory_space<smem>>
      %cst_19 = arith.constant 0.000000e+00 : f32
      %61 = arith.select %59, %60, %cst_19 : f32
      %62 = vector.broadcast %61 : f32 to vector<8x1xf32>
      %63 = arith.addf %58, %62 : vector<8x1xf32>
      %64 = vector.shape_cast %63 : vector<8x1xf32> to vector<1x8x1xf32>
      %c0_20 = arith.constant 0 : index
      %c0_21 = arith.constant 0 : index
      %c0_22 = arith.constant 0 : index
      %65 = vector.load %arg7[%c0_20, %c0_21, %c0_22] : memref<1x8x1xf32, #tpu.memory_space<vmem>>, vector<1x8x1xf32>
      tpu.vector_store %arg7[%c0_20, %c0_21, %c0_22], %64 {strides = array<i32>} : memref<1x8x1xf32, #tpu.memory_space<vmem>>, vector<1x8x1xf32>,
    } else {
    }
    return
  }
  func.func @transform_0(%arg0: i32, %arg1: i32) -> (i32, i32) {
    %c0_i32 = arith.constant 0 : i32
    %c0_i32_0 = arith.constant 0 : i32
    %c0_i32_1 = arith.constant 0 : i32
    return %c0_i32, %c0_i32_0 : i32, i32
  }
  func.func @transform_1(%arg0: i32, %arg1: i32) -> (i32, i32) {
    %c2_i32 = arith.constant 2 : i32
    %0 = arith.muli %arg0, %c2_i32 : i32
    %1 = arith.addi %0, %arg1 : i32
    %c0_i32 = arith.constant 0 : i32
    %c0_i32_0 = arith.constant 0 : i32
    return %c0_i32, %1 : i32, i32
  }
  func.func @transform_2(%arg0: i32, %arg1: i32) -> (i32, i32) {
    %c2_i32 = arith.constant 2 : i32
    %0 = arith.muli %arg0, %c2_i32 : i32
    %1 = arith.addi %0, %arg1 : i32
    %c0_i32 = arith.constant 0 : i32
    %c0_i32_0 = arith.constant 0 : i32
    return %c0_i32, %1 : i32, i32
  }
  func.func @transform_3(%arg0: i32, %arg1: i32) -> (i32, i32) {
    %c2_i32 = arith.constant 2 : i32
    %0 = arith.muli %arg0, %c2_i32 : i32
    %1 = arith.addi %0, %arg1 : i32
    %c0_i32 = arith.constant 0 : i32
    %c0_i32_0 = arith.constant 0 : i32
    return %c0_i32, %1 : i32, i32
  }
  func.func @transform_4(%arg0: i32, %arg1: i32) -> i32 {
    %c0_i32 = arith.constant 0 : i32
    %c0_i32_0 = arith.constant 0 : i32
    return %c0_i32 : i32
  }
  func.func @transform_5(%arg0: i32, %arg1: i32) -> (i32, i32, i32) {
    %c0_i32 = arith.constant 0 : i32
    %c0_i32_0 = arith.constant 0 : i32
    %c0_i32_1 = arith.constant 0 : i32
    return %arg0, %c0_i32, %c0_i32_0 : i32, i32, i32
  }
}

</mosaic_0001>

<bundles_post_ra>
// kernel: _siamese_forward_jit.1
= control target key start
LH: loop header
LB: loop body
LE: loop exit
PB: predicated region body
PF: predicated region fallthrough
CT: control target
= control target key end

     0   :  { %s11182_s0 = inlined_call_operand.vmem [shape: f32[16,1024], index: 0, kind: input, shape index: {}]   ;;  %s11183_s1 = inlined_call_operand.hbm [shape: bf16[1024,4096], index: 1, kind: input, shape index: {}]   ;;  %s11184_s2 = inlined_call_operand.hbm [shape: f32[1,4096], index: 2, kind: input, shape index: {}]   ;;  %s11185_s3 = inlined_call_operand.hbm [shape: f32[1,4096], index: 3, kind: input, shape index: {}]   ;;  %s11186_s4 = inlined_call_operand.<no memory space> [shape: f32[1], index: 4, kind: input, shape index: {}]   ;;  %s11187_s5 = inlined_call_operand.vmem [shape: f32[1,8,1], index: 5, kind: output, shape index: {}]  }
   0x1   :  { %10 = sst [smem:[#allocation3]] %s11186_s4 }
   0x2   :  { %11 = vsyncpa [#allocation5], 0 }
   0x3   :  { %13 = vsyncpa [#allocation5 + $0x1], 0 }
   0x4   :  { %14 = vsyncpa [#allocation7], 0 }
   0x5   :  { %16 = vsyncpa [#allocation7 + $0x1], 0  ;;  %s9605_s20 = smov 0   ;;  %s9607_s21 = smov 0  }
   0x6   :  { %s9609_s22 = smov 0   ;;  %s9611_s23 = smov 0  }
   0x7   :  { %s9613_s24 = smov 0   ;;  %s9615_s25 = smov 0  }
   0x8 LB: > { %s11188_s4 = sadd.s32 4294967295, %s9563_s25   ;;  %s31_s26 = sadd.s32 1, %s9559_s24  ;;  %s9563_s25 = sphi %s9615_s25, %s22_s25   ;;  %s9559_s24 = sphi %s9613_s24, %s11225_s24   ;;  %s9555_s23 = sphi %s9611_s23, %s11224_s23   ;;  %s9551_s22 = sphi %s9609_s22, %s11223_s22   ;;  %s9547_s21 = sphi %s9607_s21, %s11222_s21   ;;  %s9543_s20 = sphi %s9605_s20, %s11221_s20  }
   0x9   : > { %p32_p0 = scmp.ge.s32.totalorder %s31_s26, 2  ;;  %s66_s27 = sadd.s32 1, %s9551_s22 }
   0xa   : > { %p73_p1 = scmp.ne.s32.totalorder %s9551_s22, %s9547_s21  ;;  %p74_p2 = scmp.eq.s32.totalorder %s9563_s25, 0 }
   0xb   : > { %s11227_s26 = smov (%p32_p0, %s31_s26), 0  ;;  %p79_p4 = scmp.ne.s32.totalorder %s9547_s21, %s9543_s20 }
   0xc   : > { %p75_p3 = por %p74_p2, %p73_p1  ;;  %s63_s28 = ssub.s32 %s9559_s24, %s11227_s26 }
   0xd   : > { %p80_p5 = scmp.eq.s32.totalorder %s11188_s4, 0  ;;  %p64_p6 = scmp.eq.s32.totalorder %s63_s28, 0 }
   0xe   : > { %p9368_p8 = scmp.lt.s32.totalorder %s9563_s25, 2  ;;  %s9655_s6 = sand.u32 1, %s9551_s22  }
   0xf   : > { %p9646_p7 = por %p80_p5, %p79_p4  ;;  %s8307_s8 = sshll.u32 %s9655_s6, 13 }
  0x10   : > { %s9652_s30 = scalar_select %p64_p6, %s9551_s22, %s66_s27  }
  0x11   : > { %p9657_p9 = pnand %p9368_p8, %p75_p3  ;;  %s220_s9 = scalar_lea.vmem [#allocation4], %s8307_s8 }
  0x12   : > { %s229_s10 = sshll.u32 %s220_s9, 4  ;;  %s239_s11 = sand.u32 1, %s9563_s25   ;;  %s9663_s10 = int_to_ptr.vmem [resolvable:$true] %s229_s10 }
  0x13   : > { %s8310_s12 = sshll.u32 %s9655_s6, 4  ;;  %s9350_s13 = sshll.u32 %s9559_s24, 8 }
  0x14   : > { %s251_s16 = scalar_lea.hbm %s11184_s2, %s9350_s13  ;;  %s243_s17 = scalar_lea.vmem [#allocation6], %s8310_s12 }
  0x15   : > { %s253_s18 = sshll.u32 %s243_s17, 4  ;;  %s9675_s27 = scalar_lea.hbm %s11185_s3, %s9350_s13  ;;  %s254_s18 = int_to_ptr.vmem [resolvable:$true] %s253_s18 }
  0x16   : > { %s9677_s28 = scalar_lea.sflag [#allocation7], %s239_s11  ;;  %p9427_p10 = pneg %p9657_p9 }
  0x17   : > { %s9438_s8 = scalar_lea.vmem %s254_s18, 256  ;;  %s9565_s9 = smov [#allocation6]  }
  0x18   : > { %p9439_p11 = scmp.ne.s32.totalorder %s254_s18, %s9438_s8  ;;  %s9443_s14 = sshll.u32 %s9565_s9, 4  ;;  %s9444_s14 = int_to_ptr.vmem [resolvable:$false] %s9443_s14 }
  0x19   : > { %s9445_s15 = scalar_lea.vmem %s9444_s14, 512  ;;  %p9446_p0 = scmp.lt.s32.totalorder %s254_s18, %s9444_s14 }
  0x1a   : > { %p9441_p12 = pnand %p9439_p11, %p9427_p10  ;;  %p9447_p1 = scmp.lt.s32.totalorder %s9445_s15, %s9438_s8 }
  0x1c   : > { %p9442_p13 = pneg %p9441_p12  ;;  %p9448_p2 = por %p9447_p1, %p9446_p0 }
  0x1e   : > { %p9449_p3 = pnand %p9448_p2, %p9442_p13 }
  0x20   : > { %9452 = shalt.err (!%p9449_p3)
}
  0x21   : > { %9364 = dma.hbm_to_vmem [thread:$0]  (!%p9657_p9), %s251_s16, 256, %s254_s18, %s9677_s28  }
  0x22   : > { %p8316_p4 = scmp.ge.s32.totalorder %s9563_s25, 1  ;;  %p279_p5 = scmp.lt.s32.totalorder %s9563_s25, 3 }
  0x23   : > { %s9349_s11 = sshll.u32 %s9559_s24, 10  ;;  %s217_s8 = scalar_lea.sflag [#allocation5], %s9655_s6 }
  0x24   : > { %p9690_p6 = pnand %p8316_p4, %p279_p5  ;;  %s228_s20 = scalar_lea.hbm %s11183_s1, %s9349_s11 }
  0x25   : > { %s9466_s9 = scalar_lea.vmem %s9663_s10, 131072  ;;  %s9566_s14 = smov [#allocation4]  }
  0x26   : > { %p9467_p8 = scmp.ne.s32.totalorder %s9663_s10, %s9466_s9  ;;  %s9471_s16 = sshll.u32 %s9566_s14, 4  ;;  %s9472_s16 = int_to_ptr.vmem [resolvable:$false] %s9471_s16 }
  0x27   : > { %s9473_s18 = scalar_lea.vmem %s9472_s16, 262144  ;;  %p9474_p13 = scmp.lt.s32.totalorder %s9663_s10, %s9472_s16 }
  0x28   : > { %p9469_p11 = pnand %p9467_p8, %p9427_p10  ;;  %p9475_p0 = scmp.lt.s32.totalorder %s9473_s18, %s9466_s9 }
  0x2a   : > { %p9470_p12 = pneg %p9469_p11  ;;  %p9476_p1 = por %p9475_p0, %p9474_p13 }
  0x2c   : > { %p9477_p2 = pnand %p9476_p1, %p9470_p12 }
  0x2e   : > { %9480 = shalt.err (!%p9477_p2)
}
  0x2f   : > { %s9567_s15 = smov 2048   ;;  %s9568_s11 = smov 1024  }
  0x30   : > { %s9569_s17 = smov 64   ;;  %s264_s19 = scalar_lea.vmem [#allocation8], %s8310_s12 }
  0x31   : > { %9361 = dma.hbm_to_vmem [thread:$0]  (!%p9657_p9), %s228_s20, 131072, %s9663_s10, %s217_s8, %s9567_s15, %s9568_s11, %s9569_s17  }
  0x32   : > { %s274_s4 = sshll.u32 %s264_s19, 4  ;;  %s9570_s9 = smov [#allocation8]   ;;  %s275_s4 = int_to_ptr.vmem [resolvable:$true] %s274_s4 }
  0x33   : > { %s9494_s14 = scalar_lea.vmem %s275_s4, 256  ;;  %s9499_s16 = sshll.u32 %s9570_s9, 4  ;;  %s9500_s16 = int_to_ptr.vmem [resolvable:$false] %s9499_s16 }
  0x34   : > { %p9495_p3 = scmp.ne.s32.totalorder %s275_s4, %s9494_s14  ;;  %s9501_s18 = scalar_lea.vmem %s9500_s16, 512 }
  0x35   : > { %p9502_p8 = scmp.lt.s32.totalorder %s275_s4, %s9500_s16  ;;  %p9503_p11 = scmp.lt.s32.totalorder %s9501_s18, %s9494_s14 }
  0x36   : > { %p9497_p4 = pnand %p9495_p3, %p9427_p10 }
  0x37   : > { %p9504_p12 = por %p9503_p11, %p9502_p8 }
  0x38   : > { %p9498_p5 = pneg %p9497_p4 }
  0x3a   : > { %p9505_p13 = pnand %p9504_p12, %p9498_p5 }
  0x3c   : > { %9508 = shalt.err (!%p9505_p13)
}
  0x3d   : > { %9367 = dma.hbm_to_vmem [thread:$0]  (!%p9657_p9), %s9675_s27, 256, %s275_s4, %s9677_s28  }
  0x3e   : > { %283 = sbr.rel (%p9690_p6) target bundleno = 1480 (0x5c8), region = 40 }
  0x43   : > { %s285_s6 = sand.u32 1, %s9547_s21  }
  0x44   : > { %s8317_s10 = sshll.u32 %s285_s6, 13  ;;  %s286_s12 = scalar_lea.sflag [#allocation5], %s285_s6 }
  0x45   : > { %s9719_s20 = scalar_lea.vmem [#allocation4], %s8317_s10 }
  0x46   : > { %9534 = dma.done.wait (%p9646_p7), %s286_s12, 131072  }
  0x47   : > { %9536 = vsyncadd (%p9646_p7), %s286_s12, 4294836224  ;;  %s11196_s7 = sadd.s32 4294967295, %s9563_s25   ;;  %s8318_s4 = sshll.u32 %s285_s6, 4 }
  0x48   : > { %s294_s8 = sand.u32 1, %s11196_s7   ;;  %s9727_s28 = scalar_lea.vmem [#allocation6], %s8318_s4 }
  0x49   : > { %s295_s27 = scalar_lea.sflag [#allocation7], %s294_s8 }
  0x4a   : > { %9538 = dma.done.wait (%p9646_p7), %s295_s27, 512  }
  0x4b   : > { %9540 = vsyncadd (%p9646_p7), %s295_s27, 4294966784  ;;  %s9733_s13 = scalar_lea.vmem [#allocation8], %s8318_s4  ;;  %p8320_p9 = scmp.ne.s32.totalorder %s9555_s23, 0 }
  0x4d   : > { %359 = sbr.rel (%p8320_p9) target bundleno = 84 (0x54), region = 56 }
  0x52   : > { %v9571_v0 = vmov 0.0  }
  0x53   : > { %360 = vst [vmem:[#allocation2] sm:$0xff] %v9571_v0 }
  0x54 PF: > { %v497_v1 = vld [vmem:[%s9719_s20 + $0x380] sm:$0xff]  ;;  %v364_v60 = vld [vmem:[%s11182_s0 + $0x18] sm:$0xff]  ;;  %p9345_p7 = scmp.ne.s32.totalorder %s9555_s23, 1 }
  0x55   : > { %v505_v2 = vld [vmem:[%s9719_s20 + $0x3c0] sm:$0xff]  ;;  %v372_v61 = vld [vmem:[%s11182_s0 + $0x58] sm:$0xff] }
  0x56   : > { %v753_v3 = vld [vmem:[%s9719_s20 + $0xb80] sm:$0xff]  ;;  %v8434_v4 = vcombine.high %v497_v1, %v505_v2  ;;  %v8433_v6 = vcombine.low %v497_v1, %v505_v2  ;;  %v9782_v0 = vpack.c.bf16 %v372_v61, %v364_v60 }
  0x57   : > { %v761_v5 = vld [vmem:[%s9719_s20 + $0xbc0] sm:$0xff] }
  0x58   : > { %v481_v7 = vld [vmem:[%s9719_s20 + $0x300] sm:$0xff]  ;;  %v8690_v9 = vcombine.high %v753_v3, %v761_v5  ;;  %v8689_v10 = vcombine.low %v753_v3, %v761_v5  ;;  %6613 = vmatprep.subr.bf16.mxu0 %v8434_v4  ;;  %6688 = vmatprep.mubr.bf16.mxu1 %v9782_v0 }
  0x59   : > { %v489_v8 = vld [vmem:[%s9719_s20 + $0x340] sm:$0xff]  ;;  %6614 = vmatpush1.bf16.msra.mxu0 %v8433_v6 }
  0x5a   : > { %v8418_v11 = vcombine.high %v481_v7, %v489_v8  ;;  %v737_v12 = vld [vmem:[%s9719_s20 + $0xb00] sm:$0xff]  ;;  %6656 = vmatprep.subr.bf16.mxu1 %v8690_v9  ;;  %v8417_v19 = vcombine.low %v481_v7, %v489_v8 }
  0x5b   : > { %v745_v13 = vld [vmem:[%s9719_s20 + $0xb40] sm:$0xff]  ;;  %6657 = vmatpush1.bf16.msra.mxu1 %v8689_v10 }
  0x5c   : > { %v465_v14 = vld [vmem:[%s9719_s20 + $0x280] sm:$0xff]  ;;  %v8674_v15 = vcombine.high %v737_v12, %v745_v13  ;;  %6615 = vmatprep.subr.bf16.mxu0 %v8418_v11  ;;  %v8673_v20 = vcombine.low %v737_v12, %v745_v13 }
  0x5d   : > { %v473_v16 = vld [vmem:[%s9719_s20 + $0x2c0] sm:$0xff]  ;;  %6616 = vmatpush1.bf16.msra.mxu0 %v8417_v19 }
  0x5e   : > { %v721_v17 = vld [vmem:[%s9719_s20 + $0xa80] sm:$0xff]  ;;  %v8402_v21 = vcombine.high %v465_v14, %v473_v16  ;;  %6658 = vmatprep.subr.bf16.mxu1 %v8674_v15  ;;  %v8401_v27 = vcombine.low %v465_v14, %v473_v16 }
  0x5f   : > { %v729_v18 = vld [vmem:[%s9719_s20 + $0xac0] sm:$0xff]  ;;  %6659 = vmatpush1.bf16.msra.mxu1 %v8673_v20 }
  0x60   : > { %v8658_v22 = vcombine.high %v721_v17, %v729_v18  ;;  %v449_v23 = vld [vmem:[%s9719_s20 + $0x200] sm:$0xff]  ;;  %6617 = vmatprep.subr.bf16.mxu0 %v8402_v21  ;;  %v8657_v28 = vcombine.low %v721_v17, %v729_v18 }
  0x61   : > { %v457_v24 = vld [vmem:[%s9719_s20 + $0x240] sm:$0xff]  ;;  %6618 = vmatpush1.bf16.msra.mxu0 %v8401_v27 }
  0x62   : > { %v705_v25 = vld [vmem:[%s9719_s20 + $0xa00] sm:$0xff]  ;;  %v8386_v29 = vcombine.high %v449_v23, %v457_v24  ;;  %6660 = vmatprep.subr.bf16.mxu1 %v8658_v22  ;;  %v8385_v35 = vcombine.low %v449_v23, %v457_v24 }
  0x63   : > { %v713_v26 = vld [vmem:[%s9719_s20 + $0xa40] sm:$0xff]  ;;  %6661 = vmatpush1.bf16.msra.mxu1 %v8657_v28 }
  0x64   : > { %v8642_v30 = vcombine.high %v705_v25, %v713_v26  ;;  %v433_v31 = vld [vmem:[%s9719_s20 + $0x180] sm:$0xff]  ;;  %6619 = vmatprep.subr.bf16.mxu0 %v8386_v29  ;;  %v8641_v36 = vcombine.low %v705_v25, %v713_v26 }
  0x65   : > { %v441_v32 = vld [vmem:[%s9719_s20 + $0x1c0] sm:$0xff]  ;;  %6620 = vmatpush1.bf16.msra.mxu0 %v8385_v35 }
  0x66   : > { %v689_v33 = vld [vmem:[%s9719_s20 + $0x980] sm:$0xff]  ;;  %v8370_v37 = vcombine.high %v433_v31, %v441_v32  ;;  %6662 = vmatprep.subr.bf16.mxu1 %v8642_v30  ;;  %v8369_v43 = vcombine.low %v433_v31, %v441_v32 }
  0x67   : > { %v697_v34 = vld [vmem:[%s9719_s20 + $0x9c0] sm:$0xff]  ;;  %6663 = vmatpush1.bf16.msra.mxu1 %v8641_v36 }
  0x68   : > { %v8626_v38 = vcombine.high %v689_v33, %v697_v34  ;;  %v417_v39 = vld [vmem:[%s9719_s20 + $0x100] sm:$0xff]  ;;  %6621 = vmatprep.subr.bf16.mxu0 %v8370_v37  ;;  %v8625_v44 = vcombine.low %v689_v33, %v697_v34 }
  0x69   : > { %v425_v40 = vld [vmem:[%s9719_s20 + $0x140] sm:$0xff]  ;;  %6622 = vmatpush1.bf16.msra.mxu0 %v8369_v43 }
  0x6a   : > { %v673_v41 = vld [vmem:[%s9719_s20 + $0x900] sm:$0xff]  ;;  %v8354_v45 = vcombine.high %v417_v39, %v425_v40  ;;  %6664 = vmatprep.subr.bf16.mxu1 %v8626_v38  ;;  %v8353_v51 = vcombine.low %v417_v39, %v425_v40 }
  0x6b   : > { %v681_v42 = vld [vmem:[%s9719_s20 + $0x940] sm:$0xff]  ;;  %6665 = vmatpush1.bf16.msra.mxu1 %v8625_v44 }
  0x6c   : > { %v8610_v46 = vcombine.high %v673_v41, %v681_v42  ;;  %v401_v47 = vld [vmem:[%s9719_s20 + $0x80] sm:$0xff]  ;;  %6623 = vmatprep.subr.bf16.mxu0 %v8354_v45  ;;  %v8609_v52 = vcombine.low %v673_v41, %v681_v42 }
  0x6d   : > { %v409_v48 = vld [vmem:[%s9719_s20 + $0xc0] sm:$0xff]  ;;  %6624 = vmatpush1.bf16.msra.mxu0 %v8353_v51 }
  0x6e   : > { %v657_v49 = vld [vmem:[%s9719_s20 + $0x880] sm:$0xff]  ;;  %v8338_v53 = vcombine.high %v401_v47, %v409_v48  ;;  %6666 = vmatprep.subr.bf16.mxu1 %v8610_v46  ;;  %v8337_v1 = vcombine.low %v401_v47, %v409_v48 }
  0x6f   : > { %v665_v50 = vld [vmem:[%s9719_s20 + $0x8c0] sm:$0xff]  ;;  %6667 = vmatpush1.bf16.msra.mxu1 %v8609_v52 }
  0x70   : > { %v385_v54 = vld [vmem:[%s9719_s20] sm:$0xff]  ;;  %v8594_v57 = vcombine.high %v657_v49, %v665_v50  ;;  %6625 = vmatprep.subr.bf16.mxu0 %v8338_v53  ;;  %v8593_v2 = vcombine.low %v657_v49, %v665_v50 }
  0x71   : > { %v362_v55 = vld [vmem:[%s11182_s0 + $0x8] sm:$0xff]  ;;  %6626 = vmatpush1.bf16.msra.mxu0 %v8337_v1 }
  0x72   : > { %v370_v56 = vld [vmem:[%s11182_s0 + $0x48] sm:$0xff]  ;;  %6668 = vmatprep.subr.bf16.mxu1 %v8594_v57 }
  0x73   : > { %v393_v58 = vld [vmem:[%s9719_s20 + $0x40] sm:$0xff]  ;;  %v9772_v59 = vpack.c.bf16 %v370_v56, %v362_v55  ;;  %6669 = vmatpush1.bf16.msra.mxu1 %v8593_v2 }
  0x74   : > { %v641_v62 = vld [vmem:[%s9719_s20 + $0x800] sm:$0xff]  ;;  %v8322_v3 = vcombine.high %v385_v54, %v393_v58  ;;  %v8321_v9 = vcombine.low %v385_v54, %v393_v58 }
  0x75   : > { %v649_v63 = vld [vmem:[%s9719_s20 + $0x840] sm:$0xff]  ;;  %6645 = vmatprep.mubr.bf16.mxu0 %v9772_v59 }
  0x76   : > { %v8578_v4 = vcombine.high %v641_v62, %v649_v63  ;;  %v625_v5 = vld [vmem:[%s9719_s20 + $0x780] sm:$0xff]  ;;  %6627 = vmatprep.subr.bf16.mxu0 %v8322_v3  ;;  %v8577_v10 = vcombine.low %v641_v62, %v649_v63 }
  0x77   : > { %v633_v6 = vld [vmem:[%s9719_s20 + $0x7c0] sm:$0xff]  ;;  %6628 = vmatpush1.bf16.msra.mxu0 %v8321_v9 }
  0x78   : > { %v881_v7 = vld [vmem:[%s9719_s20 + $0xf80] sm:$0xff]  ;;  %v8562_v11 = vcombine.high %v625_v5, %v633_v6  ;;  %6670 = vmatprep.subr.bf16.mxu1 %v8578_v4  ;;  %v8561_v17 = vcombine.low %v625_v5, %v633_v6 }
  0x79   : > { %v889_v8 = vld [vmem:[%s9719_s20 + $0xfc0] sm:$0xff]  ;;  %6671 = vmatpush1.bf16.msra.mxu1 %v8577_v10 }
  0x7a   : > { %v8818_v12 = vcombine.high %v881_v7, %v889_v8  ;;  %v609_v13 = vld [vmem:[%s9719_s20 + $0x700] sm:$0xff]  ;;  %6629 = vmatprep.subr.bf16.mxu0 %v8562_v11  ;;  %v8817_v18 = vcombine.low %v881_v7, %v889_v8 }
  0x7b   : > { %v617_v14 = vld [vmem:[%s9719_s20 + $0x740] sm:$0xff]  ;;  %6630 = vmatpush2.bf16.msra.mxu0 %v8561_v17 }
  0x7c   : > { %v865_v15 = vld [vmem:[%s9719_s20 + $0xf00] sm:$0xff]  ;;  %v8546_v19 = vcombine.high %v609_v13, %v617_v14  ;;  %6672 = vmatprep.subr.bf16.mxu1 %v8818_v12  ;;  %v8545_v25 = vcombine.low %v609_v13, %v617_v14  ;;  %v361_v12 = vld [vmem:[%s11182_s0] sm:$0xff] }
  0x7d   : > { %v873_v16 = vld [vmem:[%s9719_s20 + $0xf40] sm:$0xff]  ;;  %6673 = vmatpush2.bf16.msra.mxu1 %v8817_v18  ;;  %v369_v13 = vld [vmem:[%s11182_s0 + $0x40] sm:$0xff] }
  0x7e   : > { %v8802_v20 = vcombine.high %v865_v15, %v873_v16  ;;  %v593_v21 = vld [vmem:[%s9719_s20 + $0x680] sm:$0xff]  ;;  %6631 = vmatprep.subr.bf16.mxu0 %v8546_v19  ;;  %v8801_v26 = vcombine.low %v865_v15, %v873_v16  ;;  %v363_v15 = vld [vmem:[%s11182_s0 + $0x10] sm:$0xff] }
  0x7f   : > { %v601_v22 = vld [vmem:[%s9719_s20 + $0x6c0] sm:$0xff]  ;;  %6632 = vmatpush2.bf16.msra.mxu0 %v8545_v25  ;;  %v371_v16 = vld [vmem:[%s11182_s0 + $0x50] sm:$0xff] }
  0x80   : > { %v849_v23 = vld [vmem:[%s9719_s20 + $0xe80] sm:$0xff]  ;;  %v8530_v27 = vcombine.high %v593_v21, %v601_v22  ;;  %6674 = vmatprep.subr.bf16.mxu1 %v8802_v20  ;;  %v8529_v33 = vcombine.low %v593_v21, %v601_v22  ;;  %v9837_v22 = vpack.c.bf16 %v369_v13, %v361_v12 }
  0x81   : > { %v857_v24 = vld [vmem:[%s9719_s20 + $0xec0] sm:$0xff]  ;;  %6675 = vmatpush2.bf16.msra.mxu1 %v8801_v26  ;;  %v9846_v26 = vpack.c.bf16 %v371_v16, %v363_v15 }
  0x82   : > { %v8786_v28 = vcombine.high %v849_v23, %v857_v24  ;;  %v577_v29 = vld [vmem:[%s9719_s20 + $0x600] sm:$0xff]  ;;  %6633 = vmatprep.subr.bf16.mxu0 %v8530_v27  ;;  %v8785_v34 = vcombine.low %v849_v23, %v857_v24 }
  0x83   : > { %v585_v30 = vld [vmem:[%s9719_s20 + $0x640] sm:$0xff]  ;;  %6634 = vmatpush2.bf16.msra.mxu0 %v8529_v33 }
  0x84   : > { %v833_v31 = vld [vmem:[%s9719_s20 + $0xe00] sm:$0xff]  ;;  %v8514_v35 = vcombine.high %v577_v29, %v585_v30  ;;  %6676 = vmatprep.subr.bf16.mxu1 %v8786_v28  ;;  %v8513_v41 = vcombine.low %v577_v29, %v585_v30  ;;  %v368_v28 = vld [vmem:[%s11182_s0 + $0x38] sm:$0xff] }
  0x85   : > { %v841_v32 = vld [vmem:[%s9719_s20 + $0xe40] sm:$0xff]  ;;  %6677 = vmatpush2.bf16.msra.mxu1 %v8785_v34  ;;  %v376_v29 = vld [vmem:[%s11182_s0 + $0x78] sm:$0xff] }
  0x86   : > { %v8770_v36 = vcombine.high %v833_v31, %v841_v32  ;;  %v561_v37 = vld [vmem:[%s9719_s20 + $0x580] sm:$0xff]  ;;  %6635 = vmatprep.subr.bf16.mxu0 %v8514_v35  ;;  %v8769_v42 = vcombine.low %v833_v31, %v841_v32 }
  0x87   : > { %v569_v38 = vld [vmem:[%s9719_s20 + $0x5c0] sm:$0xff]  ;;  %6636 = vmatpush2.bf16.msra.mxu0 %v8513_v41 }
  0x88   : > { %v817_v39 = vld [vmem:[%s9719_s20 + $0xd80] sm:$0xff]  ;;  %v8498_v43 = vcombine.high %v561_v37, %v569_v38  ;;  %6678 = vmatprep.subr.bf16.mxu1 %v8770_v36  ;;  %v8497_v49 = vcombine.low %v561_v37, %v569_v38  ;;  %v9861_v38 = vpack.c.bf16 %v376_v29, %v368_v28 }
  0x89   : > { %v825_v40 = vld [vmem:[%s9719_s20 + $0xdc0] sm:$0xff]  ;;  %6679 = vmatpush2.bf16.msra.mxu1 %v8769_v42 }
  0x8a   : > { %v8754_v44 = vcombine.high %v817_v39, %v825_v40  ;;  %v545_v45 = vld [vmem:[%s9719_s20 + $0x500] sm:$0xff]  ;;  %6637 = vmatprep.subr.bf16.mxu0 %v8498_v43  ;;  %v8753_v50 = vcombine.low %v817_v39, %v825_v40 }
  0x8b   : > { %v553_v46 = vld [vmem:[%s9719_s20 + $0x540] sm:$0xff]  ;;  %6638 = vmatpush2.bf16.msra.mxu0 %v8497_v49 }
  0x8c   : > { %v801_v47 = vld [vmem:[%s9719_s20 + $0xd00] sm:$0xff]  ;;  %v8482_v51 = vcombine.high %v545_v45, %v553_v46  ;;  %6680 = vmatprep.subr.bf16.mxu1 %v8754_v44  ;;  %v8481_v57 = vcombine.low %v545_v45, %v553_v46 }
  0x8d   : > { %v809_v48 = vld [vmem:[%s9719_s20 + $0xd40] sm:$0xff]  ;;  %6681 = vmatpush2.bf16.msra.mxu1 %v8753_v50 }
  0x8e   : > { %v8738_v52 = vcombine.high %v801_v47, %v809_v48  ;;  %v529_v53 = vld [vmem:[%s9719_s20 + $0x480] sm:$0xff]  ;;  %6639 = vmatprep.subr.bf16.mxu0 %v8482_v51  ;;  %v8737_v58 = vcombine.low %v801_v47, %v809_v48 }
  0x8f   : > { %v537_v54 = vld [vmem:[%s9719_s20 + $0x4c0] sm:$0xff]  ;;  %6640 = vmatpush2.bf16.msra.mxu0 %v8481_v57 }
  0x90   : > { %v785_v55 = vld [vmem:[%s9719_s20 + $0xc80] sm:$0xff]  ;;  %v8466_v60 = vcombine.high %v529_v53, %v537_v54  ;;  %6682 = vmatprep.subr.bf16.mxu1 %v8738_v52  ;;  %v8465_v3 = vcombine.low %v529_v53, %v537_v54 }
  0x91   : > { %v793_v56 = vld [vmem:[%s9719_s20 + $0xcc0] sm:$0xff]  ;;  %6683 = vmatpush2.bf16.msra.mxu1 %v8737_v58 }
  0x92   : > { %v8722_v61 = vcombine.high %v785_v55, %v793_v56  ;;  %v513_v62 = vld [vmem:[%s9719_s20 + $0x400] sm:$0xff]  ;;  %6641 = vmatprep.subr.bf16.mxu0 %v8466_v60  ;;  %v8721_v4 = vcombine.low %v785_v55, %v793_v56 }
  0x93   : > { %v521_v63 = vld [vmem:[%s9719_s20 + $0x440] sm:$0xff]  ;;  %6642 = vmatpush2.bf16.msra.mxu0 %v8465_v3 }
  0x94   : > { %v769_v1 = vld [vmem:[%s9719_s20 + $0xc00] sm:$0xff]  ;;  %v8450_v5 = vcombine.high %v513_v62, %v521_v63  ;;  %6684 = vmatprep.subr.bf16.mxu1 %v8722_v61  ;;  %v8449_v11 = vcombine.low %v513_v62, %v521_v63 }
  0x95   : > { %v777_v2 = vld [vmem:[%s9719_s20 + $0xc40] sm:$0xff]  ;;  %6685 = vmatpush2.bf16.msra.mxu1 %v8721_v4 }
  0x96   : > { %v8706_v6 = vcombine.high %v769_v1, %v777_v2  ;;  %v1009_v7 = vld [vmem:[%s9719_s20 + $0x1380] sm:$0xff]  ;;  %6643 = vmatprep.subr.bf16.mxu0 %v8450_v5  ;;  %v8705_v14 = vcombine.low %v769_v1, %v777_v2 }
  0x97   : > { %v1017_v8 = vld [vmem:[%s9719_s20 + $0x13c0] sm:$0xff]  ;;  %6644 = vmatpush2.bf16.msra.mxu0 %v8449_v11 }
  0x98   : > { %v1265_v9 = vld [vmem:[%s9719_s20 + $0x1b80] sm:$0xff]  ;;  %v8946_v17 = vcombine.high %v1009_v7, %v1017_v8  ;;  %6686 = vmatprep.subr.bf16.mxu1 %v8706_v6  ;;  %v8945_v27 = vcombine.low %v1009_v7, %v1017_v8 }
  0x99   : > { %v1273_v10 = vld [vmem:[%s9719_s20 + $0x1bc0] sm:$0xff]  ;;  %6687 = vmatpush2.bf16.msra.mxu1 %v8705_v14 }
  0x9a   : > { %v9202_v18 = vcombine.high %v1265_v9, %v1273_v10  ;;  %v993_v19 = vld [vmem:[%s9719_s20 + $0x1300] sm:$0xff]  ;;  %6699 = vmatprep.subr.bf16.mxu0 %v8946_v17  ;;  %v9201_v30 = vcombine.low %v1265_v9, %v1273_v10  ;;  %6646 = vmatmul.mubr.bf16.vlgmr.msra.gmra.mxu0 %v9837_v22 }
  0x9b   : > { %v1001_v20 = vld [vmem:[%s9719_s20 + $0x1340] sm:$0xff]  ;;  %6700 = vmatpush1.bf16.msra.mxu0 %v8945_v27 }
  0x9c   : > { %v1249_v21 = vld [vmem:[%s9719_s20 + $0x1b00] sm:$0xff]  ;;  %v8930_v31 = vcombine.high %v993_v19, %v1001_v20  ;;  %6742 = vmatprep.subr.bf16.mxu1 %v9202_v18  ;;  %6689 = vmatmul.mubr.bf16.vlgmr.msra.gmra.mxu1 %v9846_v26  ;;  %v8929_v39 = vcombine.low %v993_v19, %v1001_v20 }
  0x9d   : > { %v1257_v23 = vld [vmem:[%s9719_s20 + $0x1b40] sm:$0xff]  ;;  %6743 = vmatpush1.bf16.msra.mxu1 %v9201_v30  ;;  %6774 = vmatprep.mubr.bf16.mxu1 %v9861_v38 }
  0x9e   : > { %v366_v24 = vld [vmem:[%s11182_s0 + $0x28] sm:$0xff]  ;;  %v9186_v32 = vcombine.high %v1249_v21, %v1257_v23  ;;  %6701 = vmatprep.subr.bf16.mxu0 %v8930_v31  ;;  %v9185_v40 = vcombine.low %v1249_v21, %v1257_v23 }
  0x9f   : > { %v374_v25 = vld [vmem:[%s11182_s0 + $0x68] sm:$0xff]  ;;  %6702 = vmatpush1.bf16.msra.mxu0 %v8929_v39 }
  0xa0   : > { %v977_v33 = vld [vmem:[%s9719_s20 + $0x1280] sm:$0xff]  ;;  %v9856_v35 = vpack.c.bf16 %v374_v25, %v366_v24  ;;  %6744 = vmatprep.subr.bf16.mxu1 %v9186_v32 }
  0xa1   : > { %v985_v34 = vld [vmem:[%s9719_s20 + $0x12c0] sm:$0xff]  ;;  %6745 = vmatpush1.bf16.msra.mxu1 %v9185_v40 }
  0xa2   : > { %v1233_v36 = vld [vmem:[%s9719_s20 + $0x1a80] sm:$0xff]  ;;  %v8914_v41 = vcombine.high %v977_v33, %v985_v34  ;;  %6731 = vmatprep.mubr.bf16.mxu0 %v9856_v35  ;;  %v8913_v47 = vcombine.low %v977_v33, %v985_v34 }
  0xa3   : > { %v1241_v37 = vld [vmem:[%s9719_s20 + $0x1ac0] sm:$0xff] }
  0xa4   : > { %v9170_v42 = vcombine.high %v1233_v36, %v1241_v37  ;;  %v961_v43 = vld [vmem:[%s9719_s20 + $0x1200] sm:$0xff]  ;;  %6703 = vmatprep.subr.bf16.mxu0 %v8914_v41  ;;  %v9169_v48 = vcombine.low %v1233_v36, %v1241_v37 }
  0xa5   : > { %v969_v44 = vld [vmem:[%s9719_s20 + $0x1240] sm:$0xff]  ;;  %6704 = vmatpush1.bf16.msra.mxu0 %v8913_v47 }
  0xa6   : > { %v1217_v45 = vld [vmem:[%s9719_s20 + $0x1a00] sm:$0xff]  ;;  %v8898_v49 = vcombine.high %v961_v43, %v969_v44  ;;  %6746 = vmatprep.subr.bf16.mxu1 %v9170_v42  ;;  %v8897_v55 = vcombine.low %v961_v43, %v969_v44 }
  0xa7   : > { %v1225_v46 = vld [vmem:[%s9719_s20 + $0x1a40] sm:$0xff]  ;;  %6747 = vmatpush1.bf16.msra.mxu1 %v9169_v48 }
  0xa8   : > { %v9154_v50 = vcombine.high %v1217_v45, %v1225_v46  ;;  %v945_v51 = vld [vmem:[%s9719_s20 + $0x1180] sm:$0xff]  ;;  %6705 = vmatprep.subr.bf16.mxu0 %v8898_v49  ;;  %v9153_v56 = vcombine.low %v1217_v45, %v1225_v46 }
  0xa9   : > { %v953_v52 = vld [vmem:[%s9719_s20 + $0x11c0] sm:$0xff]  ;;  %6706 = vmatpush1.bf16.msra.mxu0 %v8897_v55 }
  0xaa   : > { %v1201_v53 = vld [vmem:[%s9719_s20 + $0x1980] sm:$0xff]  ;;  %v8882_v57 = vcombine.high %v945_v51, %v953_v52  ;;  %6748 = vmatprep.subr.bf16.mxu1 %v9154_v50  ;;  %v8881_v1 = vcombine.low %v945_v51, %v953_v52 }
  0xab   : > { %v1209_v54 = vld [vmem:[%s9719_s20 + $0x19c0] sm:$0xff]  ;;  %6749 = vmatpush1.bf16.msra.mxu1 %v9153_v56 }
  0xac   : > { %v9138_v58 = vcombine.high %v1201_v53, %v1209_v54  ;;  %v929_v60 = vld [vmem:[%s9719_s20 + $0x1100] sm:$0xff]  ;;  %6707 = vmatprep.subr.bf16.mxu0 %v8882_v57  ;;  %v9137_v2 = vcombine.low %v1201_v53, %v1209_v54 }
  0xad   : > { %v937_v61 = vld [vmem:[%s9719_s20 + $0x1140] sm:$0xff]  ;;  %6708 = vmatpush1.bf16.msra.mxu0 %v8881_v1 }
  0xae   : > { %v1185_v62 = vld [vmem:[%s9719_s20 + $0x1900] sm:$0xff]  ;;  %v8866_v3 = vcombine.high %v929_v60, %v937_v61  ;;  %6750 = vmatprep.subr.bf16.mxu1 %v9138_v58  ;;  %v8865_v9 = vcombine.low %v929_v60, %v937_v61 }
  0xaf   : > { %v1193_v63 = vld [vmem:[%s9719_s20 + $0x1940] sm:$0xff]  ;;  %6751 = vmatpush1.bf16.msra.mxu1 %v9137_v2 }
  0xb0   : > { %v9122_v4 = vcombine.high %v1185_v62, %v1193_v63  ;;  %v913_v5 = vld [vmem:[%s9719_s20 + $0x1080] sm:$0xff]  ;;  %6709 = vmatprep.subr.bf16.mxu0 %v8866_v3  ;;  %v9121_v10 = vcombine.low %v1185_v62, %v1193_v63 }
  0xb1   : > { %v921_v6 = vld [vmem:[%s9719_s20 + $0x10c0] sm:$0xff]  ;;  %6710 = vmatpush1.bf16.msra.mxu0 %v8865_v9 }
  0xb2   : > { %v1169_v7 = vld [vmem:[%s9719_s20 + $0x1880] sm:$0xff]  ;;  %v8850_v11 = vcombine.high %v913_v5, %v921_v6  ;;  %6752 = vmatprep.subr.bf16.mxu1 %v9122_v4  ;;  %v8849_v17 = vcombine.low %v913_v5, %v921_v6 }
  0xb3   : > { %v1177_v8 = vld [vmem:[%s9719_s20 + $0x18c0] sm:$0xff]  ;;  %6753 = vmatpush1.bf16.msra.mxu1 %v9121_v10 }
  0xb4   : > { %v9106_v12 = vcombine.high %v1169_v7, %v1177_v8  ;;  %v897_v13 = vld [vmem:[%s9719_s20 + $0x1000] sm:$0xff]  ;;  %6711 = vmatprep.subr.bf16.mxu0 %v8850_v11  ;;  %v9105_v18 = vcombine.low %v1169_v7, %v1177_v8 }
  0xb5   : > { %v905_v14 = vld [vmem:[%s9719_s20 + $0x1040] sm:$0xff]  ;;  %6712 = vmatpush1.bf16.msra.mxu0 %v8849_v17 }
  0xb6   : > { %v1153_v15 = vld [vmem:[%s9719_s20 + $0x1800] sm:$0xff]  ;;  %v8834_v19 = vcombine.high %v897_v13, %v905_v14  ;;  %6754 = vmatprep.subr.bf16.mxu1 %v9106_v12  ;;  %v8833_v27 = vcombine.low %v897_v13, %v905_v14 }
  0xb7   : > { %v1161_v16 = vld [vmem:[%s9719_s20 + $0x1840] sm:$0xff]  ;;  %6755 = vmatpush1.bf16.msra.mxu1 %v9105_v18 }
  0xb8   : > { %v9090_v20 = vcombine.high %v1153_v15, %v1161_v16  ;;  %v1137_v21 = vld [vmem:[%s9719_s20 + $0x1780] sm:$0xff]  ;;  %6713 = vmatprep.subr.bf16.mxu0 %v8834_v19  ;;  %v9089_v28 = vcombine.low %v1153_v15, %v1161_v16 }
  0xb9   : > { %v1145_v23 = vld [vmem:[%s9719_s20 + $0x17c0] sm:$0xff]  ;;  %6714 = vmatpush1.bf16.msra.mxu0 %v8833_v27 }
  0xba   : > { %v1393_v24 = vld [vmem:[%s9719_s20 + $0x1f80] sm:$0xff]  ;;  %v9074_v29 = vcombine.high %v1137_v21, %v1145_v23  ;;  %6756 = vmatprep.subr.bf16.mxu1 %v9090_v20  ;;  %v9073_v36 = vcombine.low %v1137_v21, %v1145_v23 }
  0xbb   : > { %v1401_v25 = vld [vmem:[%s9719_s20 + $0x1fc0] sm:$0xff]  ;;  %6757 = vmatpush1.bf16.msra.mxu1 %v9089_v28 }
  0xbc   : > { %v9330_v30 = vcombine.high %v1393_v24, %v1401_v25  ;;  %v1121_v31 = vld [vmem:[%s9719_s20 + $0x1700] sm:$0xff]  ;;  %6715 = vmatprep.subr.bf16.mxu0 %v9074_v29  ;;  %v9329_v37 = vcombine.low %v1393_v24, %v1401_v25  ;;  %v498_v29 = vld [vmem:[%s9719_s20 + $0x388] sm:$0xff] }
  0xbd   : > { %v1129_v32 = vld [vmem:[%s9719_s20 + $0x1740] sm:$0xff]  ;;  %6716 = vmatpush2.bf16.msra.mxu0 %v9073_v36  ;;  %v373_v36 = vld [vmem:[%s11182_s0 + $0x60] sm:$0xff] }
  0xbe   : > { %v1377_v33 = vld [vmem:[%s9719_s20 + $0x1f00] sm:$0xff]  ;;  %v9058_v39 = vcombine.high %v1121_v31, %v1129_v32  ;;  %6758 = vmatprep.subr.bf16.mxu1 %v9330_v30  ;;  %v9057_v45 = vcombine.low %v1121_v31, %v1129_v32  ;;  %v506_v30 = vld [vmem:[%s9719_s20 + $0x3c8] sm:$0xff] }
  0xbf   : > { %v1385_v34 = vld [vmem:[%s9719_s20 + $0x1f40] sm:$0xff]  ;;  %6759 = vmatpush2.bf16.msra.mxu1 %v9329_v37  ;;  %v754_v31 = vld [vmem:[%s9719_s20 + $0xb88] sm:$0xff] }
  0xc0   : > { %v9314_v40 = vcombine.high %v1377_v33, %v1385_v34  ;;  %v1105_v41 = vld [vmem:[%s9719_s20 + $0x1680] sm:$0xff]  ;;  %6717 = vmatprep.subr.bf16.mxu0 %v9058_v39  ;;  %v9313_v46 = vcombine.low %v1377_v33, %v1385_v34  ;;  %v762_v32 = vld [vmem:[%s9719_s20 + $0xbc8] sm:$0xff]  ;;  %v365_v34 = vld [vmem:[%s11182_s0 + $0x20] sm:$0xff] }
  0xc1   : > { %v1113_v42 = vld [vmem:[%s9719_s20 + $0x16c0] sm:$0xff]  ;;  %6718 = vmatpush2.bf16.msra.mxu0 %v9057_v45  ;;  %v367_v39 = vld [vmem:[%s11182_s0 + $0x30] sm:$0xff]  ;;  %v9936_v45 = vpack.c.bf16 %v373_v36, %v365_v34 }
  0xc2   : > { %v1361_v43 = vld [vmem:[%s9719_s20 + $0x1e80] sm:$0xff]  ;;  %v9042_v47 = vcombine.high %v1105_v41, %v1113_v42  ;;  %6760 = vmatprep.subr.bf16.mxu1 %v9314_v40  ;;  %v9041_v53 = vcombine.low %v1105_v41, %v1113_v42  ;;  %v375_v40 = vld [vmem:[%s11182_s0 + $0x70] sm:$0xff]  ;;  %v8436_v41 = vcombine.high %v498_v29, %v506_v30  ;;  %v8692_v42 = vcombine.high %v754_v31, %v762_v32 }
  0xc3   : > { %v1369_v44 = vld [vmem:[%s9719_s20 + $0x1ec0] sm:$0xff]  ;;  %6761 = vmatpush2.bf16.msra.mxu1 %v9313_v46  ;;  %v738_v46 = vld [vmem:[%s9719_s20 + $0xb08] sm:$0xff] }
  0xc4   : > { %v9298_v48 = vcombine.high %v1361_v43, %v1369_v44  ;;  %v1089_v49 = vld [vmem:[%s9719_s20 + $0x1600] sm:$0xff]  ;;  %6719 = vmatprep.subr.bf16.mxu0 %v9042_v47  ;;  %v9297_v54 = vcombine.low %v1361_v43, %v1369_v44  ;;  %v482_v43 = vld [vmem:[%s9719_s20 + $0x308] sm:$0xff] }
  0xc5   : > { %v1097_v50 = vld [vmem:[%s9719_s20 + $0x1640] sm:$0xff]  ;;  %6720 = vmatpush2.bf16.msra.mxu0 %v9041_v53  ;;  %v490_v44 = vld [vmem:[%s9719_s20 + $0x348] sm:$0xff] }
  0xc6   : > { %v1345_v51 = vld [vmem:[%s9719_s20 + $0x1e00] sm:$0xff]  ;;  %v9026_v55 = vcombine.high %v1089_v49, %v1097_v50  ;;  %6762 = vmatprep.subr.bf16.mxu1 %v9298_v48  ;;  %v9025_v62 = vcombine.low %v1089_v49, %v1097_v50  ;;  %v746_v47 = vld [vmem:[%s9719_s20 + $0xb48] sm:$0xff]  ;;  %v9940_v48 = vpack.c.bf16 %v375_v40, %v367_v39  ;;  %v8435_v49 = vcombine.low %v498_v29, %v506_v30 }
  0xc7   : > { %v1353_v52 = vld [vmem:[%s9719_s20 + $0x1e40] sm:$0xff]  ;;  %6763 = vmatpush2.bf16.msra.mxu1 %v9297_v54  ;;  %v8691_v50 = vcombine.low %v754_v31, %v762_v32  ;;  %v466_v53 = vld [vmem:[%s9719_s20 + $0x288] sm:$0xff] }
  0xc8   : > { %v9282_v56 = vcombine.high %v1345_v51, %v1353_v52  ;;  %v1073_v57 = vld [vmem:[%s9719_s20 + $0x1580] sm:$0xff]  ;;  %6721 = vmatprep.subr.bf16.mxu0 %v9026_v55  ;;  %v9281_v63 = vcombine.low %v1345_v51, %v1353_v52  ;;  %v8420_v51 = vcombine.high %v482_v43, %v490_v44  ;;  %v8676_v52 = vcombine.high %v738_v46, %v746_v47  ;;  %v474_v54 = vld [vmem:[%s9719_s20 + $0x2c8] sm:$0xff] }
  0xc9   : > { %v1081_v58 = vld [vmem:[%s9719_s20 + $0x15c0] sm:$0xff]  ;;  %6722 = vmatpush2.bf16.msra.mxu0 %v9025_v62  ;;  %v722_v55 = vld [vmem:[%s9719_s20 + $0xa88] sm:$0xff] }
  0xca   : > { %v1329_v60 = vld [vmem:[%s9719_s20 + $0x1d80] sm:$0xff]  ;;  %v9010_v1 = vcombine.high %v1073_v57, %v1081_v58  ;;  %6764 = vmatprep.subr.bf16.mxu1 %v9282_v56  ;;  %v9009_v7 = vcombine.low %v1073_v57, %v1081_v58  ;;  %v730_v56 = vld [vmem:[%s9719_s20 + $0xac8] sm:$0xff]  ;;  %v8419_v57 = vcombine.low %v482_v43, %v490_v44  ;;  %v8675_v58 = vcombine.low %v738_v46, %v746_v47 }
  0xcb   : > { %v1337_v61 = vld [vmem:[%s9719_s20 + $0x1dc0] sm:$0xff]  ;;  %6765 = vmatpush2.bf16.msra.mxu1 %v9281_v63  ;;  %v450_v62 = vld [vmem:[%s9719_s20 + $0x208] sm:$0xff] }
  0xcc   : > { %v9266_v2 = vcombine.high %v1329_v60, %v1337_v61  ;;  %v1057_v3 = vld [vmem:[%s9719_s20 + $0x1500] sm:$0xff]  ;;  %6723 = vmatprep.subr.bf16.mxu0 %v9010_v1  ;;  %v9265_v8 = vcombine.low %v1329_v60, %v1337_v61  ;;  %v8404_v60 = vcombine.high %v466_v53, %v474_v54  ;;  %v8660_v61 = vcombine.high %v722_v55, %v730_v56  ;;  %v458_v63 = vld [vmem:[%s9719_s20 + $0x248] sm:$0xff] }
  0xcd   : > { %v1065_v4 = vld [vmem:[%s9719_s20 + $0x1540] sm:$0xff]  ;;  %6724 = vmatpush2.bf16.msra.mxu0 %v9009_v7  ;;  %v706_v1 = vld [vmem:[%s9719_s20 + $0xa08] sm:$0xff] }
  0xce   : > { %v1313_v5 = vld [vmem:[%s9719_s20 + $0x1d00] sm:$0xff]  ;;  %v8994_v9 = vcombine.high %v1057_v3, %v1065_v4  ;;  %6766 = vmatprep.subr.bf16.mxu1 %v9266_v2  ;;  %v8993_v15 = vcombine.low %v1057_v3, %v1065_v4  ;;  %v714_v2 = vld [vmem:[%s9719_s20 + $0xa48] sm:$0xff]  ;;  %v8403_v3 = vcombine.low %v466_v53, %v474_v54  ;;  %v8659_v4 = vcombine.low %v722_v55, %v730_v56 }
  0xcf   : > { %v1321_v6 = vld [vmem:[%s9719_s20 + $0x1d40] sm:$0xff]  ;;  %6767 = vmatpush2.bf16.msra.mxu1 %v9265_v8  ;;  %v434_v7 = vld [vmem:[%s9719_s20 + $0x188] sm:$0xff] }
  0xd0   : > { %v9250_v10 = vcombine.high %v1313_v5, %v1321_v6  ;;  %v1041_v11 = vld [vmem:[%s9719_s20 + $0x1480] sm:$0xff]  ;;  %6725 = vmatprep.subr.bf16.mxu0 %v8994_v9  ;;  %v9249_v16 = vcombine.low %v1313_v5, %v1321_v6  ;;  %v8388_v5 = vcombine.high %v450_v62, %v458_v63  ;;  %v8644_v6 = vcombine.high %v706_v1, %v714_v2  ;;  %v442_v8 = vld [vmem:[%s9719_s20 + $0x1c8] sm:$0xff] }
  0xd1   : > { %v1049_v12 = vld [vmem:[%s9719_s20 + $0x14c0] sm:$0xff]  ;;  %6726 = vmatpush2.bf16.msra.mxu0 %v8993_v15  ;;  %v690_v9 = vld [vmem:[%s9719_s20 + $0x988] sm:$0xff] }
  0xd2   : > { %v1297_v13 = vld [vmem:[%s9719_s20 + $0x1c80] sm:$0xff]  ;;  %v8978_v17 = vcombine.high %v1041_v11, %v1049_v12  ;;  %6768 = vmatprep.subr.bf16.mxu1 %v9250_v10  ;;  %v8977_v24 = vcombine.low %v1041_v11, %v1049_v12  ;;  %v698_v10 = vld [vmem:[%s9719_s20 + $0x9c8] sm:$0xff]  ;;  %v8387_v11 = vcombine.low %v450_v62, %v458_v63  ;;  %v8643_v12 = vcombine.low %v706_v1, %v714_v2 }
  0xd3   : > { %v1305_v14 = vld [vmem:[%s9719_s20 + $0x1cc0] sm:$0xff]  ;;  %6769 = vmatpush2.bf16.msra.mxu1 %v9249_v16  ;;  %v418_v15 = vld [vmem:[%s9719_s20 + $0x108] sm:$0xff] }
  0xd4   : > { %v9234_v18 = vcombine.high %v1297_v13, %v1305_v14  ;;  %v1025_v19 = vld [vmem:[%s9719_s20 + $0x1400] sm:$0xff]  ;;  %6727 = vmatprep.subr.bf16.mxu0 %v8978_v17  ;;  %v9233_v25 = vcombine.low %v1297_v13, %v1305_v14  ;;  %v8372_v13 = vcombine.high %v434_v7, %v442_v8  ;;  %v8628_v14 = vcombine.high %v690_v9, %v698_v10  ;;  %v426_v16 = vld [vmem:[%s9719_s20 + $0x148] sm:$0xff] }
  0xd5   : > { %v1033_v20 = vld [vmem:[%s9719_s20 + $0x1440] sm:$0xff]  ;;  %6728 = vmatpush2.bf16.msra.mxu0 %v8977_v24  ;;  %v674_v17 = vld [vmem:[%s9719_s20 + $0x908] sm:$0xff]  ;;  %v8355_v29 = vcombine.low %v418_v15, %v426_v16 }
  0xd6   : > { %v1281_v21 = vld [vmem:[%s9719_s20 + $0x1c00] sm:$0xff]  ;;  %v8962_v27 = vcombine.high %v1025_v19, %v1033_v20  ;;  %6770 = vmatprep.subr.bf16.mxu1 %v9234_v18  ;;  %v8961_v33 = vcombine.low %v1025_v19, %v1033_v20  ;;  %v682_v18 = vld [vmem:[%s9719_s20 + $0x948] sm:$0xff]  ;;  %v8371_v19 = vcombine.low %v434_v7, %v442_v8  ;;  %v8627_v20 = vcombine.low %v690_v9, %v698_v10 }
  0xd7   : > { %v1289_v23 = vld [vmem:[%s9719_s20 + $0x1c40] sm:$0xff]  ;;  %6771 = vmatpush2.bf16.msra.mxu1 %v9233_v25  ;;  %v402_v24 = vld [vmem:[%s9719_s20 + $0x88] sm:$0xff]  ;;  %v8611_v30 = vcombine.low %v674_v17, %v682_v18 }
  0xd8   : > { %v9218_v28 = vcombine.high %v1281_v21, %v1289_v23  ;;  %6729 = vmatprep.subr.bf16.mxu0 %v8962_v27  ;;  %v9217_v37 = vcombine.low %v1281_v21, %v1289_v23  ;;  %v8356_v21 = vcombine.high %v418_v15, %v426_v16  ;;  %v8612_v23 = vcombine.high %v674_v17, %v682_v18  ;;  %v410_v25 = vld [vmem:[%s9719_s20 + $0xc8] sm:$0xff] }
  0xd9   : > { %6730 = vmatpush2.bf16.msra.mxu0 %v8961_v33  ;;  %v658_v27 = vld [vmem:[%s9719_s20 + $0x888] sm:$0xff]  ;;  %v8340_v31 = vcombine.high %v402_v24, %v410_v25  ;;  %v8339_v39 = vcombine.low %v402_v24, %v410_v25 }
  0xda   : > { %6772 = vmatprep.subr.bf16.mxu1 %v9218_v28  ;;  %6785 = vmatprep.subr.bf16.mxu0 %v8436_v41  ;;  %v666_v28 = vld [vmem:[%s9719_s20 + $0x8c8] sm:$0xff] }
  0xdb   : > { %6773 = vmatpush2.bf16.msra.mxu1 %v9217_v37  ;;  %v8596_v32 = vcombine.high %v658_v27, %v666_v28  ;;  %v386_v33 = vld [vmem:[%s9719_s20 + $0x8] sm:$0xff]  ;;  %v8595_v40 = vcombine.low %v658_v27, %v666_v28 }
  0xdc   : > { %6828 = vmatprep.subr.bf16.mxu1 %v8692_v42  ;;  %6732 = vmatmul.mubr.bf16.vlgmr.msra.gmra.mxu0 %v9936_v45  ;;  %v394_v34 = vld [vmem:[%s9719_s20 + $0x48] sm:$0xff] }
  0xdd   : > { %6786 = vmatpush1.bf16.msra.mxu0 %v8435_v49  ;;  %6817 = vmatprep.mubr.bf16.mxu0 %v9772_v59  ;;  %v642_v36 = vld [vmem:[%s9719_s20 + $0x808] sm:$0xff]  ;;  %v8324_v41 = vcombine.high %v386_v33, %v394_v34  ;;  %v8323_v49 = vcombine.low %v386_v33, %v394_v34 }
  0xde   : > { %6775 = vmatmul.mubr.bf16.vlgmr.msra.gmra.mxu1 %v9940_v48  ;;  %6787 = vmatprep.subr.bf16.mxu0 %v8420_v51  ;;  %v650_v37 = vld [vmem:[%s9719_s20 + $0x848] sm:$0xff] }
  0xdf   : > { %6829 = vmatpush1.bf16.msra.mxu1 %v8691_v50  ;;  %6860 = vmatprep.mubr.bf16.mxu1 %v9782_v0  ;;  %v8580_v42 = vcombine.high %v642_v36, %v650_v37  ;;  %v626_v43 = vld [vmem:[%s9719_s20 + $0x788] sm:$0xff]  ;;  %v8579_v50 = vcombine.low %v642_v36, %v650_v37 }
  0xe0   : > { %6830 = vmatprep.subr.bf16.mxu1 %v8676_v52  ;;  %v634_v44 = vld [vmem:[%s9719_s20 + $0x7c8] sm:$0xff] }
  0xe1   : > { %6788 = vmatpush1.bf16.msra.mxu0 %v8419_v57  ;;  %v882_v46 = vld [vmem:[%s9719_s20 + $0xf88] sm:$0xff]  ;;  %v8564_v51 = vcombine.high %v626_v43, %v634_v44  ;;  %v8563_v57 = vcombine.low %v626_v43, %v634_v44 }
  0xe2   : > { %6789 = vmatprep.subr.bf16.mxu0 %v8404_v60  ;;  %v890_v47 = vld [vmem:[%s9719_s20 + $0xfc8] sm:$0xff] }
  0xe3   : > { %6831 = vmatpush1.bf16.msra.mxu1 %v8675_v58  ;;  %v8820_v52 = vcombine.high %v882_v46, %v890_v47  ;;  %v610_v53 = vld [vmem:[%s9719_s20 + $0x708] sm:$0xff]  ;;  %v8819_v58 = vcombine.low %v882_v46, %v890_v47 }
  0xe4   : > { %6832 = vmatprep.subr.bf16.mxu1 %v8660_v61  ;;  %v618_v54 = vld [vmem:[%s9719_s20 + $0x748] sm:$0xff] }
  0xe5   : > { %6790 = vmatpush1.bf16.msra.mxu0 %v8403_v3  ;;  %v866_v55 = vld [vmem:[%s9719_s20 + $0xf08] sm:$0xff]  ;;  %v8548_v60 = vcombine.high %v610_v53, %v618_v54  ;;  %v8547_v3 = vcombine.low %v610_v53, %v618_v54 }
  0xe6   : > { %6791 = vmatprep.subr.bf16.mxu0 %v8388_v5  ;;  %v874_v56 = vld [vmem:[%s9719_s20 + $0xf48] sm:$0xff] }
  0xe7   : > { %6833 = vmatpush1.bf16.msra.mxu1 %v8659_v4  ;;  %v8804_v61 = vcombine.high %v866_v55, %v874_v56  ;;  %v594_v62 = vld [vmem:[%s9719_s20 + $0x688] sm:$0xff]  ;;  %v8803_v4 = vcombine.low %v866_v55, %v874_v56 }
  0xe8   : > { %6834 = vmatprep.subr.bf16.mxu1 %v8644_v6  ;;  %v602_v63 = vld [vmem:[%s9719_s20 + $0x6c8] sm:$0xff] }
  0xe9   : > { %6792 = vmatpush1.bf16.msra.mxu0 %v8387_v11  ;;  %v850_v1 = vld [vmem:[%s9719_s20 + $0xe88] sm:$0xff]  ;;  %v8532_v5 = vcombine.high %v594_v62, %v602_v63  ;;  %v8531_v11 = vcombine.low %v594_v62, %v602_v63 }
  0xea   : > { %6793 = vmatprep.subr.bf16.mxu0 %v8372_v13  ;;  %v858_v2 = vld [vmem:[%s9719_s20 + $0xec8] sm:$0xff] }
  0xeb   : > { %6835 = vmatpush1.bf16.msra.mxu1 %v8643_v12  ;;  %v8788_v6 = vcombine.high %v850_v1, %v858_v2  ;;  %v578_v7 = vld [vmem:[%s9719_s20 + $0x608] sm:$0xff]  ;;  %v8787_v12 = vcombine.low %v850_v1, %v858_v2 }
  0xec   : > { %6836 = vmatprep.subr.bf16.mxu1 %v8628_v14  ;;  %v586_v8 = vld [vmem:[%s9719_s20 + $0x648] sm:$0xff] }
  0xed   : > { %6794 = vmatpush1.bf16.msra.mxu0 %v8371_v19  ;;  %v834_v9 = vld [vmem:[%s9719_s20 + $0xe08] sm:$0xff]  ;;  %v8516_v13 = vcombine.high %v578_v7, %v586_v8  ;;  %v8515_v19 = vcombine.low %v578_v7, %v586_v8 }
  0xee   : > { %6795 = vmatprep.subr.bf16.mxu0 %v8356_v21  ;;  %v842_v10 = vld [vmem:[%s9719_s20 + $0xe48] sm:$0xff] }
  0xef   : > { %6837 = vmatpush1.bf16.msra.mxu1 %v8627_v20  ;;  %v8772_v14 = vcombine.high %v834_v9, %v842_v10  ;;  %v562_v15 = vld [vmem:[%s9719_s20 + $0x588] sm:$0xff]  ;;  %v8771_v20 = vcombine.low %v834_v9, %v842_v10 }
  0xf0   : > { %6838 = vmatprep.subr.bf16.mxu1 %v8612_v23  ;;  %v570_v16 = vld [vmem:[%s9719_s20 + $0x5c8] sm:$0xff] }
  0xf1   : > { %6796 = vmatpush1.bf16.msra.mxu0 %v8355_v29  ;;  %v818_v17 = vld [vmem:[%s9719_s20 + $0xd88] sm:$0xff]  ;;  %v8500_v21 = vcombine.high %v562_v15, %v570_v16  ;;  %v8499_v29 = vcombine.low %v562_v15, %v570_v16 }
  0xf2   : > { %6797 = vmatprep.subr.bf16.mxu0 %v8340_v31  ;;  %v826_v18 = vld [vmem:[%s9719_s20 + $0xdc8] sm:$0xff] }
  0xf3   : > { %6839 = vmatpush1.bf16.msra.mxu1 %v8611_v30  ;;  %v8756_v23 = vcombine.high %v818_v17, %v826_v18  ;;  %v546_v24 = vld [vmem:[%s9719_s20 + $0x508] sm:$0xff]  ;;  %v8755_v30 = vcombine.low %v818_v17, %v826_v18 }
  0xf4   : > { %6840 = vmatprep.subr.bf16.mxu1 %v8596_v32  ;;  %v554_v25 = vld [vmem:[%s9719_s20 + $0x548] sm:$0xff] }
  0xf5   : > { %6798 = vmatpush1.bf16.msra.mxu0 %v8339_v39  ;;  %v802_v27 = vld [vmem:[%s9719_s20 + $0xd08] sm:$0xff]  ;;  %v8484_v31 = vcombine.high %v546_v24, %v554_v25  ;;  %v8483_v39 = vcombine.low %v546_v24, %v554_v25 }
  0xf6   : > { %6799 = vmatprep.subr.bf16.mxu0 %v8324_v41  ;;  %v810_v28 = vld [vmem:[%s9719_s20 + $0xd48] sm:$0xff] }
  0xf7   : > { %6841 = vmatpush1.bf16.msra.mxu1 %v8595_v40  ;;  %v8740_v32 = vcombine.high %v802_v27, %v810_v28  ;;  %v530_v33 = vld [vmem:[%s9719_s20 + $0x488] sm:$0xff]  ;;  %v8739_v40 = vcombine.low %v802_v27, %v810_v28 }
  0xf8   : > { %6842 = vmatprep.subr.bf16.mxu1 %v8580_v42  ;;  %v538_v34 = vld [vmem:[%s9719_s20 + $0x4c8] sm:$0xff] }
  0xf9   : > { %6800 = vmatpush1.bf16.msra.mxu0 %v8323_v49  ;;  %v786_v36 = vld [vmem:[%s9719_s20 + $0xc88] sm:$0xff]  ;;  %v8468_v41 = vcombine.high %v530_v33, %v538_v34  ;;  %v8467_v49 = vcombine.low %v530_v33, %v538_v34 }
  0xfa   : > { %6801 = vmatprep.subr.bf16.mxu0 %v8564_v51  ;;  %v794_v37 = vld [vmem:[%s9719_s20 + $0xcc8] sm:$0xff] }
  0xfb   : > { %6843 = vmatpush1.bf16.msra.mxu1 %v8579_v50  ;;  %v8724_v42 = vcombine.high %v786_v36, %v794_v37  ;;  %v514_v43 = vld [vmem:[%s9719_s20 + $0x408] sm:$0xff]  ;;  %v8723_v50 = vcombine.low %v786_v36, %v794_v37 }
  0xfc   : > { %6844 = vmatprep.subr.bf16.mxu1 %v8820_v52  ;;  %v522_v44 = vld [vmem:[%s9719_s20 + $0x448] sm:$0xff] }
  0xfd   : > { %6802 = vmatpush2.bf16.msra.mxu0 %v8563_v57  ;;  %v770_v46 = vld [vmem:[%s9719_s20 + $0xc08] sm:$0xff]  ;;  %v8452_v51 = vcombine.high %v514_v43, %v522_v44  ;;  %v8451_v57 = vcombine.low %v514_v43, %v522_v44 }
  0xfe   : > { %6803 = vmatprep.subr.bf16.mxu0 %v8548_v60  ;;  %v778_v47 = vld [vmem:[%s9719_s20 + $0xc48] sm:$0xff] }
  0xff   : > { %6845 = vmatpush2.bf16.msra.mxu1 %v8819_v58  ;;  %v8708_v52 = vcombine.high %v770_v46, %v778_v47  ;;  %v1010_v53 = vld [vmem:[%s9719_s20 + $0x1388] sm:$0xff]  ;;  %v8707_v58 = vcombine.low %v770_v46, %v778_v47 }
 0x100   : > { %6846 = vmatprep.subr.bf16.mxu1 %v8804_v61  ;;  %v1018_v54 = vld [vmem:[%s9719_s20 + $0x13c8] sm:$0xff] }
 0x101   : > { %6804 = vmatpush2.bf16.msra.mxu0 %v8547_v3  ;;  %v1266_v55 = vld [vmem:[%s9719_s20 + $0x1b88] sm:$0xff]  ;;  %v8948_v60 = vcombine.high %v1010_v53, %v1018_v54  ;;  %v8947_v3 = vcombine.low %v1010_v53, %v1018_v54 }
 0x102   : > { %6805 = vmatprep.subr.bf16.mxu0 %v8532_v5  ;;  %v1274_v56 = vld [vmem:[%s9719_s20 + $0x1bc8] sm:$0xff] }
 0x103   : > { %6847 = vmatpush2.bf16.msra.mxu1 %v8803_v4  ;;  %v9204_v61 = vcombine.high %v1266_v55, %v1274_v56  ;;  %v994_v62 = vld [vmem:[%s9719_s20 + $0x1308] sm:$0xff]  ;;  %v9203_v4 = vcombine.low %v1266_v55, %v1274_v56 }
 0x104   : > { %6848 = vmatprep.subr.bf16.mxu1 %v8788_v6  ;;  %v1002_v63 = vld [vmem:[%s9719_s20 + $0x1348] sm:$0xff] }
 0x105   : > { %6806 = vmatpush2.bf16.msra.mxu0 %v8531_v11  ;;  %v1250_v1 = vld [vmem:[%s9719_s20 + $0x1b08] sm:$0xff]  ;;  %v8932_v5 = vcombine.high %v994_v62, %v1002_v63  ;;  %v8931_v11 = vcombine.low %v994_v62, %v1002_v63 }
 0x106   : > { %6807 = vmatprep.subr.bf16.mxu0 %v8516_v13  ;;  %v1258_v2 = vld [vmem:[%s9719_s20 + $0x1b48] sm:$0xff] }
 0x107   : > { %6849 = vmatpush2.bf16.msra.mxu1 %v8787_v12  ;;  %v9188_v6 = vcombine.high %v1250_v1, %v1258_v2  ;;  %v978_v7 = vld [vmem:[%s9719_s20 + $0x1288] sm:$0xff]  ;;  %v9187_v12 = vcombine.low %v1250_v1, %v1258_v2 }
 0x108   : > { %6850 = vmatprep.subr.bf16.mxu1 %v8772_v14  ;;  %v986_v8 = vld [vmem:[%s9719_s20 + $0x12c8] sm:$0xff] }
 0x109   : > { %6808 = vmatpush2.bf16.msra.mxu0 %v8515_v19  ;;  %v1234_v9 = vld [vmem:[%s9719_s20 + $0x1a88] sm:$0xff]  ;;  %v8916_v13 = vcombine.high %v978_v7, %v986_v8  ;;  %v8915_v19 = vcombine.low %v978_v7, %v986_v8 }
 0x10a   : > { %6809 = vmatprep.subr.bf16.mxu0 %v8500_v21  ;;  %v1242_v10 = vld [vmem:[%s9719_s20 + $0x1ac8] sm:$0xff] }
 0x10b   : > { %6851 = vmatpush2.bf16.msra.mxu1 %v8771_v20  ;;  %v9172_v14 = vcombine.high %v1234_v9, %v1242_v10  ;;  %v962_v15 = vld [vmem:[%s9719_s20 + $0x1208] sm:$0xff]  ;;  %v9171_v20 = vcombine.low %v1234_v9, %v1242_v10 }
 0x10c   : > { %6852 = vmatprep.subr.bf16.mxu1 %v8756_v23  ;;  %v970_v16 = vld [vmem:[%s9719_s20 + $0x1248] sm:$0xff] }
 0x10d   : > { %6810 = vmatpush2.bf16.msra.mxu0 %v8499_v29  ;;  %v1218_v17 = vld [vmem:[%s9719_s20 + $0x1a08] sm:$0xff]  ;;  %v8900_v21 = vcombine.high %v962_v15, %v970_v16  ;;  %v8899_v29 = vcombine.low %v962_v15, %v970_v16 }
 0x10e   : > { %6811 = vmatprep.subr.bf16.mxu0 %v8484_v31  ;;  %v1226_v18 = vld [vmem:[%s9719_s20 + $0x1a48] sm:$0xff] }
 0x10f   : > { %6853 = vmatpush2.bf16.msra.mxu1 %v8755_v30  ;;  %v9156_v23 = vcombine.high %v1218_v17, %v1226_v18  ;;  %v946_v24 = vld [vmem:[%s9719_s20 + $0x1188] sm:$0xff]  ;;  %v9155_v30 = vcombine.low %v1218_v17, %v1226_v18 }
 0x110   : > { %6854 = vmatprep.subr.bf16.mxu1 %v8740_v32  ;;  %v954_v25 = vld [vmem:[%s9719_s20 + $0x11c8] sm:$0xff] }
 0x111   : > { %6812 = vmatpush2.bf16.msra.mxu0 %v8483_v39  ;;  %v1202_v27 = vld [vmem:[%s9719_s20 + $0x1988] sm:$0xff]  ;;  %v8884_v31 = vcombine.high %v946_v24, %v954_v25  ;;  %v8883_v39 = vcombine.low %v946_v24, %v954_v25 }
 0x112   : > { %6813 = vmatprep.subr.bf16.mxu0 %v8468_v41  ;;  %v1210_v28 = vld [vmem:[%s9719_s20 + $0x19c8] sm:$0xff] }
 0x113   : > { %6855 = vmatpush2.bf16.msra.mxu1 %v8739_v40  ;;  %v9140_v32 = vcombine.high %v1202_v27, %v1210_v28  ;;  %v930_v33 = vld [vmem:[%s9719_s20 + $0x1108] sm:$0xff]  ;;  %v9139_v40 = vcombine.low %v1202_v27, %v1210_v28 }
 0x114   : > { %6856 = vmatprep.subr.bf16.mxu1 %v8724_v42  ;;  %v938_v34 = vld [vmem:[%s9719_s20 + $0x1148] sm:$0xff] }
 0x115   : > { %6814 = vmatpush2.bf16.msra.mxu0 %v8467_v49  ;;  %v1186_v36 = vld [vmem:[%s9719_s20 + $0x1908] sm:$0xff]  ;;  %v8868_v41 = vcombine.high %v930_v33, %v938_v34  ;;  %v8867_v49 = vcombine.low %v930_v33, %v938_v34 }
 0x116   : > { %6815 = vmatprep.subr.bf16.mxu0 %v8452_v51  ;;  %v1194_v37 = vld [vmem:[%s9719_s20 + $0x1948] sm:$0xff] }
 0x117   : > { %6857 = vmatpush2.bf16.msra.mxu1 %v8723_v50  ;;  %v9124_v42 = vcombine.high %v1186_v36, %v1194_v37  ;;  %v914_v43 = vld [vmem:[%s9719_s20 + $0x1088] sm:$0xff]  ;;  %v9123_v50 = vcombine.low %v1186_v36, %v1194_v37 }
 0x118   : > { %6858 = vmatprep.subr.bf16.mxu1 %v8708_v52  ;;  %v922_v44 = vld [vmem:[%s9719_s20 + $0x10c8] sm:$0xff] }
 0x119   : > { %6816 = vmatpush2.bf16.msra.mxu0 %v8451_v57  ;;  %v1170_v46 = vld [vmem:[%s9719_s20 + $0x1888] sm:$0xff]  ;;  %v8852_v51 = vcombine.high %v914_v43, %v922_v44  ;;  %v8851_v57 = vcombine.low %v914_v43, %v922_v44 }
 0x11a   : > { %6871 = vmatprep.subr.bf16.mxu0 %v8948_v60  ;;  %v1178_v47 = vld [vmem:[%s9719_s20 + $0x18c8] sm:$0xff] }
 0x11b   : > { %6859 = vmatpush2.bf16.msra.mxu1 %v8707_v58  ;;  %v9108_v52 = vcombine.high %v1170_v46, %v1178_v47  ;;  %v898_v53 = vld [vmem:[%s9719_s20 + $0x1008] sm:$0xff]  ;;  %v9107_v58 = vcombine.low %v1170_v46, %v1178_v47 }
 0x11c   : > { %6914 = vmatprep.subr.bf16.mxu1 %v9204_v61  ;;  %6818 = vmatmul.mubr.bf16.vlgmr.msra.gmra.mxu0 %v9837_v22  ;;  %v906_v54 = vld [vmem:[%s9719_s20 + $0x1048] sm:$0xff] }
 0x11d   : > { %6872 = vmatpush1.bf16.msra.mxu0 %v8947_v3  ;;  %6903 = vmatprep.mubr.bf16.mxu0 %v9856_v35  ;;  %v1154_v55 = vld [vmem:[%s9719_s20 + $0x1808] sm:$0xff]  ;;  %v8836_v60 = vcombine.high %v898_v53, %v906_v54  ;;  %v8835_v3 = vcombine.low %v898_v53, %v906_v54 }
 0x11e   : > { %6861 = vmatmul.mubr.bf16.vlgmr.msra.gmra.mxu1 %v9846_v26  ;;  %6873 = vmatprep.subr.bf16.mxu0 %v8932_v5  ;;  %v1162_v56 = vld [vmem:[%s9719_s20 + $0x1848] sm:$0xff] }
 0x11f   : > { %6915 = vmatpush1.bf16.msra.mxu1 %v9203_v4  ;;  %6946 = vmatprep.mubr.bf16.mxu1 %v9861_v38  ;;  %v9092_v61 = vcombine.high %v1154_v55, %v1162_v56  ;;  %v1138_v62 = vld [vmem:[%s9719_s20 + $0x1788] sm:$0xff]  ;;  %v9091_v4 = vcombine.low %v1154_v55, %v1162_v56 }
 0x120   : > { %6916 = vmatprep.subr.bf16.mxu1 %v9188_v6  ;;  %v1146_v63 = vld [vmem:[%s9719_s20 + $0x17c8] sm:$0xff] }
 0x121   : > { %6874 = vmatpush1.bf16.msra.mxu0 %v8931_v11  ;;  %v1394_v1 = vld [vmem:[%s9719_s20 + $0x1f88] sm:$0xff]  ;;  %v9076_v5 = vcombine.high %v1138_v62, %v1146_v63  ;;  %v9075_v11 = vcombine.low %v1138_v62, %v1146_v63 }
 0x122   : > { %6875 = vmatprep.subr.bf16.mxu0 %v8916_v13  ;;  %v1402_v2 = vld [vmem:[%s9719_s20 + $0x1fc8] sm:$0xff] }
 0x123   : > { %6917 = vmatpush1.bf16.msra.mxu1 %v9187_v12  ;;  %v9332_v6 = vcombine.high %v1394_v1, %v1402_v2  ;;  %v1122_v7 = vld [vmem:[%s9719_s20 + $0x1708] sm:$0xff]  ;;  %v9331_v12 = vcombine.low %v1394_v1, %v1402_v2 }
 0x124   : > { %6918 = vmatprep.subr.bf16.mxu1 %v9172_v14  ;;  %v1130_v8 = vld [vmem:[%s9719_s20 + $0x1748] sm:$0xff] }
 0x125   : > { %6876 = vmatpush1.bf16.msra.mxu0 %v8915_v19  ;;  %v1378_v9 = vld [vmem:[%s9719_s20 + $0x1f08] sm:$0xff]  ;;  %v9060_v13 = vcombine.high %v1122_v7, %v1130_v8  ;;  %v9059_v19 = vcombine.low %v1122_v7, %v1130_v8 }
 0x126   : > { %6877 = vmatprep.subr.bf16.mxu0 %v8900_v21  ;;  %v1386_v10 = vld [vmem:[%s9719_s20 + $0x1f48] sm:$0xff] }
 0x127   : > { %6919 = vmatpush1.bf16.msra.mxu1 %v9171_v20  ;;  %v9316_v14 = vcombine.high %v1378_v9, %v1386_v10  ;;  %v1106_v15 = vld [vmem:[%s9719_s20 + $0x1688] sm:$0xff]  ;;  %v9315_v20 = vcombine.low %v1378_v9, %v1386_v10  ;;  %v499_v9 = vld [vmem:[%s9719_s20 + $0x390] sm:$0xff] }
 0x128   : > { %6920 = vmatprep.subr.bf16.mxu1 %v9156_v23  ;;  %v1114_v16 = vld [vmem:[%s9719_s20 + $0x16c8] sm:$0xff]  ;;  %v507_v10 = vld [vmem:[%s9719_s20 + $0x3d0] sm:$0xff] }
 0x129   : > { %6878 = vmatpush1.bf16.msra.mxu0 %v8899_v29  ;;  %v1362_v17 = vld [vmem:[%s9719_s20 + $0x1e88] sm:$0xff]  ;;  %v9044_v21 = vcombine.high %v1106_v15, %v1114_v16  ;;  %v9043_v29 = vcombine.low %v1106_v15, %v1114_v16  ;;  %v10080_v16 = vld [vmem:[%s9727_s28] sm:$0xff] }
 0x12a   : > { %6879 = vmatprep.subr.bf16.mxu0 %v8884_v31  ;;  %v1370_v18 = vld [vmem:[%s9719_s20 + $0x1ec8] sm:$0xff] }
 0x12b   : > { %6921 = vmatpush1.bf16.msra.mxu1 %v9155_v30  ;;  %v9300_v23 = vcombine.high %v1362_v17, %v1370_v18  ;;  %v1090_v24 = vld [vmem:[%s9719_s20 + $0x1608] sm:$0xff]  ;;  %v9299_v30 = vcombine.low %v1362_v17, %v1370_v18  ;;  %v8438_v17 = vcombine.high %v499_v9, %v507_v10 }
 0x12c   : > { %6922 = vmatprep.subr.bf16.mxu1 %v9140_v32  ;;  %v1098_v25 = vld [vmem:[%s9719_s20 + $0x1648] sm:$0xff] }
 0x12d   : > { %6880 = vmatpush1.bf16.msra.mxu0 %v8883_v39  ;;  %v1346_v27 = vld [vmem:[%s9719_s20 + $0x1e08] sm:$0xff]  ;;  %v9028_v31 = vcombine.high %v1090_v24, %v1098_v25  ;;  %v9027_v39 = vcombine.low %v1090_v24, %v1098_v25  ;;  %v747_v24 = vld [vmem:[%s9719_s20 + $0xb50] sm:$0xff] }
 0x12e   : > { %6881 = vmatprep.subr.bf16.mxu0 %v8868_v41  ;;  %v1354_v28 = vld [vmem:[%s9719_s20 + $0x1e48] sm:$0xff] }
 0x12f   : > { %6923 = vmatpush1.bf16.msra.mxu1 %v9139_v40  ;;  %v9284_v32 = vcombine.high %v1346_v27, %v1354_v28  ;;  %v1074_v33 = vld [vmem:[%s9719_s20 + $0x1588] sm:$0xff]  ;;  %v9283_v40 = vcombine.low %v1346_v27, %v1354_v28  ;;  %v8437_v27 = vcombine.low %v499_v9, %v507_v10  ;;  %v699_v9 = vld [vmem:[%s9719_s20 + $0x9d0] sm:$0xff] }
 0x130   : > { %6924 = vmatprep.subr.bf16.mxu1 %v9124_v42  ;;  %v1082_v34 = vld [vmem:[%s9719_s20 + $0x15c8] sm:$0xff] }
 0x131   : > { %6882 = vmatpush1.bf16.msra.mxu0 %v8867_v49  ;;  %v1330_v36 = vld [vmem:[%s9719_s20 + $0x1d88] sm:$0xff]  ;;  %v9012_v41 = vcombine.high %v1074_v33, %v1082_v34  ;;  %v9011_v49 = vcombine.low %v1074_v33, %v1082_v34  ;;  %v475_v33 = vld [vmem:[%s9719_s20 + $0x2d0] sm:$0xff] }
 0x132   : > { %6883 = vmatprep.subr.bf16.mxu0 %v8852_v51  ;;  %v1338_v37 = vld [vmem:[%s9719_s20 + $0x1dc8] sm:$0xff] }
 0x133   : > { %6925 = vmatpush1.bf16.msra.mxu1 %v9123_v50  ;;  %v9268_v42 = vcombine.high %v1330_v36, %v1338_v37  ;;  %v1058_v43 = vld [vmem:[%s9719_s20 + $0x1508] sm:$0xff]  ;;  %v9267_v50 = vcombine.low %v1330_v36, %v1338_v37  ;;  %v723_v36 = vld [vmem:[%s9719_s20 + $0xa90] sm:$0xff] }
 0x134   : > { %6926 = vmatprep.subr.bf16.mxu1 %v9108_v52  ;;  %v1066_v44 = vld [vmem:[%s9719_s20 + $0x1548] sm:$0xff]  ;;  %v731_v37 = vld [vmem:[%s9719_s20 + $0xad0] sm:$0xff] }
 0x135   : > { %6884 = vmatpush1.bf16.msra.mxu0 %v8851_v57  ;;  %v1314_v46 = vld [vmem:[%s9719_s20 + $0x1d08] sm:$0xff]  ;;  %v8996_v51 = vcombine.high %v1058_v43, %v1066_v44  ;;  %v8995_v57 = vcombine.low %v1058_v43, %v1066_v44 }
 0x136   : > { %6885 = vmatprep.subr.bf16.mxu0 %v8836_v60  ;;  %v1322_v47 = vld [vmem:[%s9719_s20 + $0x1d48] sm:$0xff] }
 0x137   : > { %6927 = vmatpush1.bf16.msra.mxu1 %v9107_v58  ;;  %v9252_v52 = vcombine.high %v1314_v46, %v1322_v47  ;;  %v1042_v53 = vld [vmem:[%s9719_s20 + $0x1488] sm:$0xff]  ;;  %v1413_v58 = vlaneseq  ;;  %v9251_v60 = vcombine.low %v1314_v46, %v1322_v47 }
 0x138   : > { %6928 = vmatprep.subr.bf16.mxu1 %v9092_v61  ;;  %v1050_v54 = vld [vmem:[%s9719_s20 + $0x14c8] sm:$0xff] }
 0x139   : > { %6886 = vmatpush1.bf16.msra.mxu0 %v8835_v3  ;;  %v1298_v55 = vld [vmem:[%s9719_s20 + $0x1c88] sm:$0xff]  ;;  %v8980_v61 = vcombine.high %v1042_v53, %v1050_v54 }
 0x13a   : > { %6887 = vmatprep.subr.bf16.mxu0 %v9076_v5  ;;  %v1306_v56 = vld [vmem:[%s9719_s20 + $0x1cc8] sm:$0xff]  ;;  %v10070_v5 = vshrl.u32 %v1413_v58, 7 }
 0x13b   : > { %6929 = vmatpush1.bf16.msra.mxu1 %v9091_v4  ;;  %v9236_v62 = vcombine.high %v1298_v55, %v1306_v56  ;;  %v1026_v63 = vld [vmem:[%s9719_s20 + $0x1408] sm:$0xff]  ;;  %v8979_v4 = vcombine.low %v1042_v53, %v1050_v54  ;;  %v707_v54 = vld [vmem:[%s9719_s20 + $0xa10] sm:$0xff] }
 0x13c   : > { %6930 = vmatprep.subr.bf16.mxu1 %v9332_v6  ;;  %v1034_v1 = vld [vmem:[%s9719_s20 + $0x1448] sm:$0xff]  ;;  %v9235_v6 = vcombine.low %v1298_v55, %v1306_v56  ;;  %v715_v55 = vld [vmem:[%s9719_s20 + $0xa50] sm:$0xff] }
 0x13d   : > { %6888 = vmatpush2.bf16.msra.mxu0 %v9075_v11  ;;  %v1282_v2 = vld [vmem:[%s9719_s20 + $0x1c08] sm:$0xff]  ;;  %v8964_v7 = vcombine.high %v1026_v63, %v1034_v1  ;;  %v755_v11 = vld [vmem:[%s9719_s20 + $0xb90] sm:$0xff] }
 0x13e   : > { %6889 = vmatprep.subr.bf16.mxu0 %v9060_v13  ;;  %v1290_v3 = vld [vmem:[%s9719_s20 + $0x1c48] sm:$0xff]  ;;  %v8963_v13 = vcombine.low %v1026_v63, %v1034_v1 }
 0x13f   : > { %6931 = vmatpush2.bf16.msra.mxu1 %v9331_v12  ;;  %v9220_v8 = vcombine.high %v1282_v2, %v1290_v3  ;;  %v763_v12 = vld [vmem:[%s9719_s20 + $0xbd0] sm:$0xff]  ;;  %v9219_v15 = vcombine.low %v1282_v2, %v1290_v3  ;;  %v8646_v3 = vcombine.high %v707_v54, %v715_v55 }
 0x140   : > { %6932 = vmatprep.subr.bf16.mxu1 %v9316_v14  ;;  %v10077_v14 = vsub.s32 0, %v10070_v5  ;;  %v8694_v18 = vcombine.high %v755_v11, %v763_v12  ;;  %v8693_v28 = vcombine.low %v755_v11, %v763_v12  ;;  %v8645_v12 = vcombine.low %v707_v54, %v715_v55 }
 0x141   : > { %6890 = vmatpush2.bf16.msra.mxu0 %v9059_v19  ;;  %v10083_v19 = vsub.s32 1, %v10070_v5 }
 0x142   : > { %6891 = vmatprep.subr.bf16.mxu0 %v9044_v21  ;;  %v491_v21 = vld [vmem:[%s9719_s20 + $0x350] sm:$0xff]  ;;  %v1416_v25 = vrot.slane %v10080_v16, %v10077_v14 }
 0x143   : > { %6933 = vmatpush2.bf16.msra.mxu1 %v9315_v20  ;;  %v483_v20 = vld [vmem:[%s9719_s20 + $0x310] sm:$0xff] }
 0x144   : > { %6934 = vmatprep.subr.bf16.mxu1 %v9300_v23  ;;  %v739_v23 = vld [vmem:[%s9719_s20 + $0xb10] sm:$0xff] }
 0x145   : > { %6892 = vmatpush2.bf16.msra.mxu0 %v9043_v29  ;;  %v8422_v29 = vcombine.high %v483_v20, %v491_v21  ;;  %v8677_v43 = vcombine.low %v739_v23, %v747_v24 }
 0x146   : > { %6893 = vmatprep.subr.bf16.mxu0 %v9028_v31  ;;  %v8678_v31 = vcombine.high %v739_v23, %v747_v24 }
 0x147   : > { %6935 = vmatpush2.bf16.msra.mxu1 %v9299_v30  ;;  %v1420_v30 = vrot.slane %v10080_v16, %v10083_v19 }
 0x148   : > { %6936 = vmatprep.subr.bf16.mxu1 %v9284_v32  ;;  %v467_v32 = vld [vmem:[%s9719_s20 + $0x290] sm:$0xff] }
 0x149   : > { %6894 = vmatpush2.bf16.msra.mxu0 %v9027_v39  ;;  %v8406_v44 = vcombine.high %v467_v32, %v475_v33 }
 0x14a   : > { %6895 = vmatprep.subr.bf16.mxu0 %v9012_v41  ;;  %v8421_v41 = vcombine.low %v483_v20, %v491_v21  ;;  %v675_v20 = vld [vmem:[%s9719_s20 + $0x910] sm:$0xff] }
 0x14b   : > { %6937 = vmatpush2.bf16.msra.mxu1 %v9283_v40  ;;  %v683_v21 = vld [vmem:[%s9719_s20 + $0x950] sm:$0xff] }
 0x14c   : > { %6938 = vmatprep.subr.bf16.mxu1 %v9268_v42 }
 0x14d   : > { %6896 = vmatpush2.bf16.msra.mxu0 %v9011_v49 }
 0x14e   : > { %6897 = vmatprep.subr.bf16.mxu0 %v8996_v51  ;;  %v451_v51 = vld [vmem:[%s9719_s20 + $0x210] sm:$0xff] }
 0x14f   : > { %6939 = vmatpush2.bf16.msra.mxu1 %v9267_v50  ;;  %v8662_v50 = vcombine.high %v723_v36, %v731_v37 }
 0x150   : > { %6940 = vmatprep.subr.bf16.mxu1 %v9252_v52  ;;  %v459_v52 = vld [vmem:[%s9719_s20 + $0x250] sm:$0xff] }
 0x151   : > { %6898 = vmatpush2.bf16.msra.mxu0 %v8995_v57  ;;  %v8390_v63 = vcombine.high %v451_v51, %v459_v52  ;;  %v8389_v11 = vcombine.low %v451_v51, %v459_v52  ;;  %v883_v51 = vld [vmem:[%s9719_s20 + $0xf90] sm:$0xff] }
 0x152   : > { %6899 = vmatprep.subr.bf16.mxu0 %v8980_v61  ;;  %v891_v52 = vld [vmem:[%s9719_s20 + $0xfd0] sm:$0xff] }
 0x153   : > { %6941 = vmatpush2.bf16.msra.mxu1 %v9251_v60  ;;  %v8405_v60 = vcombine.low %v467_v32, %v475_v33  ;;  %v8613_v33 = vcombine.low %v675_v20, %v683_v21 }
 0x154   : > { %6942 = vmatprep.subr.bf16.mxu1 %v9236_v62  ;;  %v8661_v62 = vcombine.low %v723_v36, %v731_v37  ;;  %v387_v37 = vld [vmem:[%s9719_s20 + $0x10] sm:$0xff] }
 0x155   : > { %6900 = vmatpush2.bf16.msra.mxu0 %v8979_v4  ;;  %v435_v4 = vld [vmem:[%s9719_s20 + $0x190] sm:$0xff] }
 0x156   : > { %6901 = vmatprep.subr.bf16.mxu0 %v8964_v7 }
 0x157   : > { %6943 = vmatpush2.bf16.msra.mxu1 %v9235_v6  ;;  %v443_v6 = vld [vmem:[%s9719_s20 + $0x1d0] sm:$0xff] }
 0x158   : > { %6944 = vmatprep.subr.bf16.mxu1 %v9220_v8  ;;  %v691_v8 = vld [vmem:[%s9719_s20 + $0x990] sm:$0xff]  ;;  %v8373_v23 = vcombine.low %v435_v4, %v443_v6 }
 0x159   : > { %6902 = vmatpush2.bf16.msra.mxu0 %v8963_v13  ;;  %v8374_v13 = vcombine.high %v435_v4, %v443_v6  ;;  %v8629_v24 = vcombine.low %v691_v8, %v699_v9  ;;  %v595_v6 = vld [vmem:[%s9719_s20 + $0x690] sm:$0xff] }
 0x15a   : > { %6957 = vmatprep.subr.bf16.mxu0 %v8438_v17  ;;  %v6647_v34 = vpop.f32.mrf.mxu0  ;;  %v419_v17 = vld [vmem:[%s9719_s20 + $0x110] sm:$0xff] }
 0x15b   : > { %6945 = vmatpush2.bf16.msra.mxu1 %v9219_v15  ;;  %v6648_v39 = vadd.f32 %v6647_v34, %v1416_v25  ;;  %v8630_v15 = vcombine.high %v691_v8, %v699_v9  ;;  %v851_v8 = vld [vmem:[%s9719_s20 + $0xe90] sm:$0xff] }
 0x15c   : > { %7000 = vmatprep.subr.bf16.mxu1 %v8694_v18  ;;  %6904 = vmatmul.mubr.bf16.vlgmr.msra.gmra.mxu0 %v9936_v45  ;;  %v6690_v40 = vpop.f32.mrf.mxu1  ;;  %v6649_v42 = vpop.f32.mrf.mxu0  ;;  %v427_v18 = vld [vmem:[%s9719_s20 + $0x150] sm:$0xff] }
 0x15d   : > { %6958 = vmatpush1.bf16.msra.mxu0 %v8437_v27  ;;  %v10099_v46 = vadd.f32 %v6690_v40, %v6648_v39  ;;  %v6650_v47 = vadd.f32 %v6649_v42, %v1420_v30  ;;  %6989 = vmatprep.mubr.bf16.mxu0 %v9772_v59  ;;  %v8614_v27 = vcombine.high %v675_v20, %v683_v21  ;;  %v395_v39 = vld [vmem:[%s9719_s20 + $0x50] sm:$0xff] }
 0x15e   : > { %6947 = vmatmul.mubr.bf16.vlgmr.msra.gmra.mxu1 %v9940_v48  ;;  %6959 = vmatprep.subr.bf16.mxu0 %v8422_v29  ;;  %v6692_v49 = vpop.f32.mrf.mxu1  ;;  %v6651_v53 = vpop.f32.mrf.mxu0  ;;  %v411_v29 = vld [vmem:[%s9719_s20 + $0xd0] sm:$0xff]  ;;  %v8357_v32 = vcombine.low %v419_v17, %v427_v18 }
 0x15f   : > { %7001 = vmatpush1.bf16.msra.mxu1 %v8693_v28  ;;  %7032 = vmatprep.mubr.bf16.mxu1 %v9782_v0  ;;  %v10107_v56 = vadd.f32 %v6692_v49, %v6650_v47  ;;  %v6652_v57 = vadd.f32 %v6651_v53, %v1416_v25  ;;  %v8358_v25 = vcombine.high %v419_v17, %v427_v18  ;;  %v403_v28 = vld [vmem:[%s9719_s20 + $0x90] sm:$0xff] }
 0x160   : > { %7002 = vmatprep.subr.bf16.mxu1 %v8678_v31  ;;  %v6694_v58 = vpop.f32.mrf.mxu1  ;;  %v6653_v61 = vpop.f32.mrf.mxu0  ;;  %v667_v31 = vld [vmem:[%s9719_s20 + $0x8d0] sm:$0xff]  ;;  %v8342_v34 = vcombine.high %v403_v28, %v411_v29  ;;  %v8341_v42 = vcombine.low %v403_v28, %v411_v29  ;;  %v8325_v53 = vcombine.low %v387_v37, %v395_v39 }
 0x161   : > { %6960 = vmatpush1.bf16.msra.mxu0 %v8421_v41  ;;  %v10109_v1 = vadd.f32 %v6694_v58, %v6652_v57  ;;  %v6654_v2 = vadd.f32 %v6653_v61, %v1420_v30  ;;  %v659_v30 = vld [vmem:[%s9719_s20 + $0x890] sm:$0xff]  ;;  %v8822_v57 = vcombine.high %v883_v51, %v891_v52 }
 0x162   : > { %6961 = vmatprep.subr.bf16.mxu0 %v8406_v44  ;;  %v6696_v7 = vpop.f32.mrf.mxu1  ;;  %v8598_v36 = vcombine.high %v659_v30, %v667_v31  ;;  %v643_v40 = vld [vmem:[%s9719_s20 + $0x810] sm:$0xff]  ;;  %v8326_v44 = vcombine.high %v387_v37, %v395_v39 }
 0x163   : > { %7003 = vmatpush1.bf16.msra.mxu1 %v8677_v43  ;;  %v10115_v10 = vadd.f32 %v6696_v7, %v6654_v2  ;;  %v651_v41 = vld [vmem:[%s9719_s20 + $0x850] sm:$0xff]  ;;  %v8597_v43 = vcombine.low %v659_v30, %v667_v31  ;;  %v8821_v2 = vcombine.low %v883_v51, %v891_v52 }
 0x164   : > { %7004 = vmatprep.subr.bf16.mxu1 %v8662_v50  ;;  %v8582_v47 = vcombine.high %v643_v40, %v651_v41  ;;  %v627_v49 = vld [vmem:[%s9719_s20 + $0x790] sm:$0xff]  ;;  %v8581_v54 = vcombine.low %v643_v40, %v651_v41 }
 0x165   : > { %6962 = vmatpush1.bf16.msra.mxu0 %v8405_v60  ;;  %v635_v50 = vld [vmem:[%s9719_s20 + $0x7d0] sm:$0xff] }
 0x166   : > { %6963 = vmatprep.subr.bf16.mxu0 %v8390_v63  ;;  %v8566_v55 = vcombine.high %v627_v49, %v635_v50  ;;  %v611_v58 = vld [vmem:[%s9719_s20 + $0x710] sm:$0xff]  ;;  %v8565_v63 = vcombine.low %v627_v49, %v635_v50 }
 0x167   : > { %7005 = vmatpush1.bf16.msra.mxu1 %v8661_v62  ;;  %v619_v60 = vld [vmem:[%s9719_s20 + $0x750] sm:$0xff] }
 0x168   : > { %7006 = vmatprep.subr.bf16.mxu1 %v8646_v3  ;;  %v867_v61 = vld [vmem:[%s9719_s20 + $0xf10] sm:$0xff]  ;;  %v8550_v3 = vcombine.high %v611_v58, %v619_v60 }
 0x169   : > { %6964 = vmatpush1.bf16.msra.mxu0 %v8389_v11  ;;  %v875_v62 = vld [vmem:[%s9719_s20 + $0xf50] sm:$0xff]  ;;  %v8549_v11 = vcombine.low %v611_v58, %v619_v60 }
 0x16a   : > { %6965 = vmatprep.subr.bf16.mxu0 %v8374_v13  ;;  %v8806_v4 = vcombine.high %v867_v61, %v875_v62  ;;  %v603_v7 = vld [vmem:[%s9719_s20 + $0x6d0] sm:$0xff] }
 0x16b   : > { %7007 = vmatpush1.bf16.msra.mxu1 %v8645_v12  ;;  %v859_v9 = vld [vmem:[%s9719_s20 + $0xed0] sm:$0xff]  ;;  %v8805_v12 = vcombine.low %v867_v61, %v875_v62  ;;  %v8534_v13 = vcombine.high %v595_v6, %v603_v7 }
 0x16c   : > { %7008 = vmatprep.subr.bf16.mxu1 %v8630_v15  ;;  %v8790_v15 = vcombine.high %v851_v8, %v859_v9  ;;  %v579_v17 = vld [vmem:[%s9719_s20 + $0x610] sm:$0xff] }
 0x16d   : > { %6966 = vmatpush1.bf16.msra.mxu0 %v8373_v23  ;;  %v587_v18 = vld [vmem:[%s9719_s20 + $0x650] sm:$0xff]  ;;  %v8533_v23 = vcombine.low %v595_v6, %v603_v7 }
 0x16e   : > { %6967 = vmatprep.subr.bf16.mxu0 %v8358_v25  ;;  %v835_v20 = vld [vmem:[%s9719_s20 + $0xe10] sm:$0xff]  ;;  %v8518_v25 = vcombine.high %v579_v17, %v587_v18 }
 0x16f   : > { %7009 = vmatpush1.bf16.msra.mxu1 %v8629_v24  ;;  %v843_v21 = vld [vmem:[%s9719_s20 + $0xe50] sm:$0xff]  ;;  %v8789_v24 = vcombine.low %v851_v8, %v859_v9 }
 0x170   : > { %7010 = vmatprep.subr.bf16.mxu1 %v8614_v27  ;;  %v8774_v27 = vcombine.high %v835_v20, %v843_v21  ;;  %v563_v28 = vld [vmem:[%s9719_s20 + $0x590] sm:$0xff] }
 0x171   : > { %6968 = vmatpush1.bf16.msra.mxu0 %v8357_v32  ;;  %v571_v29 = vld [vmem:[%s9719_s20 + $0x5d0] sm:$0xff]  ;;  %v8517_v32 = vcombine.low %v579_v17, %v587_v18 }
 0x172   : > { %6969 = vmatprep.subr.bf16.mxu0 %v8342_v34  ;;  %v819_v30 = vld [vmem:[%s9719_s20 + $0xd90] sm:$0xff]  ;;  %v8502_v34 = vcombine.high %v563_v28, %v571_v29 }
 0x173   : > { %7011 = vmatpush1.bf16.msra.mxu1 %v8613_v33  ;;  %v827_v31 = vld [vmem:[%s9719_s20 + $0xdd0] sm:$0xff]  ;;  %v8773_v33 = vcombine.low %v835_v20, %v843_v21 }
 0x174   : > { %7012 = vmatprep.subr.bf16.mxu1 %v8598_v36  ;;  %v8758_v36 = vcombine.high %v819_v30, %v827_v31  ;;  %v547_v37 = vld [vmem:[%s9719_s20 + $0x510] sm:$0xff] }
 0x175   : > { %6970 = vmatpush1.bf16.msra.mxu0 %v8341_v42  ;;  %v555_v39 = vld [vmem:[%s9719_s20 + $0x550] sm:$0xff]  ;;  %v8501_v42 = vcombine.low %v563_v28, %v571_v29 }
 0x176   : > { %6971 = vmatprep.subr.bf16.mxu0 %v8326_v44  ;;  %v803_v40 = vld [vmem:[%s9719_s20 + $0xd10] sm:$0xff]  ;;  %v8486_v44 = vcombine.high %v547_v37, %v555_v39 }
 0x177   : > { %7013 = vmatpush1.bf16.msra.mxu1 %v8597_v43  ;;  %v811_v41 = vld [vmem:[%s9719_s20 + $0xd50] sm:$0xff]  ;;  %v8757_v43 = vcombine.low %v819_v30, %v827_v31 }
 0x178   : > { %7014 = vmatprep.subr.bf16.mxu1 %v8582_v47  ;;  %v8742_v47 = vcombine.high %v803_v40, %v811_v41  ;;  %v531_v49 = vld [vmem:[%s9719_s20 + $0x490] sm:$0xff] }
 0x179   : > { %6972 = vmatpush1.bf16.msra.mxu0 %v8325_v53  ;;  %v539_v50 = vld [vmem:[%s9719_s20 + $0x4d0] sm:$0xff]  ;;  %v8485_v53 = vcombine.low %v547_v37, %v555_v39 }
 0x17a   : > { %6973 = vmatprep.subr.bf16.mxu0 %v8566_v55  ;;  %v787_v51 = vld [vmem:[%s9719_s20 + $0xc90] sm:$0xff]  ;;  %v8470_v55 = vcombine.high %v531_v49, %v539_v50 }
 0x17b   : > { %7015 = vmatpush1.bf16.msra.mxu1 %v8581_v54  ;;  %v795_v52 = vld [vmem:[%s9719_s20 + $0xcd0] sm:$0xff]  ;;  %v8741_v54 = vcombine.low %v803_v40, %v811_v41 }
 0x17c   : > { %7016 = vmatprep.subr.bf16.mxu1 %v8822_v57  ;;  %v8726_v57 = vcombine.high %v787_v51, %v795_v52  ;;  %v515_v58 = vld [vmem:[%s9719_s20 + $0x410] sm:$0xff] }
 0x17d   : > { %6974 = vmatpush2.bf16.msra.mxu0 %v8565_v63  ;;  %v523_v60 = vld [vmem:[%s9719_s20 + $0x450] sm:$0xff]  ;;  %v8469_v63 = vcombine.low %v531_v49, %v539_v50 }
 0x17e   : > { %6975 = vmatprep.subr.bf16.mxu0 %v8550_v3  ;;  %v771_v61 = vld [vmem:[%s9719_s20 + $0xc10] sm:$0xff]  ;;  %v8454_v3 = vcombine.high %v515_v58, %v523_v60 }
 0x17f   : > { %7017 = vmatpush2.bf16.msra.mxu1 %v8821_v2  ;;  %v779_v62 = vld [vmem:[%s9719_s20 + $0xc50] sm:$0xff]  ;;  %v8725_v2 = vcombine.low %v787_v51, %v795_v52 }
 0x180   : > { %7018 = vmatprep.subr.bf16.mxu1 %v8806_v4  ;;  %v8710_v4 = vcombine.high %v771_v61, %v779_v62  ;;  %v1011_v6 = vld [vmem:[%s9719_s20 + $0x1390] sm:$0xff] }
 0x181   : > { %6976 = vmatpush2.bf16.msra.mxu0 %v8549_v11  ;;  %v1019_v7 = vld [vmem:[%s9719_s20 + $0x13d0] sm:$0xff]  ;;  %v8453_v11 = vcombine.low %v515_v58, %v523_v60 }
 0x182   : > { %6977 = vmatprep.subr.bf16.mxu0 %v8534_v13  ;;  %v1267_v8 = vld [vmem:[%s9719_s20 + $0x1b90] sm:$0xff]  ;;  %v8950_v13 = vcombine.high %v1011_v6, %v1019_v7 }
 0x183   : > { %7019 = vmatpush2.bf16.msra.mxu1 %v8805_v12  ;;  %v1275_v9 = vld [vmem:[%s9719_s20 + $0x1bd0] sm:$0xff]  ;;  %v8709_v12 = vcombine.low %v771_v61, %v779_v62 }
 0x184   : > { %7020 = vmatprep.subr.bf16.mxu1 %v8790_v15  ;;  %v9206_v15 = vcombine.high %v1267_v8, %v1275_v9  ;;  %v995_v17 = vld [vmem:[%s9719_s20 + $0x1310] sm:$0xff] }
 0x185   : > { %6978 = vmatpush2.bf16.msra.mxu0 %v8533_v23  ;;  %v1003_v18 = vld [vmem:[%s9719_s20 + $0x1350] sm:$0xff]  ;;  %v8949_v23 = vcombine.low %v1011_v6, %v1019_v7 }
 0x186   : > { %6979 = vmatprep.subr.bf16.mxu0 %v8518_v25  ;;  %v1251_v20 = vld [vmem:[%s9719_s20 + $0x1b10] sm:$0xff]  ;;  %v8934_v25 = vcombine.high %v995_v17, %v1003_v18 }
 0x187   : > { %7021 = vmatpush2.bf16.msra.mxu1 %v8789_v24  ;;  %v1259_v21 = vld [vmem:[%s9719_s20 + $0x1b50] sm:$0xff]  ;;  %v9205_v24 = vcombine.low %v1267_v8, %v1275_v9 }
 0x188   : > { %7022 = vmatprep.subr.bf16.mxu1 %v8774_v27  ;;  %v9190_v27 = vcombine.high %v1251_v20, %v1259_v21  ;;  %v979_v28 = vld [vmem:[%s9719_s20 + $0x1290] sm:$0xff]  ;;  %v9189_v39 = vcombine.low %v1251_v20, %v1259_v21 }
 0x189   : > { %6980 = vmatpush2.bf16.msra.mxu0 %v8517_v32  ;;  %v987_v29 = vld [vmem:[%s9719_s20 + $0x12d0] sm:$0xff] }
 0x18a   : > { %6981 = vmatprep.subr.bf16.mxu0 %v8502_v34  ;;  %v1235_v31 = vld [vmem:[%s9719_s20 + $0x1a90] sm:$0xff]  ;;  %v8918_v40 = vcombine.high %v979_v28, %v987_v29 }
 0x18b   : > { %7023 = vmatpush2.bf16.msra.mxu1 %v8773_v33  ;;  %v1243_v32 = vld [vmem:[%s9719_s20 + $0x1ad0] sm:$0xff] }
 0x18c   : > { %7024 = vmatprep.subr.bf16.mxu1 %v8758_v36  ;;  %v8933_v36 = vcombine.low %v995_v17, %v1003_v18  ;;  %v1219_v50 = vld [vmem:[%s9719_s20 + $0x1a10] sm:$0xff] }
 0x18d   : > { %6982 = vmatpush2.bf16.msra.mxu0 %v8501_v42  ;;  %v1227_v51 = vld [vmem:[%s9719_s20 + $0x1a50] sm:$0xff] }
 0x18e   : > { %6983 = vmatprep.subr.bf16.mxu0 %v8486_v44  ;;  %v9174_v44 = vcombine.high %v1235_v31, %v1243_v32  ;;  %v9158_v62 = vcombine.high %v1219_v50, %v1227_v51  ;;  %v10190_v8 = vld [vmem:[%s9733_s13] sm:$0xff] }
 0x18f   : > { %7025 = vmatpush2.bf16.msra.mxu1 %v8757_v43  ;;  %v931_v20 = vld [vmem:[%s9719_s20 + $0x1110] sm:$0xff] }
 0x190   : > { %7026 = vmatprep.subr.bf16.mxu1 %v8742_v47  ;;  %v971_v47 = vld [vmem:[%s9719_s20 + $0x1250] sm:$0xff] }
 0x191   : > { %6984 = vmatpush2.bf16.msra.mxu0 %v8485_v53  ;;  %v939_v21 = vld [vmem:[%s9719_s20 + $0x1150] sm:$0xff] }
 0x192   : > { %6985 = vmatprep.subr.bf16.mxu0 %v8470_v55 }
 0x193   : > { %7027 = vmatpush2.bf16.msra.mxu1 %v8741_v54 }
 0x194   : > { %7028 = vmatprep.subr.bf16.mxu1 %v8726_v57  ;;  %v9173_v57 = vcombine.low %v1235_v31, %v1243_v32  ;;  %v8870_v32 = vcombine.high %v931_v20, %v939_v21 }
 0x195   : > { %6986 = vmatpush2.bf16.msra.mxu0 %v8469_v63  ;;  %v947_v63 = vld [vmem:[%s9719_s20 + $0x1190] sm:$0xff] }
 0x196   : > { %6987 = vmatprep.subr.bf16.mxu0 %v8454_v3 }
 0x197   : > { %7029 = vmatpush2.bf16.msra.mxu1 %v8725_v2  ;;  %v955_v2 = vld [vmem:[%s9719_s20 + $0x11d0] sm:$0xff] }
 0x198   : > { %7030 = vmatprep.subr.bf16.mxu1 %v8710_v4  ;;  %v1211_v4 = vld [vmem:[%s9719_s20 + $0x19d0] sm:$0xff] }
 0x199   : > { %6988 = vmatpush2.bf16.msra.mxu0 %v8453_v11 }
 0x19a   : > { %7043 = vmatprep.subr.bf16.mxu0 %v8950_v13 }
 0x19b   : > { %7031 = vmatpush2.bf16.msra.mxu1 %v8709_v12  ;;  %v8886_v12 = vcombine.high %v947_v63, %v955_v2 }
 0x19c   : > { %7086 = vmatprep.subr.bf16.mxu1 %v9206_v15  ;;  %v6733_v30 = vpop.f32.mrf.mxu0  ;;  %6990 = vmatmul.mubr.bf16.vlgmr.msra.gmra.mxu0 %v9837_v22 }
 0x19d   : > { %v6734_v33 = vadd.f32 %v6733_v30, %v10099_v46  ;;  %7044 = vmatpush1.bf16.msra.mxu0 %v8949_v23  ;;  %v963_v46 = vld [vmem:[%s9719_s20 + $0x1210] sm:$0xff]  ;;  %7075 = vmatprep.mubr.bf16.mxu0 %v9856_v35  ;;  %v8060_v23 = vrot.slane %v10190_v8, %v10077_v14  ;;  %v8885_v30 = vcombine.low %v947_v63, %v955_v2 }
 0x19e   : > { %v6776_v34 = vpop.f32.mrf.mxu1  ;;  %7033 = vmatmul.mubr.bf16.vlgmr.msra.gmra.mxu1 %v9846_v26  ;;  %v6735_v37 = vpop.f32.mrf.mxu0  ;;  %7045 = vmatprep.subr.bf16.mxu0 %v8934_v25  ;;  %v8902_v58 = vcombine.high %v963_v46, %v971_v47  ;;  %v8901_v11 = vcombine.low %v963_v46, %v971_v47  ;;  %v1195_v25 = vld [vmem:[%s9719_s20 + $0x1950] sm:$0xff] }
 0x19f   : > { %7087 = vmatpush1.bf16.msra.mxu1 %v9205_v24  ;;  %v6777_v41 = vadd.f32 %v6776_v34, %v6734_v33  ;;  %v6736_v42 = vadd.f32 %v6735_v37, %v10107_v56  ;;  %7118 = vmatprep.mubr.bf16.mxu1 %v9861_v38  ;;  %v8917_v56 = vcombine.low %v979_v28, %v987_v29  ;;  %v1187_v24 = vld [vmem:[%s9719_s20 + $0x1910] sm:$0xff] }
 0x1a0   : > { %v6778_v43 = vpop.f32.mrf.mxu1  ;;  %7088 = vmatprep.subr.bf16.mxu1 %v9190_v27  ;;  %v6737_v49 = vpop.f32.mrf.mxu0  ;;  %v8064_v29 = vrot.slane %v10190_v8, %v10083_v19  ;;  %v9126_v34 = vcombine.high %v1187_v24, %v1195_v25  ;;  %v923_v37 = vld [vmem:[%s9719_s20 + $0x10d0] sm:$0xff] }
 0x1a1   : > { %v6779_v52 = vadd.f32 %v6778_v43, %v6736_v42  ;;  %v6738_v53 = vadd.f32 %v6737_v49, %v10109_v1  ;;  %7046 = vmatpush1.bf16.msra.mxu0 %v8933_v36  ;;  %v1203_v1 = vld [vmem:[%s9719_s20 + $0x1990] sm:$0xff]  ;;  %v7989_v6 = vmax.f32 %v6777_v41, 0.0  ;;  %v8869_v43 = vcombine.low %v931_v20, %v939_v21 }
 0x1a2   : > { %v6780_v54 = vpop.f32.mrf.mxu1  ;;  %v6739_v55 = vpop.f32.mrf.mxu0  ;;  %7047 = vmatprep.subr.bf16.mxu0 %v8918_v40  ;;  %v9142_v18 = vcombine.high %v1203_v1, %v1211_v4  ;;  %v9141_v31 = vcombine.low %v1203_v1, %v1211_v4  ;;  %v915_v36 = vld [vmem:[%s9719_s20 + $0x1090] sm:$0xff] }
 0x1a3   : > { %7089 = vmatpush1.bf16.msra.mxu1 %v9189_v39  ;;  %v6781_v60 = vadd.f32 %v6780_v54, %v6738_v53  ;;  %v6740_v61 = vadd.f32 %v6739_v55, %v10115_v10  ;;  %v9157_v10 = vcombine.low %v1219_v50, %v1227_v51  ;;  %v7990_v13 = vmax.f32 %v6779_v52, 0.0  ;;  %v1171_v39 = vld [vmem:[%s9719_s20 + $0x1890] sm:$0xff] }
 0x1a4   : > { %7090 = vmatprep.subr.bf16.mxu1 %v9174_v44  ;;  %v6782_v3 = vpop.f32.mrf.mxu1  ;;  %v1179_v40 = vld [vmem:[%s9719_s20 + $0x18d0] sm:$0xff]  ;;  %v9125_v44 = vcombine.low %v1187_v24, %v1195_v25  ;;  %v8854_v46 = vcombine.high %v915_v36, %v923_v37  ;;  %v8853_v54 = vcombine.low %v915_v36, %v923_v37 }
 0x1a5   : > { %v8005_v7 = vmax.f32 %v6781_v60, 0.0  ;;  %v6783_v9 = vadd.f32 %v6782_v3, %v6740_v61  ;;  %7048 = vmatpush1.bf16.msra.mxu0 %v8917_v56  ;;  %v9110_v49 = vcombine.high %v1171_v39, %v1179_v40  ;;  %v899_v50 = vld [vmem:[%s9719_s20 + $0x1010] sm:$0xff]  ;;  %v9109_v56 = vcombine.low %v1171_v39, %v1179_v40 }
 0x1a6   : > { %7049 = vmatprep.subr.bf16.mxu0 %v8902_v58  ;;  %v907_v51 = vld [vmem:[%s9719_s20 + $0x1050] sm:$0xff] }
 0x1a7   : > { %7091 = vmatpush1.bf16.msra.mxu1 %v9173_v57  ;;  %v8021_v15 = vsub.f32 %v7989_v6, %v8005_v7  ;;  %v8006_v17 = vmax.f32 %v6783_v9, 0.0  ;;  %v1155_v52 = vld [vmem:[%s9719_s20 + $0x1810] sm:$0xff]  ;;  %v8838_v55 = vcombine.high %v899_v50, %v907_v51  ;;  %v8837_v63 = vcombine.low %v899_v50, %v907_v51 }
 0x1a8   : > { %7092 = vmatprep.subr.bf16.mxu1 %v9158_v62  ;;  %v1163_v53 = vld [vmem:[%s9719_s20 + $0x1850] sm:$0xff] }
 0x1a9   : > { %v8037_v27 = vand.u32 2147483647, %v8021_v15  ;;  %v8022_v28 = vsub.f32 %v7990_v13, %v8006_v17  ;;  %7050 = vmatpush1.bf16.msra.mxu0 %v8901_v11  ;;  %v9094_v57 = vcombine.high %v1155_v52, %v1163_v53  ;;  %v1139_v58 = vld [vmem:[%s9719_s20 + $0x1790] sm:$0xff]  ;;  %v9093_v2 = vcombine.low %v1155_v52, %v1163_v53 }
 0x1aa   : > { %7051 = vmatprep.subr.bf16.mxu0 %v8886_v12  ;;  %v1147_v60 = vld [vmem:[%s9719_s20 + $0x17d0] sm:$0xff] }
 0x1ab   : > { %7093 = vmatpush1.bf16.msra.mxu1 %v9157_v10  ;;  %v8038_v33 = vand.u32 2147483647, %v8022_v28  ;;  %v8137_v41 = vmul.f32 %v8060_v23, %v8037_v27  ;;  %v1395_v61 = vld [vmem:[%s9719_s20 + $0x1f90] sm:$0xff]  ;;  %v9078_v3 = vcombine.high %v1139_v58, %v1147_v60  ;;  %v9077_v11 = vcombine.low %v1139_v58, %v1147_v60 }
 0x1ac   : > { %7094 = vmatprep.subr.bf16.mxu1 %v9142_v18  ;;  %v1403_v62 = vld [vmem:[%s9719_s20 + $0x1fd0] sm:$0xff] }
 0x1ad   : > { %v8138_v42 = vmul.f32 %v8064_v29, %v8038_v33  ;;  %7052 = vmatpush1.bf16.msra.mxu0 %v8885_v30  ;;  %v9334_v1 = vcombine.high %v1395_v61, %v1403_v62  ;;  %v1123_v4 = vld [vmem:[%s9719_s20 + $0x1710] sm:$0xff]  ;;  %v9333_v10 = vcombine.low %v1395_v61, %v1403_v62 }
 0x1ae   : > { %7053 = vmatprep.subr.bf16.mxu0 %v8870_v32  ;;  %v1131_v6 = vld [vmem:[%s9719_s20 + $0x1750] sm:$0xff] }
 0x1af   : > { %7095 = vmatpush1.bf16.msra.mxu1 %v9141_v31  ;;  %v10204_v47 = vadd.f32 %v8138_v42, %v8137_v41  ;;  %v1379_v7 = vld [vmem:[%s9719_s20 + $0x1f10] sm:$0xff]  ;;  %v9062_v12 = vcombine.high %v1123_v4, %v1131_v6  ;;  %v9061_v21 = vcombine.low %v1123_v4, %v1131_v6 }
 0x1b0   : > { %7096 = vmatprep.subr.bf16.mxu1 %v9126_v34  ;;  %v1387_v9 = vld [vmem:[%s9719_s20 + $0x1f50] sm:$0xff] }
 0x1b1   : > { %7054 = vmatpush1.bf16.msra.mxu0 %v8869_v43  ;;  %v9318_v13 = vcombine.high %v1379_v7, %v1387_v9  ;;  %v1107_v15 = vld [vmem:[%s9719_s20 + $0x1690] sm:$0xff]  ;;  %v9317_v23 = vcombine.low %v1379_v7, %v1387_v9 }
 0x1b2   : > { %7055 = vmatprep.subr.bf16.mxu0 %v8854_v46  ;;  %v1115_v17 = vld [vmem:[%s9719_s20 + $0x16d0] sm:$0xff] }
 0x1b3   : > { %7097 = vmatpush1.bf16.msra.mxu1 %v9125_v44  ;;  %v1363_v18 = vld [vmem:[%s9719_s20 + $0x1e90] sm:$0xff]  ;;  %v9046_v24 = vcombine.high %v1107_v15, %v1115_v17  ;;  %v9045_v31 = vcombine.low %v1107_v15, %v1115_v17  ;;  %v756_v15 = vld [vmem:[%s9719_s20 + $0xb98] sm:$0xff] }
 0x1b4   : > { %7098 = vmatprep.subr.bf16.mxu1 %v9110_v49  ;;  %v1371_v20 = vld [vmem:[%s9719_s20 + $0x1ed0] sm:$0xff]  ;;  %v764_v17 = vld [vmem:[%s9719_s20 + $0xbd8] sm:$0xff] }
 0x1b5   : > { %7056 = vmatpush1.bf16.msra.mxu0 %v8853_v54  ;;  %v9302_v25 = vcombine.high %v1363_v18, %v1371_v20  ;;  %v1091_v27 = vld [vmem:[%s9719_s20 + $0x1610] sm:$0xff]  ;;  %v9301_v32 = vcombine.low %v1363_v18, %v1371_v20  ;;  %v10247_v20 = vsub.s32 2, %v10070_v5 }
 0x1b6   : > { %7057 = vmatprep.subr.bf16.mxu0 %v8838_v55  ;;  %v1099_v28 = vld [vmem:[%s9719_s20 + $0x1650] sm:$0xff] }
 0x1b7   : > { %7099 = vmatpush1.bf16.msra.mxu1 %v9109_v56  ;;  %v1347_v29 = vld [vmem:[%s9719_s20 + $0x1e10] sm:$0xff]  ;;  %v9030_v33 = vcombine.high %v1091_v27, %v1099_v28  ;;  %v9029_v41 = vcombine.low %v1091_v27, %v1099_v28  ;;  %v484_v27 = vld [vmem:[%s9719_s20 + $0x318] sm:$0xff] }
 0x1b8   : > { %7100 = vmatprep.subr.bf16.mxu1 %v9094_v57  ;;  %v1355_v30 = vld [vmem:[%s9719_s20 + $0x1e50] sm:$0xff]  ;;  %v492_v28 = vld [vmem:[%s9719_s20 + $0x358] sm:$0xff] }
 0x1b9   : > { %7058 = vmatpush1.bf16.msra.mxu0 %v8837_v63  ;;  %v9286_v34 = vcombine.high %v1347_v29, %v1355_v30  ;;  %v1075_v36 = vld [vmem:[%s9719_s20 + $0x1590] sm:$0xff]  ;;  %v9285_v42 = vcombine.low %v1347_v29, %v1355_v30  ;;  %v740_v29 = vld [vmem:[%s9719_s20 + $0xb18] sm:$0xff] }
 0x1ba   : > { %7059 = vmatprep.subr.bf16.mxu0 %v9078_v3  ;;  %v1083_v37 = vld [vmem:[%s9719_s20 + $0x15d0] sm:$0xff]  ;;  %v748_v30 = vld [vmem:[%s9719_s20 + $0xb58] sm:$0xff] }
 0x1bb   : > { %7101 = vmatpush1.bf16.msra.mxu1 %v9093_v2  ;;  %v1331_v39 = vld [vmem:[%s9719_s20 + $0x1d90] sm:$0xff]  ;;  %v9014_v43 = vcombine.high %v1075_v36, %v1083_v37  ;;  %v9013_v52 = vcombine.low %v1075_v36, %v1083_v37  ;;  %v8680_v37 = vcombine.high %v740_v29, %v748_v30 }
 0x1bc   : > { %7102 = vmatprep.subr.bf16.mxu1 %v9334_v1  ;;  %v1339_v40 = vld [vmem:[%s9719_s20 + $0x1dd0] sm:$0xff] }
 0x1bd   : > { %7060 = vmatpush2.bf16.msra.mxu0 %v9077_v11  ;;  %v9270_v44 = vcombine.high %v1331_v39, %v1339_v40  ;;  %v1059_v46 = vld [vmem:[%s9719_s20 + $0x1510] sm:$0xff]  ;;  %v9269_v53 = vcombine.low %v1331_v39, %v1339_v40  ;;  %v468_v39 = vld [vmem:[%s9719_s20 + $0x298] sm:$0xff] }
 0x1be   : > { %7061 = vmatprep.subr.bf16.mxu0 %v9062_v12  ;;  %v1067_v49 = vld [vmem:[%s9719_s20 + $0x1550] sm:$0xff]  ;;  %v500_v12 = vld [vmem:[%s9719_s20 + $0x398] sm:$0xff] }
 0x1bf   : > { %7103 = vmatpush2.bf16.msra.mxu1 %v9333_v10  ;;  %v1315_v50 = vld [vmem:[%s9719_s20 + $0x1d10] sm:$0xff]  ;;  %v8998_v54 = vcombine.high %v1059_v46, %v1067_v49  ;;  %v8997_v61 = vcombine.low %v1059_v46, %v1067_v49  ;;  %v476_v40 = vld [vmem:[%s9719_s20 + $0x2d8] sm:$0xff]  ;;  %v8423_v49 = vcombine.low %v484_v27, %v492_v28 }
 0x1c0   : > { %7104 = vmatprep.subr.bf16.mxu1 %v9318_v13  ;;  %v1323_v51 = vld [vmem:[%s9719_s20 + $0x1d50] sm:$0xff]  ;;  %v508_v13 = vld [vmem:[%s9719_s20 + $0x3d8] sm:$0xff] }
 0x1c1   : > { %7062 = vmatpush2.bf16.msra.mxu0 %v9061_v21  ;;  %v9254_v56 = vcombine.high %v1315_v50, %v1323_v51  ;;  %v1043_v55 = vld [vmem:[%s9719_s20 + $0x1490] sm:$0xff]  ;;  %v9253_v62 = vcombine.low %v1315_v50, %v1323_v51  ;;  %v8679_v50 = vcombine.low %v740_v29, %v748_v30  ;;  %v8408_v51 = vcombine.high %v468_v39, %v476_v40  ;;  %v428_v29 = vld [vmem:[%s9719_s20 + $0x158] sm:$0xff] }
 0x1c2   : > { %7063 = vmatprep.subr.bf16.mxu0 %v9046_v24  ;;  %v1051_v57 = vld [vmem:[%s9719_s20 + $0x14d0] sm:$0xff]  ;;  %v8696_v24 = vcombine.high %v756_v15, %v764_v17  ;;  %v676_v30 = vld [vmem:[%s9719_s20 + $0x918] sm:$0xff] }
 0x1c3   : > { %7105 = vmatpush2.bf16.msra.mxu1 %v9317_v23  ;;  %v1299_v58 = vld [vmem:[%s9719_s20 + $0x1c90] sm:$0xff]  ;;  %v8982_v63 = vcombine.high %v1043_v55, %v1051_v57  ;;  %v8981_v7 = vcombine.low %v1043_v55, %v1051_v57  ;;  %v8440_v23 = vcombine.high %v500_v12, %v508_v13  ;;  %v452_v55 = vld [vmem:[%s9719_s20 + $0x218] sm:$0xff] }
 0x1c4   : > { %7106 = vmatprep.subr.bf16.mxu1 %v9302_v25  ;;  %v1307_v60 = vld [vmem:[%s9719_s20 + $0x1cd0] sm:$0xff]  ;;  %v10250_v25 = vsub.s32 3, %v10070_v5  ;;  %v460_v57 = vld [vmem:[%s9719_s20 + $0x258] sm:$0xff] }
 0x1c5   : > { %7064 = vmatpush2.bf16.msra.mxu0 %v9045_v31  ;;  %v9238_v2 = vcombine.high %v1299_v58, %v1307_v60  ;;  %v1027_v3 = vld [vmem:[%s9719_s20 + $0x1410] sm:$0xff]  ;;  %v9237_v9 = vcombine.low %v1299_v58, %v1307_v60  ;;  %v1424_v31 = vrot.slane %v10080_v16, %v10247_v20  ;;  %v708_v60 = vld [vmem:[%s9719_s20 + $0xa18] sm:$0xff] }
 0x1c6   : > { %7065 = vmatprep.subr.bf16.mxu0 %v9030_v33  ;;  %v1035_v1 = vld [vmem:[%s9719_s20 + $0x1450] sm:$0xff]  ;;  %v8695_v33 = vcombine.low %v756_v15, %v764_v17  ;;  %v1428_v36 = vrot.slane %v10080_v16, %v10250_v25  ;;  %v692_v15 = vld [vmem:[%s9719_s20 + $0x998] sm:$0xff] }
 0x1c7   : > { %7107 = vmatpush2.bf16.msra.mxu1 %v9301_v32  ;;  %v1283_v4 = vld [vmem:[%s9719_s20 + $0x1c10] sm:$0xff]  ;;  %v8966_v11 = vcombine.high %v1027_v3, %v1035_v1  ;;  %v8965_v18 = vcombine.low %v1027_v3, %v1035_v1  ;;  %v8439_v32 = vcombine.low %v500_v12, %v508_v13  ;;  %v8407_v3 = vcombine.low %v468_v39, %v476_v40  ;;  %v444_v12 = vld [vmem:[%s9719_s20 + $0x1d8] sm:$0xff] }
 0x1c8   : > { %7108 = vmatprep.subr.bf16.mxu1 %v9286_v34  ;;  %v1291_v6 = vld [vmem:[%s9719_s20 + $0x1c50] sm:$0xff]  ;;  %v8424_v34 = vcombine.high %v484_v27, %v492_v28  ;;  %v700_v17 = vld [vmem:[%s9719_s20 + $0x9d8] sm:$0xff] }
 0x1c9   : > { %7066 = vmatpush2.bf16.msra.mxu0 %v9029_v41  ;;  %v9222_v10 = vcombine.high %v1283_v4, %v1291_v6  ;;  %v9221_v21 = vcombine.low %v1283_v4, %v1291_v6  ;;  %v8392_v6 = vcombine.high %v452_v55, %v460_v57  ;;  %v8632_v27 = vcombine.high %v692_v15, %v700_v17  ;;  %v420_v28 = vld [vmem:[%s9719_s20 + $0x118] sm:$0xff] }
 0x1ca   : > { %7067 = vmatprep.subr.bf16.mxu0 %v9014_v43  ;;  %v732_v43 = vld [vmem:[%s9719_s20 + $0xad8] sm:$0xff] }
 0x1cb   : > { %7109 = vmatpush2.bf16.msra.mxu1 %v9285_v42  ;;  %v724_v42 = vld [vmem:[%s9719_s20 + $0xa98] sm:$0xff] }
 0x1cc   : > { %7110 = vmatprep.subr.bf16.mxu1 %v9270_v44  ;;  %v8663_v4 = vcombine.low %v724_v42, %v732_v43  ;;  %v412_v39 = vld [vmem:[%s9719_s20 + $0xd8] sm:$0xff] }
 0x1cd   : > { %7068 = vmatpush2.bf16.msra.mxu0 %v9013_v52  ;;  %v660_v40 = vld [vmem:[%s9719_s20 + $0x898] sm:$0xff] }
 0x1ce   : > { %7069 = vmatprep.subr.bf16.mxu0 %v8998_v54 }
 0x1cf   : > { %7111 = vmatpush2.bf16.msra.mxu1 %v9269_v53 }
 0x1d0   : > { %7112 = vmatprep.subr.bf16.mxu1 %v9254_v56  ;;  %v8664_v56 = vcombine.high %v724_v42, %v732_v43  ;;  %v8359_v42 = vcombine.low %v420_v28, %v428_v29 }
 0x1d1   : > { %7070 = vmatpush2.bf16.msra.mxu0 %v8997_v61  ;;  %v716_v61 = vld [vmem:[%s9719_s20 + $0xa58] sm:$0xff] }
 0x1d2   : > { %7071 = vmatprep.subr.bf16.mxu0 %v8982_v63 }
 0x1d3   : > { %7113 = vmatpush2.bf16.msra.mxu1 %v9253_v62 }
 0x1d4   : > { %7114 = vmatprep.subr.bf16.mxu1 %v9238_v2 }
 0x1d5   : > { %7072 = vmatpush2.bf16.msra.mxu0 %v8981_v7 }
 0x1d6   : > { %7073 = vmatprep.subr.bf16.mxu0 %v8966_v11  ;;  %v8648_v11 = vcombine.high %v708_v60, %v716_v61 }
 0x1d7   : > { %7115 = vmatpush2.bf16.msra.mxu1 %v9237_v9 }
 0x1d8   : > { %7116 = vmatprep.subr.bf16.mxu1 %v9222_v10  ;;  %v436_v10 = vld [vmem:[%s9719_s20 + $0x198] sm:$0xff] }
 0x1d9   : > { %7074 = vmatpush2.bf16.msra.mxu0 %v8965_v18 }
 0x1da   : > { %7129 = vmatprep.subr.bf16.mxu0 %v8440_v23  ;;  %v8647_v23 = vcombine.low %v708_v60, %v716_v61  ;;  %v884_v60 = vld [vmem:[%s9719_s20 + $0xf98] sm:$0xff] }
 0x1db   : > { %7117 = vmatpush2.bf16.msra.mxu1 %v9221_v21  ;;  %v8391_v21 = vcombine.low %v452_v55, %v460_v57  ;;  %v628_v57 = vld [vmem:[%s9719_s20 + $0x798] sm:$0xff] }
 0x1dc   : > { %7172 = vmatprep.subr.bf16.mxu1 %v8696_v24  ;;  %v6819_v41 = vpop.f32.mrf.mxu0  ;;  %7076 = vmatmul.mubr.bf16.vlgmr.msra.gmra.mxu0 %v9936_v45  ;;  %v8376_v24 = vcombine.high %v436_v10, %v444_v12  ;;  %v892_v61 = vld [vmem:[%s9719_s20 + $0xfd8] sm:$0xff] }
 0x1dd   : > { %v6820_v44 = vadd.f32 %v6819_v41, %v1424_v31  ;;  %7130 = vmatpush1.bf16.msra.mxu0 %v8439_v32  ;;  %7161 = vmatprep.mubr.bf16.mxu0 %v9772_v59  ;;  %v8375_v32 = vcombine.low %v436_v10, %v444_v12  ;;  %v668_v41 = vld [vmem:[%s9719_s20 + $0x8d8] sm:$0xff]  ;;  %v8823_v12 = vcombine.low %v884_v60, %v892_v61 }
 0x1de   : > { %v6862_v46 = vpop.f32.mrf.mxu1  ;;  %7119 = vmatmul.mubr.bf16.vlgmr.msra.gmra.mxu1 %v9940_v48  ;;  %v6821_v16 = vpop.f32.mrf.mxu0  ;;  %7131 = vmatprep.subr.bf16.mxu0 %v8424_v34  ;;  %v8360_v34 = vcombine.high %v420_v28, %v428_v29 }
 0x1df   : > { %7173 = vmatpush1.bf16.msra.mxu1 %v8695_v33  ;;  %v10266_v52 = vadd.f32 %v6862_v46, %v6820_v44  ;;  %v6822_v53 = vadd.f32 %v6821_v16, %v1428_v36  ;;  %7204 = vmatprep.mubr.bf16.mxu1 %v9782_v0  ;;  %v8631_v33 = vcombine.low %v692_v15, %v700_v17  ;;  %v396_v16 = vld [vmem:[%s9719_s20 + $0x58] sm:$0xff] }
 0x1e0   : > { %v6864_v54 = vpop.f32.mrf.mxu1  ;;  %7174 = vmatprep.subr.bf16.mxu1 %v8680_v37  ;;  %v6823_v58 = vpop.f32.mrf.mxu0  ;;  %v404_v37 = vld [vmem:[%s9719_s20 + $0x98] sm:$0xff]  ;;  %v8600_v46 = vcombine.high %v660_v40, %v668_v41 }
 0x1e1   : > { %v10274_v62 = vadd.f32 %v6864_v54, %v6822_v53  ;;  %v6824_v63 = vadd.f32 %v6823_v58, %v1424_v31  ;;  %7132 = vmatpush1.bf16.msra.mxu0 %v8423_v49  ;;  %v684_v31 = vld [vmem:[%s9719_s20 + $0x958] sm:$0xff]  ;;  %v8344_v44 = vcombine.high %v404_v37, %v412_v39  ;;  %v8343_v53 = vcombine.low %v404_v37, %v412_v39 }
 0x1e2   : > { %v6866_v2 = vpop.f32.mrf.mxu1  ;;  %v6825_v1 = vpop.f32.mrf.mxu0  ;;  %7133 = vmatprep.subr.bf16.mxu0 %v8408_v51  ;;  %v8615_v43 = vcombine.low %v676_v30, %v684_v31  ;;  %v388_v49 = vld [vmem:[%s9719_s20 + $0x18] sm:$0xff]  ;;  %v8599_v54 = vcombine.low %v660_v40, %v668_v41 }
 0x1e3   : > { %7175 = vmatpush1.bf16.msra.mxu1 %v8679_v50  ;;  %v10276_v7 = vadd.f32 %v6866_v2, %v6824_v63  ;;  %v6826_v9 = vadd.f32 %v6825_v1, %v1428_v36  ;;  %v8616_v36 = vcombine.high %v676_v30, %v684_v31  ;;  %v644_v50 = vld [vmem:[%s9719_s20 + $0x818] sm:$0xff]  ;;  %v8327_v63 = vcombine.low %v388_v49, %v396_v16 }
 0x1e4   : > { %7176 = vmatprep.subr.bf16.mxu1 %v8664_v56  ;;  %v6868_v13 = vpop.f32.mrf.mxu1  ;;  %v652_v51 = vld [vmem:[%s9719_s20 + $0x858] sm:$0xff]  ;;  %v8328_v56 = vcombine.high %v388_v49, %v396_v16  ;;  %v8824_v1 = vcombine.high %v884_v60, %v892_v61 }
 0x1e5   : > { %v10282_v18 = vadd.f32 %v6868_v13, %v6826_v9  ;;  %7134 = vmatpush1.bf16.msra.mxu0 %v8407_v3  ;;  %v8584_v55 = vcombine.high %v644_v50, %v652_v51  ;;  %v636_v58 = vld [vmem:[%s9719_s20 + $0x7d8] sm:$0xff]  ;;  %v8583_v2 = vcombine.low %v644_v50, %v652_v51 }
 0x1e6   : > { %7135 = vmatprep.subr.bf16.mxu0 %v8392_v6  ;;  %v8568_v3 = vcombine.high %v628_v57, %v636_v58  ;;  %v620_v6 = vld [vmem:[%s9719_s20 + $0x758] sm:$0xff]  ;;  %v8567_v10 = vcombine.low %v628_v57, %v636_v58 }
 0x1e7   : > { %7177 = vmatpush1.bf16.msra.mxu1 %v8663_v4  ;;  %v612_v4 = vld [vmem:[%s9719_s20 + $0x718] sm:$0xff] }
 0x1e8   : > { %7178 = vmatprep.subr.bf16.mxu1 %v8648_v11  ;;  %v868_v9 = vld [vmem:[%s9719_s20 + $0xf18] sm:$0xff]  ;;  %v8552_v13 = vcombine.high %v612_v4, %v620_v6 }
 0x1e9   : > { %7136 = vmatpush1.bf16.msra.mxu0 %v8391_v21  ;;  %v876_v11 = vld [vmem:[%s9719_s20 + $0xf58] sm:$0xff] }
 0x1ea   : > { %7137 = vmatprep.subr.bf16.mxu0 %v8376_v24  ;;  %v8808_v15 = vcombine.high %v868_v9, %v876_v11  ;;  %v596_v17 = vld [vmem:[%s9719_s20 + $0x698] sm:$0xff]  ;;  %v8807_v28 = vcombine.low %v868_v9, %v876_v11 }
 0x1eb   : > { %7179 = vmatpush1.bf16.msra.mxu1 %v8647_v23  ;;  %v604_v21 = vld [vmem:[%s9719_s20 + $0x6d8] sm:$0xff] }
 0x1ec   : > { %7180 = vmatprep.subr.bf16.mxu1 %v8632_v27  ;;  %v852_v23 = vld [vmem:[%s9719_s20 + $0xe98] sm:$0xff]  ;;  %v8551_v27 = vcombine.low %v612_v4, %v620_v6  ;;  %v8536_v29 = vcombine.high %v596_v17, %v604_v21 }
 0x1ed   : > { %7138 = vmatpush1.bf16.msra.mxu0 %v8375_v32  ;;  %v860_v24 = vld [vmem:[%s9719_s20 + $0xed8] sm:$0xff] }
 0x1ee   : > { %7139 = vmatprep.subr.bf16.mxu0 %v8360_v34  ;;  %v8792_v30 = vcombine.high %v852_v23, %v860_v24  ;;  %v580_v31 = vld [vmem:[%s9719_s20 + $0x618] sm:$0xff]  ;;  %v8791_v37 = vcombine.low %v852_v23, %v860_v24 }
 0x1ef   : > { %7181 = vmatpush1.bf16.msra.mxu1 %v8631_v33  ;;  %v588_v32 = vld [vmem:[%s9719_s20 + $0x658] sm:$0xff] }
 0x1f0   : > { %7182 = vmatprep.subr.bf16.mxu1 %v8616_v36  ;;  %v836_v33 = vld [vmem:[%s9719_s20 + $0xe18] sm:$0xff]  ;;  %v8535_v36 = vcombine.low %v596_v17, %v604_v21  ;;  %v8520_v39 = vcombine.high %v580_v31, %v588_v32 }
 0x1f1   : > { %7140 = vmatpush1.bf16.msra.mxu0 %v8359_v42  ;;  %v844_v34 = vld [vmem:[%s9719_s20 + $0xe58] sm:$0xff] }
 0x1f2   : > { %7141 = vmatprep.subr.bf16.mxu0 %v8344_v44  ;;  %v8776_v40 = vcombine.high %v836_v33, %v844_v34  ;;  %v564_v41 = vld [vmem:[%s9719_s20 + $0x598] sm:$0xff]  ;;  %v8775_v49 = vcombine.low %v836_v33, %v844_v34 }
 0x1f3   : > { %7183 = vmatpush1.bf16.msra.mxu1 %v8615_v43  ;;  %v572_v42 = vld [vmem:[%s9719_s20 + $0x5d8] sm:$0xff] }
 0x1f4   : > { %7184 = vmatprep.subr.bf16.mxu1 %v8600_v46  ;;  %v820_v43 = vld [vmem:[%s9719_s20 + $0xd98] sm:$0xff]  ;;  %v8519_v46 = vcombine.low %v580_v31, %v588_v32  ;;  %v8504_v16 = vcombine.high %v564_v41, %v572_v42 }
 0x1f5   : > { %7142 = vmatpush1.bf16.msra.mxu0 %v8343_v53  ;;  %v828_v44 = vld [vmem:[%s9719_s20 + $0xdd8] sm:$0xff] }
 0x1f6   : > { %7143 = vmatprep.subr.bf16.mxu0 %v8328_v56  ;;  %v8760_v50 = vcombine.high %v820_v43, %v828_v44  ;;  %v548_v51 = vld [vmem:[%s9719_s20 + $0x518] sm:$0xff]  ;;  %v8759_v57 = vcombine.low %v820_v43, %v828_v44 }
 0x1f7   : > { %7185 = vmatpush1.bf16.msra.mxu1 %v8599_v54  ;;  %v556_v53 = vld [vmem:[%s9719_s20 + $0x558] sm:$0xff] }
 0x1f8   : > { %7186 = vmatprep.subr.bf16.mxu1 %v8584_v55  ;;  %v804_v54 = vld [vmem:[%s9719_s20 + $0xd18] sm:$0xff]  ;;  %v8503_v55 = vcombine.low %v564_v41, %v572_v42  ;;  %v8488_v58 = vcombine.high %v548_v51, %v556_v53 }
 0x1f9   : > { %7144 = vmatpush1.bf16.msra.mxu0 %v8327_v63  ;;  %v812_v56 = vld [vmem:[%s9719_s20 + $0xd58] sm:$0xff] }
 0x1fa   : > { %7145 = vmatprep.subr.bf16.mxu0 %v8568_v3  ;;  %v8744_v60 = vcombine.high %v804_v54, %v812_v56  ;;  %v532_v61 = vld [vmem:[%s9719_s20 + $0x498] sm:$0xff]  ;;  %v8743_v4 = vcombine.low %v804_v54, %v812_v56 }
 0x1fb   : > { %7187 = vmatpush1.bf16.msra.mxu1 %v8583_v2  ;;  %v540_v63 = vld [vmem:[%s9719_s20 + $0x4d8] sm:$0xff] }
 0x1fc   : > { %7188 = vmatprep.subr.bf16.mxu1 %v8824_v1  ;;  %v788_v2 = vld [vmem:[%s9719_s20 + $0xc98] sm:$0xff]  ;;  %v8487_v1 = vcombine.low %v548_v51, %v556_v53  ;;  %v8472_v6 = vcombine.high %v532_v61, %v540_v63 }
 0x1fd   : > { %7146 = vmatpush2.bf16.msra.mxu0 %v8567_v10  ;;  %v796_v3 = vld [vmem:[%s9719_s20 + $0xcd8] sm:$0xff] }
 0x1fe   : > { %7147 = vmatprep.subr.bf16.mxu0 %v8552_v13  ;;  %v8728_v9 = vcombine.high %v788_v2, %v796_v3  ;;  %v516_v11 = vld [vmem:[%s9719_s20 + $0x418] sm:$0xff]  ;;  %v8727_v17 = vcombine.low %v788_v2, %v796_v3 }
 0x1ff   : > { %7189 = vmatpush2.bf16.msra.mxu1 %v8823_v12  ;;  %v524_v10 = vld [vmem:[%s9719_s20 + $0x458] sm:$0xff] }
 0x200   : > { %7190 = vmatprep.subr.bf16.mxu1 %v8808_v15  ;;  %v772_v12 = vld [vmem:[%s9719_s20 + $0xc18] sm:$0xff]  ;;  %v8471_v15 = vcombine.low %v532_v61, %v540_v63  ;;  %v8456_v21 = vcombine.high %v516_v11, %v524_v10 }
 0x201   : > { %7148 = vmatpush2.bf16.msra.mxu0 %v8551_v27  ;;  %v780_v13 = vld [vmem:[%s9719_s20 + $0xc58] sm:$0xff] }
 0x202   : > { %7149 = vmatprep.subr.bf16.mxu0 %v8536_v29  ;;  %v8712_v23 = vcombine.high %v772_v12, %v780_v13  ;;  %v1012_v24 = vld [vmem:[%s9719_s20 + $0x1398] sm:$0xff]  ;;  %v8711_v31 = vcombine.low %v772_v12, %v780_v13 }
 0x203   : > { %7191 = vmatpush2.bf16.msra.mxu1 %v8807_v28  ;;  %v1020_v27 = vld [vmem:[%s9719_s20 + $0x13d8] sm:$0xff] }
 0x204   : > { %7192 = vmatprep.subr.bf16.mxu1 %v8792_v30  ;;  %v1268_v28 = vld [vmem:[%s9719_s20 + $0x1b98] sm:$0xff]  ;;  %v8455_v30 = vcombine.low %v516_v11, %v524_v10  ;;  %v8952_v32 = vcombine.high %v1012_v24, %v1020_v27 }
 0x205   : > { %7150 = vmatpush2.bf16.msra.mxu0 %v8535_v36  ;;  %v1276_v29 = vld [vmem:[%s9719_s20 + $0x1bd8] sm:$0xff] }
 0x206   : > { %7151 = vmatprep.subr.bf16.mxu0 %v8520_v39  ;;  %v9208_v33 = vcombine.high %v1268_v28, %v1276_v29  ;;  %v996_v34 = vld [vmem:[%s9719_s20 + $0x1318] sm:$0xff]  ;;  %v9207_v41 = vcombine.low %v1268_v28, %v1276_v29 }
 0x207   : > { %7193 = vmatpush2.bf16.msra.mxu1 %v8791_v37  ;;  %v1004_v36 = vld [vmem:[%s9719_s20 + $0x1358] sm:$0xff] }
 0x208   : > { %7194 = vmatprep.subr.bf16.mxu1 %v8776_v40  ;;  %v1252_v37 = vld [vmem:[%s9719_s20 + $0x1b18] sm:$0xff]  ;;  %v8951_v40 = vcombine.low %v1012_v24, %v1020_v27  ;;  %v8936_v42 = vcombine.high %v996_v34, %v1004_v36  ;;  %v8935_v54 = vcombine.low %v996_v34, %v1004_v36 }
 0x209   : > { %7152 = vmatpush2.bf16.msra.mxu0 %v8519_v46  ;;  %v1260_v39 = vld [vmem:[%s9719_s20 + $0x1b58] sm:$0xff] }
 0x20a   : > { %7153 = vmatprep.subr.bf16.mxu0 %v8504_v16  ;;  %v9192_v43 = vcombine.high %v1252_v37, %v1260_v39  ;;  %v980_v44 = vld [vmem:[%s9719_s20 + $0x1298] sm:$0xff] }
 0x20b   : > { %7195 = vmatpush2.bf16.msra.mxu1 %v8775_v49  ;;  %v988_v46 = vld [vmem:[%s9719_s20 + $0x12d8] sm:$0xff] }
 0x20c   : > { %7196 = vmatprep.subr.bf16.mxu1 %v8760_v50  ;;  %v1236_v16 = vld [vmem:[%s9719_s20 + $0x1a98] sm:$0xff] }
 0x20d   : > { %7154 = vmatpush2.bf16.msra.mxu0 %v8503_v55  ;;  %v1244_v50 = vld [vmem:[%s9719_s20 + $0x1ad8] sm:$0xff]  ;;  %v9191_v55 = vcombine.low %v1252_v37, %v1260_v39 }
 0x20e   : > { %7155 = vmatprep.subr.bf16.mxu0 %v8488_v58  ;;  %v9176_v63 = vcombine.high %v1236_v16, %v1244_v50  ;;  %v972_v2 = vld [vmem:[%s9719_s20 + $0x1258] sm:$0xff]  ;;  %v9175_v12 = vcombine.low %v1236_v16, %v1244_v50  ;;  %v8072_v16 = vrot.slane %v10190_v8, %v10250_v25 }
 0x20f   : > { %7197 = vmatpush2.bf16.msra.mxu1 %v8759_v57  ;;  %v8920_v57 = vcombine.high %v980_v44, %v988_v46  ;;  %v956_v24 = vld [vmem:[%s9719_s20 + $0x11d8] sm:$0xff] }
 0x210   : > { %7198 = vmatprep.subr.bf16.mxu1 %v8744_v60  ;;  %v1204_v28 = vld [vmem:[%s9719_s20 + $0x1998] sm:$0xff] }
 0x211   : > { %7156 = vmatpush2.bf16.msra.mxu0 %v8487_v1  ;;  %v1220_v1 = vld [vmem:[%s9719_s20 + $0x1a18] sm:$0xff] }
 0x212   : > { %7157 = vmatprep.subr.bf16.mxu0 %v8472_v6 }
 0x213   : > { %7199 = vmatpush2.bf16.msra.mxu1 %v8743_v4  ;;  %v1228_v4 = vld [vmem:[%s9719_s20 + $0x1a58] sm:$0xff] }
 0x214   : > { %7200 = vmatprep.subr.bf16.mxu1 %v8728_v9 }
 0x215   : > { %7158 = vmatpush2.bf16.msra.mxu0 %v8471_v15 }
 0x216   : > { %7159 = vmatprep.subr.bf16.mxu0 %v8456_v21  ;;  %v9160_v21 = vcombine.high %v1220_v1, %v1228_v4 }
 0x217   : > { %7201 = vmatpush2.bf16.msra.mxu1 %v8727_v17 }
 0x218   : > { %7202 = vmatprep.subr.bf16.mxu1 %v8712_v23  ;;  %v948_v23 = vld [vmem:[%s9719_s20 + $0x1198] sm:$0xff] }
 0x219   : > { %7160 = vmatpush2.bf16.msra.mxu0 %v8455_v30  ;;  %v8888_v34 = vcombine.high %v948_v23, %v956_v24  ;;  %v8887_v50 = vcombine.low %v948_v23, %v956_v24  ;;  %v1404_v23 = vld [vmem:[%s9719_s20 + $0x1fd8] sm:$0xff] }
 0x21a   : > { %7215 = vmatprep.subr.bf16.mxu0 %v8952_v32 }
 0x21b   : > { %7203 = vmatpush2.bf16.msra.mxu1 %v8711_v31 }
 0x21c   : > { %7258 = vmatprep.subr.bf16.mxu1 %v9208_v33  ;;  %v6905_v49 = vpop.f32.mrf.mxu0  ;;  %7162 = vmatmul.mubr.bf16.vlgmr.msra.gmra.mxu0 %v9837_v22  ;;  %v8068_v33 = vrot.slane %v10190_v8, %v10247_v20 }
 0x21d   : > { %v6906_v51 = vadd.f32 %v6905_v49, %v10266_v52  ;;  %7216 = vmatpush1.bf16.msra.mxu0 %v8951_v40  ;;  %v964_v52 = vld [vmem:[%s9719_s20 + $0x1218] sm:$0xff]  ;;  %7247 = vmatprep.mubr.bf16.mxu0 %v9856_v35 }
 0x21e   : > { %v6948_v53 = vpop.f32.mrf.mxu1  ;;  %7205 = vmatmul.mubr.bf16.vlgmr.msra.gmra.mxu1 %v9846_v26  ;;  %v6907_v56 = vpop.f32.mrf.mxu0  ;;  %7217 = vmatprep.subr.bf16.mxu0 %v8936_v42  ;;  %v8904_v13 = vcombine.high %v964_v52, %v972_v2  ;;  %v8903_v32 = vcombine.low %v964_v52, %v972_v2  ;;  %v940_v42 = vld [vmem:[%s9719_s20 + $0x1158] sm:$0xff] }
 0x21f   : > { %7259 = vmatpush1.bf16.msra.mxu1 %v9207_v41  ;;  %v6949_v58 = vadd.f32 %v6948_v53, %v6906_v51  ;;  %v6908_v60 = vadd.f32 %v6907_v56, %v10274_v62  ;;  %7290 = vmatprep.mubr.bf16.mxu1 %v9861_v38  ;;  %v8919_v62 = vcombine.low %v980_v44, %v988_v46  ;;  %v932_v41 = vld [vmem:[%s9719_s20 + $0x1118] sm:$0xff] }
 0x220   : > { %v6950_v61 = vpop.f32.mrf.mxu1  ;;  %7260 = vmatprep.subr.bf16.mxu1 %v9192_v43  ;;  %v6909_v3 = vpop.f32.mrf.mxu0  ;;  %v1188_v43 = vld [vmem:[%s9719_s20 + $0x1918] sm:$0xff]  ;;  %v8872_v53 = vcombine.high %v932_v41, %v940_v42  ;;  %v8871_v52 = vcombine.low %v932_v41, %v940_v42 }
 0x221   : > { %v6951_v6 = vadd.f32 %v6950_v61, %v6908_v60  ;;  %v6910_v9 = vadd.f32 %v6909_v3, %v10276_v7  ;;  %7218 = vmatpush1.bf16.msra.mxu0 %v8935_v54  ;;  %v1212_v7 = vld [vmem:[%s9719_s20 + $0x19d8] sm:$0xff]  ;;  %v7991_v29 = vmax.f32 %v6949_v58, 0.0 }
 0x222   : > { %v6952_v11 = vpop.f32.mrf.mxu1  ;;  %v6911_v10 = vpop.f32.mrf.mxu0  ;;  %7219 = vmatprep.subr.bf16.mxu0 %v8920_v57  ;;  %v9144_v40 = vcombine.high %v1204_v28, %v1212_v7  ;;  %v1196_v44 = vld [vmem:[%s9719_s20 + $0x1958] sm:$0xff]  ;;  %v9143_v51 = vcombine.low %v1204_v28, %v1212_v7 }
 0x223   : > { %7261 = vmatpush1.bf16.msra.mxu1 %v9191_v55  ;;  %v6953_v15 = vadd.f32 %v6952_v11, %v6910_v9  ;;  %v6912_v17 = vadd.f32 %v6911_v10, %v10282_v18  ;;  %v9159_v18 = vcombine.low %v1220_v1, %v1228_v4  ;;  %v7992_v36 = vmax.f32 %v6951_v6, 0.0  ;;  %v916_v57 = vld [vmem:[%s9719_s20 + $0x1098] sm:$0xff] }
 0x224   : > { %7262 = vmatprep.subr.bf16.mxu1 %v9176_v63  ;;  %v6954_v27 = vpop.f32.mrf.mxu1  ;;  %v9128_v55 = vcombine.high %v1188_v43, %v1196_v44  ;;  %v924_v58 = vld [vmem:[%s9719_s20 + $0x10d8] sm:$0xff]  ;;  %v9127_v2 = vcombine.low %v1188_v43, %v1196_v44 }
 0x225   : > { %v8007_v30 = vmax.f32 %v6953_v15, 0.0  ;;  %v6955_v31 = vadd.f32 %v6954_v27, %v6912_v17  ;;  %7220 = vmatpush1.bf16.msra.mxu0 %v8919_v62  ;;  %v1172_v60 = vld [vmem:[%s9719_s20 + $0x1898] sm:$0xff]  ;;  %v8856_v3 = vcombine.high %v916_v57, %v924_v58 }
 0x226   : > { %7221 = vmatprep.subr.bf16.mxu0 %v8904_v13  ;;  %v1180_v61 = vld [vmem:[%s9719_s20 + $0x18d8] sm:$0xff] }
 0x227   : > { %7263 = vmatpush1.bf16.msra.mxu1 %v9175_v12  ;;  %v8023_v37 = vsub.f32 %v7991_v29, %v8007_v30  ;;  %v8008_v39 = vmax.f32 %v6955_v31, 0.0  ;;  %v9112_v4 = vcombine.high %v1172_v60, %v1180_v61  ;;  %v900_v6 = vld [vmem:[%s9719_s20 + $0x1018] sm:$0xff]  ;;  %v9111_v10 = vcombine.low %v1172_v60, %v1180_v61 }
 0x228   : > { %7264 = vmatprep.subr.bf16.mxu1 %v9160_v21  ;;  %v908_v9 = vld [vmem:[%s9719_s20 + $0x1058] sm:$0xff] }
 0x229   : > { %v8039_v46 = vand.u32 2147483647, %v8023_v37  ;;  %v8024_v49 = vsub.f32 %v7992_v36, %v8008_v39  ;;  %7222 = vmatpush1.bf16.msra.mxu0 %v8903_v32  ;;  %v1156_v11 = vld [vmem:[%s9719_s20 + $0x1818] sm:$0xff]  ;;  %v8840_v12 = vcombine.high %v900_v6, %v908_v9  ;;  %v8839_v24 = vcombine.low %v900_v6, %v908_v9 }
 0x22a   : > { %7223 = vmatprep.subr.bf16.mxu0 %v8888_v34  ;;  %v1164_v62 = vld [vmem:[%s9719_s20 + $0x1858] sm:$0xff] }
 0x22b   : > { %7265 = vmatpush1.bf16.msra.mxu1 %v9159_v18  ;;  %v8139_v54 = vmul.f32 %v8068_v33, %v8039_v46  ;;  %v8040_v56 = vand.u32 2147483647, %v8024_v49  ;;  %v9096_v13 = vcombine.high %v1156_v11, %v1164_v62  ;;  %v1140_v15 = vld [vmem:[%s9719_s20 + $0x1798] sm:$0xff]  ;;  %v9095_v27 = vcombine.low %v1156_v11, %v1164_v62 }
 0x22c   : > { %7266 = vmatprep.subr.bf16.mxu1 %v9144_v40  ;;  %v1148_v17 = vld [vmem:[%s9719_s20 + $0x17d8] sm:$0xff] }
 0x22d   : > { %v8154_v8 = vadd.f32 %v10204_v47, %v8139_v54  ;;  %v8140_v63 = vmul.f32 %v8072_v16, %v8040_v56  ;;  %7224 = vmatpush1.bf16.msra.mxu0 %v8887_v50  ;;  %v8855_v47 = vcombine.low %v916_v57, %v924_v58  ;;  %v1396_v21 = vld [vmem:[%s9719_s20 + $0x1f98] sm:$0xff]  ;;  %v9080_v28 = vcombine.high %v1140_v15, %v1148_v17 }
 0x22e   : > { %7225 = vmatprep.subr.bf16.mxu0 %v8872_v53  ;;  %v9336_v7 = vcombine.high %v1396_v21, %v1404_v23  ;;  %v1124_v29 = vld [vmem:[%s9719_s20 + $0x1718] sm:$0xff]  ;;  %v9079_v33 = vcombine.low %v1140_v15, %v1148_v17  ;;  %v9335_v18 = vcombine.low %v1396_v21, %v1404_v23 }
 0x22f   : > { %7267 = vmatpush1.bf16.msra.mxu1 %v9143_v51  ;;  %v10369_v1 = vadd.f32 %v8154_v8, %v8140_v63  ;;  %v1132_v30 = vld [vmem:[%s9719_s20 + $0x1758] sm:$0xff] }
 0x230   : > { %7268 = vmatprep.subr.bf16.mxu1 %v9128_v55  ;;  %v1380_v31 = vld [vmem:[%s9719_s20 + $0x1f18] sm:$0xff]  ;;  %v9064_v34 = vcombine.high %v1124_v29, %v1132_v30  ;;  %v9063_v42 = vcombine.low %v1124_v29, %v1132_v30 }
 0x231   : > { %7226 = vmatpush1.bf16.msra.mxu0 %v8871_v52  ;;  %v1388_v32 = vld [vmem:[%s9719_s20 + $0x1f58] sm:$0xff] }
 0x232   : > { %7227 = vmatprep.subr.bf16.mxu0 %v8856_v3  ;;  %v9320_v36 = vcombine.high %v1380_v31, %v1388_v32  ;;  %v1108_v37 = vld [vmem:[%s9719_s20 + $0x1698] sm:$0xff]  ;;  %v9319_v43 = vcombine.low %v1380_v31, %v1388_v32 }
 0x233   : > { %7269 = vmatpush1.bf16.msra.mxu1 %v9127_v2  ;;  %v1116_v39 = vld [vmem:[%s9719_s20 + $0x16d8] sm:$0xff] }
 0x234   : > { %7270 = vmatprep.subr.bf16.mxu1 %v9112_v4  ;;  %v1364_v40 = vld [vmem:[%s9719_s20 + $0x1e98] sm:$0xff]  ;;  %v9048_v44 = vcombine.high %v1108_v37, %v1116_v39  ;;  %v9047_v53 = vcombine.low %v1108_v37, %v1116_v39  ;;  %v757_v37 = vld [vmem:[%s9719_s20 + $0xba0] sm:$0xff] }
 0x235   : > { %7228 = vmatpush1.bf16.msra.mxu0 %v8855_v47  ;;  %v1372_v41 = vld [vmem:[%s9719_s20 + $0x1ed8] sm:$0xff]  ;;  %v765_v39 = vld [vmem:[%s9719_s20 + $0xbe0] sm:$0xff] }
 0x236   : > { %7229 = vmatprep.subr.bf16.mxu0 %v8840_v12  ;;  %v9304_v46 = vcombine.high %v1364_v40, %v1372_v41  ;;  %v1092_v49 = vld [vmem:[%s9719_s20 + $0x1618] sm:$0xff]  ;;  %v9303_v54 = vcombine.low %v1364_v40, %v1372_v41  ;;  %v10412_v41 = vsub.s32 4, %v10070_v5 }
 0x237   : > { %7271 = vmatpush1.bf16.msra.mxu1 %v9111_v10  ;;  %v1100_v16 = vld [vmem:[%s9719_s20 + $0x1658] sm:$0xff] }
 0x238   : > { %7272 = vmatprep.subr.bf16.mxu1 %v9096_v13  ;;  %v1348_v50 = vld [vmem:[%s9719_s20 + $0x1e18] sm:$0xff]  ;;  %v9032_v56 = vcombine.high %v1092_v49, %v1100_v16  ;;  %v9031_v8 = vcombine.low %v1092_v49, %v1100_v16  ;;  %v485_v49 = vld [vmem:[%s9719_s20 + $0x320] sm:$0xff] }
 0x239   : > { %7230 = vmatpush1.bf16.msra.mxu0 %v8839_v24  ;;  %v1356_v51 = vld [vmem:[%s9719_s20 + $0x1e58] sm:$0xff]  ;;  %v493_v16 = vld [vmem:[%s9719_s20 + $0x360] sm:$0xff] }
 0x23a   : > { %7231 = vmatprep.subr.bf16.mxu0 %v9080_v28  ;;  %v9288_v55 = vcombine.high %v1348_v50, %v1356_v51  ;;  %v1076_v57 = vld [vmem:[%s9719_s20 + $0x1598] sm:$0xff]  ;;  %v9287_v63 = vcombine.low %v1348_v50, %v1356_v51  ;;  %v741_v50 = vld [vmem:[%s9719_s20 + $0xb20] sm:$0xff] }
 0x23b   : > { %7273 = vmatpush1.bf16.msra.mxu1 %v9095_v27  ;;  %v1084_v58 = vld [vmem:[%s9719_s20 + $0x15d8] sm:$0xff]  ;;  %v749_v51 = vld [vmem:[%s9719_s20 + $0xb60] sm:$0xff] }
 0x23c   : > { %7274 = vmatprep.subr.bf16.mxu1 %v9336_v7  ;;  %v1332_v60 = vld [vmem:[%s9719_s20 + $0x1d98] sm:$0xff]  ;;  %v9016_v52 = vcombine.high %v1076_v57, %v1084_v58  ;;  %v9015_v11 = vcombine.low %v1076_v57, %v1084_v58  ;;  %v8426_v57 = vcombine.high %v485_v49, %v493_v16 }
 0x23d   : > { %7232 = vmatpush2.bf16.msra.mxu0 %v9079_v33  ;;  %v1340_v61 = vld [vmem:[%s9719_s20 + $0x1dd8] sm:$0xff] }
 0x23e   : > { %7233 = vmatprep.subr.bf16.mxu0 %v9064_v34  ;;  %v9272_v2 = vcombine.high %v1332_v60, %v1340_v61  ;;  %v1060_v3 = vld [vmem:[%s9719_s20 + $0x1518] sm:$0xff]  ;;  %v9271_v62 = vcombine.low %v1332_v60, %v1340_v61  ;;  %v501_v34 = vld [vmem:[%s9719_s20 + $0x3a0] sm:$0xff]  ;;  %v8682_v60 = vcombine.high %v741_v50, %v749_v51 }
 0x23f   : > { %7275 = vmatpush2.bf16.msra.mxu1 %v9335_v18  ;;  %v1068_v4 = vld [vmem:[%s9719_s20 + $0x1558] sm:$0xff]  ;;  %v469_v61 = vld [vmem:[%s9719_s20 + $0x2a0] sm:$0xff] }
 0x240   : > { %7276 = vmatprep.subr.bf16.mxu1 %v9320_v36  ;;  %v1316_v6 = vld [vmem:[%s9719_s20 + $0x1d18] sm:$0xff]  ;;  %v9000_v47 = vcombine.high %v1060_v3, %v1068_v4  ;;  %v8999_v21 = vcombine.low %v1060_v3, %v1068_v4  ;;  %v509_v36 = vld [vmem:[%s9719_s20 + $0x3e0] sm:$0xff] }
 0x241   : > { %7234 = vmatpush2.bf16.msra.mxu0 %v9063_v42  ;;  %v1324_v9 = vld [vmem:[%s9719_s20 + $0x1d58] sm:$0xff] }
 0x242   : > { %7235 = vmatprep.subr.bf16.mxu0 %v9048_v44  ;;  %v9256_v10 = vcombine.high %v1316_v6, %v1324_v9  ;;  %v1044_v12 = vld [vmem:[%s9719_s20 + $0x1498] sm:$0xff]  ;;  %v9255_v23 = vcombine.low %v1316_v6, %v1324_v9  ;;  %v8698_v44 = vcombine.high %v757_v37, %v765_v39  ;;  %v8425_v6 = vcombine.low %v485_v49, %v493_v16 }
 0x243   : > { %7277 = vmatpush2.bf16.msra.mxu1 %v9319_v43  ;;  %v1052_v13 = vld [vmem:[%s9719_s20 + $0x14d8] sm:$0xff]  ;;  %v8442_v43 = vcombine.high %v501_v34, %v509_v36 }
 0x244   : > { %7278 = vmatprep.subr.bf16.mxu1 %v9304_v46  ;;  %v1300_v15 = vld [vmem:[%s9719_s20 + $0x1c98] sm:$0xff]  ;;  %v8984_v24 = vcombine.high %v1044_v12, %v1052_v13  ;;  %v8983_v31 = vcombine.low %v1044_v12, %v1052_v13  ;;  %v10415_v46 = vsub.s32 5, %v10070_v5 }
 0x245   : > { %7236 = vmatpush2.bf16.msra.mxu0 %v9047_v53  ;;  %v1308_v17 = vld [vmem:[%s9719_s20 + $0x1cd8] sm:$0xff]  ;;  %v9421_v53 = vld [vmem:[%s9727_s28] sm:$0xff] }
 0x246   : > { %7237 = vmatprep.subr.bf16.mxu0 %v9032_v56  ;;  %v9240_v27 = vcombine.high %v1300_v15, %v1308_v17  ;;  %v1028_v28 = vld [vmem:[%s9719_s20 + $0x1418] sm:$0xff]  ;;  %v9239_v32 = vcombine.low %v1300_v15, %v1308_v17  ;;  %11197 = vst [vmem:[#allocation11_spill] sm:$0xff] %v10415_v46  ;;  %v8441_v56 = vcombine.low %v501_v34, %v509_v36  ;;  %v453_v15 = vld [vmem:[%s9719_s20 + $0x220] sm:$0xff] }
 0x247   : > { %7279 = vmatpush2.bf16.msra.mxu1 %v9303_v54  ;;  %v1036_v7 = vld [vmem:[%s9719_s20 + $0x1458] sm:$0xff]  ;;  %v1432_v54 = vrot.slane %v9421_v53, %v10412_v41  ;;  %v1436_v58 = vrot.slane %v9421_v53, %v10415_v46  ;;  %v461_v17 = vld [vmem:[%s9719_s20 + $0x260] sm:$0xff] }
 0x248   : > { %7280 = vmatprep.subr.bf16.mxu1 %v9288_v55  ;;  %v1284_v29 = vld [vmem:[%s9719_s20 + $0x1c18] sm:$0xff]  ;;  %v8968_v33 = vcombine.high %v1028_v28, %v1036_v7  ;;  %v8967_v40 = vcombine.low %v1028_v28, %v1036_v7  ;;  %v8697_v55 = vcombine.low %v757_v37, %v765_v39  ;;  %v437_v36 = vld [vmem:[%s9719_s20 + $0x1a0] sm:$0xff] }
 0x249   : > { %7238 = vmatpush2.bf16.msra.mxu0 %v9031_v8  ;;  %v1292_v30 = vld [vmem:[%s9719_s20 + $0x1c58] sm:$0xff]  ;;  %v477_v8 = vld [vmem:[%s9719_s20 + $0x2e0] sm:$0xff] }
 0x24a   : > { %7239 = vmatprep.subr.bf16.mxu0 %v9016_v52  ;;  %v9224_v18 = vcombine.high %v1284_v29, %v1292_v30  ;;  %v9223_v42 = vcombine.low %v1284_v29, %v1292_v30  ;;  %v725_v52 = vld [vmem:[%s9719_s20 + $0xaa0] sm:$0xff]  ;;  %v8409_v29 = vcombine.low %v469_v61, %v477_v8 }
 0x24b   : > { %7281 = vmatpush2.bf16.msra.mxu1 %v9287_v63  ;;  %v445_v37 = vld [vmem:[%s9719_s20 + $0x1e0] sm:$0xff] }
 0x24c   : > { %7282 = vmatprep.subr.bf16.mxu1 %v9272_v2  ;;  %v733_v2 = vld [vmem:[%s9719_s20 + $0xae0] sm:$0xff]  ;;  %v8378_v16 = vcombine.high %v437_v36, %v445_v37 }
 0x24d   : > { %7240 = vmatpush2.bf16.msra.mxu0 %v9015_v11  ;;  %v8681_v11 = vcombine.low %v741_v50, %v749_v51  ;;  %v8666_v13 = vcombine.high %v725_v52, %v733_v2  ;;  %v421_v51 = vld [vmem:[%s9719_s20 + $0x120] sm:$0xff] }
 0x24e   : > { %7241 = vmatprep.subr.bf16.mxu0 %v9000_v47  ;;  %v429_v53 = vld [vmem:[%s9719_s20 + $0x160] sm:$0xff] }
 0x24f   : > { %7283 = vmatpush2.bf16.msra.mxu1 %v9271_v62  ;;  %v8410_v62 = vcombine.high %v469_v61, %v477_v8  ;;  %v405_v61 = vld [vmem:[%s9719_s20 + $0xa0] sm:$0xff] }
 0x250   : > { %7284 = vmatprep.subr.bf16.mxu1 %v9256_v10  ;;  %v413_v8 = vld [vmem:[%s9719_s20 + $0xe0] sm:$0xff] }
 0x251   : > { %7242 = vmatpush2.bf16.msra.mxu0 %v8999_v21 }
 0x252   : > { %7243 = vmatprep.subr.bf16.mxu0 %v8984_v24  ;;  %v717_v24 = vld [vmem:[%s9719_s20 + $0xa60] sm:$0xff] }
 0x253   : > { %7285 = vmatpush2.bf16.msra.mxu1 %v9255_v23  ;;  %v709_v23 = vld [vmem:[%s9719_s20 + $0xa20] sm:$0xff] }
 0x254   : > { %7286 = vmatprep.subr.bf16.mxu1 %v9240_v27  ;;  %v8650_v34 = vcombine.high %v709_v23, %v717_v24  ;;  %v8649_v49 = vcombine.low %v709_v23, %v717_v24  ;;  %v637_v23 = vld [vmem:[%s9719_s20 + $0x7e0] sm:$0xff] }
 0x255   : > { %7244 = vmatpush2.bf16.msra.mxu0 %v8983_v31  ;;  %v8665_v31 = vcombine.low %v725_v52, %v733_v2  ;;  %v669_v52 = vld [vmem:[%s9719_s20 + $0x8e0] sm:$0xff]  ;;  %v8361_v2 = vcombine.low %v421_v51, %v429_v53 }
 0x256   : > { %7245 = vmatprep.subr.bf16.mxu0 %v8968_v33  ;;  %v885_v24 = vld [vmem:[%s9719_s20 + $0xfa0] sm:$0xff] }
 0x257   : > { %7287 = vmatpush2.bf16.msra.mxu1 %v9239_v32  ;;  %v8394_v32 = vcombine.high %v453_v15, %v461_v17 }
 0x258   : > { %7288 = vmatprep.subr.bf16.mxu1 %v9224_v18 }
 0x259   : > { %7246 = vmatpush2.bf16.msra.mxu0 %v8967_v40  ;;  %v693_v40 = vld [vmem:[%s9719_s20 + $0x9a0] sm:$0xff] }
 0x25a   : > { %7301 = vmatprep.subr.bf16.mxu0 %v8442_v43 }
 0x25b   : > { %7289 = vmatpush2.bf16.msra.mxu1 %v9223_v42  ;;  %v701_v42 = vld [vmem:[%s9719_s20 + $0x9e0] sm:$0xff] }
 0x25c   : > { %7344 = vmatprep.subr.bf16.mxu1 %v8698_v44  ;;  %v6991_v63 = vpop.f32.mrf.mxu0  ;;  %7248 = vmatmul.mubr.bf16.vlgmr.msra.gmra.mxu0 %v9936_v45  ;;  %v8393_v44 = vcombine.low %v453_v15, %v461_v17  ;;  %v8634_v50 = vcombine.high %v693_v40, %v701_v42 }
 0x25d   : > { %v6992_v3 = vadd.f32 %v6991_v63, %v1432_v54  ;;  %7302 = vmatpush1.bf16.msra.mxu0 %v8441_v56  ;;  %7333 = vmatprep.mubr.bf16.mxu0 %v9772_v59  ;;  %v685_v56 = vld [vmem:[%s9719_s20 + $0x960] sm:$0xff] }
 0x25e   : > { %v7034_v4 = vpop.f32.mrf.mxu1  ;;  %7291 = vmatmul.mubr.bf16.vlgmr.msra.gmra.mxu1 %v9940_v48  ;;  %v6993_v9 = vpop.f32.mrf.mxu0  ;;  %7303 = vmatprep.subr.bf16.mxu0 %v8426_v57  ;;  %v8633_v57 = vcombine.low %v693_v40, %v701_v42  ;;  %v661_v63 = vld [vmem:[%s9719_s20 + $0x8a0] sm:$0xff] }
 0x25f   : > { %7345 = vmatpush1.bf16.msra.mxu1 %v8697_v55  ;;  %v10430_v47 = vadd.f32 %v7034_v4, %v6992_v3  ;;  %v6994_v10 = vadd.f32 %v6993_v9, %v1436_v58  ;;  %7376 = vmatprep.mubr.bf16.mxu1 %v9782_v0  ;;  %v8377_v55 = vcombine.low %v437_v36, %v445_v37  ;;  %v389_v9 = vld [vmem:[%s9719_s20 + $0x20] sm:$0xff] }
 0x260   : > { %v7036_v12 = vpop.f32.mrf.mxu1  ;;  %7346 = vmatprep.subr.bf16.mxu1 %v8682_v60  ;;  %v6995_v21 = vpop.f32.mrf.mxu0  ;;  %v8346_v4 = vcombine.high %v405_v61, %v413_v8  ;;  %v877_v36 = vld [vmem:[%s9719_s20 + $0xf60] sm:$0xff] }
 0x261   : > { %v10438_v27 = vadd.f32 %v7036_v12, %v6994_v10  ;;  %v6996_v28 = vadd.f32 %v6995_v21, %v1432_v54  ;;  %7304 = vmatpush1.bf16.msra.mxu0 %v8425_v6  ;;  %v677_v54 = vld [vmem:[%s9719_s20 + $0x920] sm:$0xff]  ;;  %v8602_v6 = vcombine.high %v661_v63, %v669_v52  ;;  %v8345_v12 = vcombine.low %v405_v61, %v413_v8 }
 0x262   : > { %v7038_v7 = vpop.f32.mrf.mxu1  ;;  %v6997_v30 = vpop.f32.mrf.mxu0  ;;  %7305 = vmatprep.subr.bf16.mxu0 %v8410_v62  ;;  %v8618_v60 = vcombine.high %v677_v54, %v685_v56  ;;  %v8617_v3 = vcombine.low %v677_v54, %v685_v56  ;;  %v645_v62 = vld [vmem:[%s9719_s20 + $0x820] sm:$0xff] }
 0x263   : > { %7347 = vmatpush1.bf16.msra.mxu1 %v8681_v11  ;;  %v10440_v33 = vadd.f32 %v7038_v7, %v6996_v28  ;;  %v6998_v18 = vadd.f32 %v6997_v30, %v1436_v58  ;;  %v8362_v58 = vcombine.high %v421_v51, %v429_v53  ;;  %v397_v11 = vld [vmem:[%s9719_s20 + $0x60] sm:$0xff] }
 0x264   : > { %7348 = vmatprep.subr.bf16.mxu1 %v8666_v13  ;;  %v7040_v39 = vpop.f32.mrf.mxu1  ;;  %v653_v10 = vld [vmem:[%s9719_s20 + $0x860] sm:$0xff]  ;;  %v8601_v13 = vcombine.low %v661_v63, %v669_v52  ;;  %v8330_v15 = vcombine.high %v389_v9, %v397_v11  ;;  %v8329_v7 = vcombine.low %v389_v9, %v397_v11 }
 0x265   : > { %v10446_v43 = vadd.f32 %v7040_v39, %v6998_v18  ;;  %7306 = vmatpush1.bf16.msra.mxu0 %v8409_v29  ;;  %v8586_v17 = vcombine.high %v645_v62, %v653_v10  ;;  %v629_v21 = vld [vmem:[%s9719_s20 + $0x7a0] sm:$0xff]  ;;  %v8585_v29 = vcombine.low %v645_v62, %v653_v10 }
 0x266   : > { %7307 = vmatprep.subr.bf16.mxu0 %v8394_v32  ;;  %v893_v28 = vld [vmem:[%s9719_s20 + $0xfe0] sm:$0xff]  ;;  %v8570_v30 = vcombine.high %v629_v21, %v637_v23  ;;  %v8569_v37 = vcombine.low %v629_v21, %v637_v23 }
 0x267   : > { %7349 = vmatpush1.bf16.msra.mxu1 %v8665_v31  ;;  %v8826_v31 = vcombine.high %v885_v24, %v893_v28  ;;  %v613_v32 = vld [vmem:[%s9719_s20 + $0x720] sm:$0xff]  ;;  %v8825_v39 = vcombine.low %v885_v24, %v893_v28 }
 0x268   : > { %7350 = vmatprep.subr.bf16.mxu1 %v8650_v34  ;;  %v621_v18 = vld [vmem:[%s9719_s20 + $0x760] sm:$0xff] }
 0x269   : > { %7308 = vmatpush1.bf16.msra.mxu0 %v8393_v44  ;;  %v869_v34 = vld [vmem:[%s9719_s20 + $0xf20] sm:$0xff]  ;;  %v8554_v40 = vcombine.high %v613_v32, %v621_v18  ;;  %v8553_v51 = vcombine.low %v613_v32, %v621_v18 }
 0x26a   : > { %7309 = vmatprep.subr.bf16.mxu0 %v8378_v16  ;;  %v8810_v42 = vcombine.high %v869_v34, %v877_v36  ;;  %v597_v44 = vld [vmem:[%s9719_s20 + $0x6a0] sm:$0xff]  ;;  %v8809_v53 = vcombine.low %v869_v34, %v877_v36 }
 0x26b   : > { %7351 = vmatpush1.bf16.msra.mxu1 %v8649_v49  ;;  %v605_v49 = vld [vmem:[%s9719_s20 + $0x6e0] sm:$0xff] }
 0x26c   : > { %7352 = vmatprep.subr.bf16.mxu1 %v8634_v50  ;;  %v853_v16 = vld [vmem:[%s9719_s20 + $0xea0] sm:$0xff]  ;;  %v8538_v54 = vcombine.high %v597_v44, %v605_v49  ;;  %v8537_v61 = vcombine.low %v597_v44, %v605_v49 }
 0x26d   : > { %7310 = vmatpush1.bf16.msra.mxu0 %v8377_v55  ;;  %v861_v50 = vld [vmem:[%s9719_s20 + $0xee0] sm:$0xff] }
 0x26e   : > { %7311 = vmatprep.subr.bf16.mxu0 %v8362_v58  ;;  %v8794_v56 = vcombine.high %v853_v16, %v861_v50  ;;  %v581_v55 = vld [vmem:[%s9719_s20 + $0x620] sm:$0xff]  ;;  %v8793_v8 = vcombine.low %v853_v16, %v861_v50 }
 0x26f   : > { %7353 = vmatpush1.bf16.msra.mxu1 %v8633_v57  ;;  %v589_v57 = vld [vmem:[%s9719_s20 + $0x660] sm:$0xff] }
 0x270   : > { %7354 = vmatprep.subr.bf16.mxu1 %v8618_v60  ;;  %v837_v58 = vld [vmem:[%s9719_s20 + $0xe20] sm:$0xff]  ;;  %v8522_v63 = vcombine.high %v581_v55, %v589_v57  ;;  %v8521_v9 = vcombine.low %v581_v55, %v589_v57 }
 0x271   : > { %7312 = vmatpush1.bf16.msra.mxu0 %v8361_v2  ;;  %v845_v60 = vld [vmem:[%s9719_s20 + $0xe60] sm:$0xff] }
 0x272   : > { %7313 = vmatprep.subr.bf16.mxu0 %v8346_v4  ;;  %v8778_v52 = vcombine.high %v837_v58, %v845_v60  ;;  %v565_v2 = vld [vmem:[%s9719_s20 + $0x5a0] sm:$0xff]  ;;  %v8777_v11 = vcombine.low %v837_v58, %v845_v60 }
 0x273   : > { %7355 = vmatpush1.bf16.msra.mxu1 %v8617_v3  ;;  %v573_v3 = vld [vmem:[%s9719_s20 + $0x5e0] sm:$0xff] }
 0x274   : > { %7356 = vmatprep.subr.bf16.mxu1 %v8602_v6  ;;  %v821_v4 = vld [vmem:[%s9719_s20 + $0xda0] sm:$0xff]  ;;  %v8506_v62 = vcombine.high %v565_v2, %v573_v3  ;;  %v8505_v21 = vcombine.low %v565_v2, %v573_v3 }
 0x275   : > { %7314 = vmatpush1.bf16.msra.mxu0 %v8345_v12  ;;  %v829_v6 = vld [vmem:[%s9719_s20 + $0xde0] sm:$0xff] }
 0x276   : > { %7315 = vmatprep.subr.bf16.mxu0 %v8330_v15  ;;  %v8762_v10 = vcombine.high %v821_v4, %v829_v6  ;;  %v549_v12 = vld [vmem:[%s9719_s20 + $0x520] sm:$0xff]  ;;  %v8761_v23 = vcombine.low %v821_v4, %v829_v6 }
 0x277   : > { %7357 = vmatpush1.bf16.msra.mxu1 %v8601_v13  ;;  %v557_v13 = vld [vmem:[%s9719_s20 + $0x560] sm:$0xff] }
 0x278   : > { %7358 = vmatprep.subr.bf16.mxu1 %v8586_v17  ;;  %v805_v15 = vld [vmem:[%s9719_s20 + $0xd20] sm:$0xff]  ;;  %v8490_v24 = vcombine.high %v549_v12, %v557_v13  ;;  %v8489_v32 = vcombine.low %v549_v12, %v557_v13 }
 0x279   : > { %7316 = vmatpush1.bf16.msra.mxu0 %v8329_v7  ;;  %v813_v17 = vld [vmem:[%s9719_s20 + $0xd60] sm:$0xff] }
 0x27a   : > { %7317 = vmatprep.subr.bf16.mxu0 %v8570_v30  ;;  %v8746_v28 = vcombine.high %v805_v15, %v813_v17  ;;  %v533_v7 = vld [vmem:[%s9719_s20 + $0x4a0] sm:$0xff]  ;;  %v8745_v18 = vcombine.low %v805_v15, %v813_v17 }
 0x27b   : > { %7359 = vmatpush1.bf16.msra.mxu1 %v8585_v29  ;;  %v541_v29 = vld [vmem:[%s9719_s20 + $0x4e0] sm:$0xff] }
 0x27c   : > { %7360 = vmatprep.subr.bf16.mxu1 %v8826_v31  ;;  %v789_v30 = vld [vmem:[%s9719_s20 + $0xca0] sm:$0xff]  ;;  %v8474_v34 = vcombine.high %v533_v7, %v541_v29  ;;  %v8473_v44 = vcombine.low %v533_v7, %v541_v29 }
 0x27d   : > { %7318 = vmatpush2.bf16.msra.mxu0 %v8569_v37  ;;  %v797_v31 = vld [vmem:[%s9719_s20 + $0xce0] sm:$0xff] }
 0x27e   : > { %7319 = vmatprep.subr.bf16.mxu0 %v8554_v40  ;;  %v8730_v36 = vcombine.high %v789_v30, %v797_v31  ;;  %v517_v37 = vld [vmem:[%s9719_s20 + $0x420] sm:$0xff]  ;;  %v8729_v49 = vcombine.low %v789_v30, %v797_v31 }
 0x27f   : > { %7361 = vmatpush2.bf16.msra.mxu1 %v8825_v39  ;;  %v525_v39 = vld [vmem:[%s9719_s20 + $0x460] sm:$0xff] }
 0x280   : > { %7362 = vmatprep.subr.bf16.mxu1 %v8810_v42  ;;  %v773_v40 = vld [vmem:[%s9719_s20 + $0xc20] sm:$0xff]  ;;  %v8458_v16 = vcombine.high %v517_v37, %v525_v39  ;;  %v8457_v55 = vcombine.low %v517_v37, %v525_v39 }
 0x281   : > { %7320 = vmatpush2.bf16.msra.mxu0 %v8553_v51  ;;  %v781_v42 = vld [vmem:[%s9719_s20 + $0xc60] sm:$0xff] }
 0x282   : > { %7321 = vmatprep.subr.bf16.mxu0 %v8538_v54  ;;  %v8714_v50 = vcombine.high %v773_v40, %v781_v42  ;;  %v1013_v51 = vld [vmem:[%s9719_s20 + $0x13a0] sm:$0xff]  ;;  %v8713_v57 = vcombine.low %v773_v40, %v781_v42 }
 0x283   : > { %7363 = vmatpush2.bf16.msra.mxu1 %v8809_v53  ;;  %v1021_v53 = vld [vmem:[%s9719_s20 + $0x13e0] sm:$0xff] }
 0x284   : > { %7364 = vmatprep.subr.bf16.mxu1 %v8794_v56  ;;  %v1269_v54 = vld [vmem:[%s9719_s20 + $0x1ba0] sm:$0xff]  ;;  %v8954_v58 = vcombine.high %v1013_v51, %v1021_v53  ;;  %v8953_v2 = vcombine.low %v1013_v51, %v1021_v53 }
 0x285   : > { %7322 = vmatpush2.bf16.msra.mxu0 %v8537_v61  ;;  %v1277_v56 = vld [vmem:[%s9719_s20 + $0x1be0] sm:$0xff] }
 0x286   : > { %7323 = vmatprep.subr.bf16.mxu0 %v8522_v63  ;;  %v9210_v60 = vcombine.high %v1269_v54, %v1277_v56  ;;  %v997_v61 = vld [vmem:[%s9719_s20 + $0x1320] sm:$0xff]  ;;  %v9209_v3 = vcombine.low %v1269_v54, %v1277_v56 }
 0x287   : > { %7365 = vmatpush2.bf16.msra.mxu1 %v8793_v8  ;;  %v1005_v8 = vld [vmem:[%s9719_s20 + $0x1360] sm:$0xff] }
 0x288   : > { %7366 = vmatprep.subr.bf16.mxu1 %v8778_v52  ;;  %v1253_v63 = vld [vmem:[%s9719_s20 + $0x1b20] sm:$0xff]  ;;  %v8938_v4 = vcombine.high %v997_v61, %v1005_v8  ;;  %v8937_v17 = vcombine.low %v997_v61, %v1005_v8 }
 0x289   : > { %7324 = vmatpush2.bf16.msra.mxu0 %v8521_v9  ;;  %v1261_v52 = vld [vmem:[%s9719_s20 + $0x1b60] sm:$0xff] }
 0x28a   : > { %7325 = vmatprep.subr.bf16.mxu0 %v8506_v62  ;;  %v9194_v6 = vcombine.high %v1253_v63, %v1261_v52  ;;  %v981_v9 = vld [vmem:[%s9719_s20 + $0x12a0] sm:$0xff] }
 0x28b   : > { %7367 = vmatpush2.bf16.msra.mxu1 %v8777_v11  ;;  %v989_v11 = vld [vmem:[%s9719_s20 + $0x12e0] sm:$0xff] }
 0x28c   : > { %7368 = vmatprep.subr.bf16.mxu1 %v8762_v10  ;;  %v1237_v10 = vld [vmem:[%s9719_s20 + $0x1aa0] sm:$0xff] }
 0x28d   : > { %7326 = vmatpush2.bf16.msra.mxu0 %v8505_v21  ;;  %v1245_v12 = vld [vmem:[%s9719_s20 + $0x1ae0] sm:$0xff] }
 0x28e   : > { %7327 = vmatprep.subr.bf16.mxu0 %v8490_v24  ;;  %v8922_v24 = vcombine.high %v981_v9, %v989_v11  ;;  %v9178_v30 = vcombine.high %v1237_v10, %v1245_v12  ;;  %v973_v31 = vld [vmem:[%s9719_s20 + $0x1260] sm:$0xff]  ;;  %v9177_v42 = vcombine.low %v1237_v10, %v1245_v12 }
 0x28f   : > { %7369 = vmatpush2.bf16.msra.mxu1 %v8761_v23  ;;  %v9193_v23 = vcombine.low %v1253_v63, %v1261_v52  ;;  %v949_v51 = vld [vmem:[%s9719_s20 + $0x11a0] sm:$0xff] }
 0x290   : > { %7370 = vmatprep.subr.bf16.mxu1 %v8746_v28  ;;  %v957_v53 = vld [vmem:[%s9719_s20 + $0x11e0] sm:$0xff] }
 0x291   : > { %7328 = vmatpush2.bf16.msra.mxu0 %v8489_v32  ;;  %v1213_v56 = vld [vmem:[%s9719_s20 + $0x19e0] sm:$0xff]  ;;  %v8890_v63 = vcombine.high %v949_v51, %v957_v53 }
 0x292   : > { %7329 = vmatprep.subr.bf16.mxu0 %v8474_v34  ;;  %v1229_v34 = vld [vmem:[%s9719_s20 + $0x1a60] sm:$0xff] }
 0x293   : > { %7371 = vmatpush2.bf16.msra.mxu1 %v8745_v18  ;;  %v1221_v18 = vld [vmem:[%s9719_s20 + $0x1a20] sm:$0xff] }
 0x294   : > { %7372 = vmatprep.subr.bf16.mxu1 %v8730_v36  ;;  %v9422_v61 = vld [vmem:[%s9733_s13] sm:$0xff] }
 0x295   : > { %7330 = vmatpush2.bf16.msra.mxu0 %v8473_v44  ;;  %v8076_v8 = vrot.slane %v9422_v61, %v10412_v41 }
 0x296   : > { %7331 = vmatprep.subr.bf16.mxu0 %v8458_v16 }
 0x297   : > { %7373 = vmatpush2.bf16.msra.mxu1 %v8729_v49 }
 0x298   : > { %7374 = vmatprep.subr.bf16.mxu1 %v8714_v50  ;;  %v9162_v50 = vcombine.high %v1221_v18, %v1229_v34 }
 0x299   : > { %7332 = vmatpush2.bf16.msra.mxu0 %v8457_v55 }
 0x29a   : > { %7387 = vmatprep.subr.bf16.mxu0 %v8954_v58 }
 0x29b   : > { %7375 = vmatpush2.bf16.msra.mxu1 %v8713_v57 }
 0x29c   : > { %7430 = vmatprep.subr.bf16.mxu1 %v9210_v60  ;;  %v7077_v62 = vpop.f32.mrf.mxu0  ;;  %7334 = vmatmul.mubr.bf16.vlgmr.msra.gmra.mxu0 %v9837_v22 }
 0x29d   : > { %v7078_v13 = vadd.f32 %v7077_v62, %v10430_v47  ;;  %7388 = vmatpush1.bf16.msra.mxu0 %v8953_v2  ;;  %v965_v47 = vld [vmem:[%s9719_s20 + $0x1220] sm:$0xff]  ;;  %7419 = vmatprep.mubr.bf16.mxu0 %v9856_v35 }
 0x29e   : > { %v7120_v15 = vpop.f32.mrf.mxu1  ;;  %7377 = vmatmul.mubr.bf16.vlgmr.msra.gmra.mxu1 %v9846_v26  ;;  %v7079_v21 = vpop.f32.mrf.mxu0  ;;  %7389 = vmatprep.subr.bf16.mxu0 %v8938_v4  ;;  %v8906_v44 = vcombine.high %v965_v47, %v973_v31  ;;  %v8905_v60 = vcombine.low %v965_v47, %v973_v31  ;;  %v1197_v62 = vld [vmem:[%s9719_s20 + $0x1960] sm:$0xff] }
 0x29f   : > { %7431 = vmatpush1.bf16.msra.mxu1 %v9209_v3  ;;  %v7121_v28 = vadd.f32 %v7120_v15, %v7078_v13  ;;  %v7080_v7 = vadd.f32 %v7079_v21, %v10438_v27  ;;  %7462 = vmatprep.mubr.bf16.mxu1 %v9861_v38  ;;  %v8921_v27 = vcombine.low %v981_v9, %v989_v11  ;;  %v941_v9 = vld [vmem:[%s9719_s20 + $0x1160] sm:$0xff] }
 0x2a0   : > { %v7122_v29 = vpop.f32.mrf.mxu1  ;;  %7432 = vmatprep.subr.bf16.mxu1 %v9194_v6  ;;  %v7081_v32 = vpop.f32.mrf.mxu0  ;;  %v933_v6 = vld [vmem:[%s9719_s20 + $0x1120] sm:$0xff]  ;;  %v8080_v13 = vrot.slane %v9422_v61, %v10415_v46  ;;  %v8889_v15 = vcombine.low %v949_v51, %v957_v53 }
 0x2a1   : > { %v7123_v36 = vadd.f32 %v7122_v29, %v7080_v7  ;;  %v7082_v37 = vadd.f32 %v7081_v32, %v10440_v33  ;;  %7390 = vmatpush1.bf16.msra.mxu0 %v8937_v17  ;;  %v1205_v33 = vld [vmem:[%s9719_s20 + $0x19a0] sm:$0xff]  ;;  %v7993_v55 = vmax.f32 %v7121_v28, 0.0  ;;  %v8874_v21 = vcombine.high %v933_v6, %v941_v9 }
 0x2a2   : > { %v7124_v39 = vpop.f32.mrf.mxu1  ;;  %v7083_v40 = vpop.f32.mrf.mxu0  ;;  %7391 = vmatprep.subr.bf16.mxu0 %v8922_v24  ;;  %v9146_v4 = vcombine.high %v1205_v33, %v1213_v56  ;;  %v1189_v11 = vld [vmem:[%s9719_s20 + $0x1920] sm:$0xff]  ;;  %v9145_v17 = vcombine.low %v1205_v33, %v1213_v56 }
 0x2a3   : > { %7433 = vmatpush1.bf16.msra.mxu1 %v9193_v23  ;;  %v7125_v49 = vadd.f32 %v7124_v39, %v7082_v37  ;;  %v7084_v16 = vadd.f32 %v7083_v40, %v10446_v43  ;;  %v9161_v43 = vcombine.low %v1221_v18, %v1229_v34  ;;  %v7994_v52 = vmax.f32 %v7123_v36, 0.0  ;;  %v917_v7 = vld [vmem:[%s9719_s20 + $0x10a0] sm:$0xff] }
 0x2a4   : > { %7434 = vmatprep.subr.bf16.mxu1 %v9178_v30  ;;  %v7126_v54 = vpop.f32.mrf.mxu1  ;;  %v9130_v28 = vcombine.high %v1189_v11, %v1197_v62  ;;  %v925_v29 = vld [vmem:[%s9719_s20 + $0x10e0] sm:$0xff]  ;;  %v8873_v18 = vcombine.low %v933_v6, %v941_v9  ;;  %v9129_v34 = vcombine.low %v1189_v11, %v1197_v62 }
 0x2a5   : > { %v8009_v57 = vmax.f32 %v7125_v49, 0.0  ;;  %v7127_v58 = vadd.f32 %v7126_v54, %v7084_v16  ;;  %7392 = vmatpush1.bf16.msra.mxu0 %v8921_v27  ;;  %v1173_v30 = vld [vmem:[%s9719_s20 + $0x18a0] sm:$0xff]  ;;  %v8858_v36 = vcombine.high %v917_v7, %v925_v29 }
 0x2a6   : > { %7393 = vmatprep.subr.bf16.mxu0 %v8906_v44  ;;  %v1181_v47 = vld [vmem:[%s9719_s20 + $0x18e0] sm:$0xff] }
 0x2a7   : > { %7435 = vmatpush1.bf16.msra.mxu1 %v9177_v42  ;;  %v8025_v2 = vsub.f32 %v7993_v55, %v8009_v57  ;;  %v8010_v3 = vmax.f32 %v7127_v58, 0.0  ;;  %v9114_v39 = vcombine.high %v1173_v30, %v1181_v47  ;;  %v901_v27 = vld [vmem:[%s9719_s20 + $0x1020] sm:$0xff]  ;;  %v9113_v49 = vcombine.low %v1173_v30, %v1181_v47 }
 0x2a8   : > { %7436 = vmatprep.subr.bf16.mxu1 %v9162_v50  ;;  %v909_v40 = vld [vmem:[%s9719_s20 + $0x1060] sm:$0xff] }
 0x2a9   : > { %v8041_v10 = vand.u32 2147483647, %v8025_v2  ;;  %v8026_v12 = vsub.f32 %v7994_v52, %v8010_v3  ;;  %7394 = vmatpush1.bf16.msra.mxu0 %v8905_v60  ;;  %v1157_v42 = vld [vmem:[%s9719_s20 + $0x1820] sm:$0xff]  ;;  %v8842_v16 = vcombine.high %v901_v27, %v909_v40  ;;  %v8841_v56 = vcombine.low %v901_v27, %v909_v40 }
 0x2aa   : > { %7395 = vmatprep.subr.bf16.mxu0 %v8890_v63  ;;  %v1165_v44 = vld [vmem:[%s9719_s20 + $0x1860] sm:$0xff] }
 0x2ab   : > { %7437 = vmatpush1.bf16.msra.mxu1 %v9161_v43  ;;  %v8141_v23 = vmul.f32 %v8076_v8, %v8041_v10  ;;  %v8042_v24 = vand.u32 2147483647, %v8026_v12  ;;  %v9098_v50 = vcombine.high %v1157_v42, %v1165_v44  ;;  %v1141_v51 = vld [vmem:[%s9719_s20 + $0x17a0] sm:$0xff]  ;;  %v9097_v55 = vcombine.low %v1157_v42, %v1165_v44 }
 0x2ac   : > { %7438 = vmatprep.subr.bf16.mxu1 %v9146_v4  ;;  %v1149_v53 = vld [vmem:[%s9719_s20 + $0x17e0] sm:$0xff] }
 0x2ad   : > { %v8156_v31 = vadd.f32 %v10369_v1, %v8141_v23  ;;  %v8142_v32 = vmul.f32 %v8080_v13, %v8042_v24  ;;  %7396 = vmatpush1.bf16.msra.mxu0 %v8889_v15  ;;  %v8857_v1 = vcombine.low %v917_v7, %v925_v29  ;;  %v1397_v54 = vld [vmem:[%s9719_s20 + $0x1fa0] sm:$0xff]  ;;  %v9082_v57 = vcombine.high %v1141_v51, %v1149_v53 }
 0x2ae   : > { %7397 = vmatprep.subr.bf16.mxu0 %v8874_v21  ;;  %v1405_v33 = vld [vmem:[%s9719_s20 + $0x1fe0] sm:$0xff]  ;;  %v9081_v63 = vcombine.low %v1141_v51, %v1149_v53 }
 0x2af   : > { %7439 = vmatpush1.bf16.msra.mxu1 %v9145_v17  ;;  %v10532_v37 = vadd.f32 %v8156_v31, %v8142_v32  ;;  %v9338_v58 = vcombine.high %v1397_v54, %v1405_v33  ;;  %v1125_v60 = vld [vmem:[%s9719_s20 + $0x1720] sm:$0xff]  ;;  %v9337_v52 = vcombine.low %v1397_v54, %v1405_v33 }
 0x2b0   : > { %7440 = vmatprep.subr.bf16.mxu1 %v9130_v28  ;;  %v1133_v61 = vld [vmem:[%s9719_s20 + $0x1760] sm:$0xff] }
 0x2b1   : > { %11198 = vst [vmem:[#allocation12_spill] sm:$0xff] %v10532_v37  ;;  %7398 = vmatpush1.bf16.msra.mxu0 %v8873_v18  ;;  %v1381_v8 = vld [vmem:[%s9719_s20 + $0x1f20] sm:$0xff]  ;;  %v9066_v2 = vcombine.high %v1125_v60, %v1133_v61  ;;  %v9065_v62 = vcombine.low %v1125_v60, %v1133_v61  ;;  %v11062_v37 = vld [vmem:[%s9727_s28 + $0x8] sm:$0xff] }
 0x2b2   : > { %7399 = vmatprep.subr.bf16.mxu0 %v8858_v36  ;;  %v1389_v43 = vld [vmem:[%s9719_s20 + $0x1f60] sm:$0xff] }
 0x2b3   : > { %7441 = vmatpush1.bf16.msra.mxu1 %v9129_v34  ;;  %v9322_v3 = vcombine.high %v1381_v8, %v1389_v43  ;;  %v1109_v4 = vld [vmem:[%s9719_s20 + $0x16a0] sm:$0xff]  ;;  %v9321_v10 = vcombine.low %v1381_v8, %v1389_v43 }
 0x2b4   : > { %7442 = vmatprep.subr.bf16.mxu1 %v9114_v39  ;;  %v1117_v6 = vld [vmem:[%s9719_s20 + $0x16e0] sm:$0xff] }
 0x2b5   : > { %7400 = vmatpush1.bf16.msra.mxu0 %v8857_v1  ;;  %v1365_v9 = vld [vmem:[%s9719_s20 + $0x1ea0] sm:$0xff]  ;;  %v9050_v12 = vcombine.high %v1109_v4, %v1117_v6  ;;  %v9049_v24 = vcombine.low %v1109_v4, %v1117_v6  ;;  %v502_v4 = vld [vmem:[%s9719_s20 + $0x3a8] sm:$0xff] }
 0x2b6   : > { %7401 = vmatprep.subr.bf16.mxu0 %v8842_v16  ;;  %v1373_v11 = vld [vmem:[%s9719_s20 + $0x1ee0] sm:$0xff]  ;;  %v510_v6 = vld [vmem:[%s9719_s20 + $0x3e8] sm:$0xff] }
 0x2b7   : > { %7443 = vmatpush1.bf16.msra.mxu1 %v9113_v49  ;;  %v9306_v13 = vcombine.high %v1365_v9, %v1373_v11  ;;  %v1093_v15 = vld [vmem:[%s9719_s20 + $0x1620] sm:$0xff]  ;;  %v9305_v28 = vcombine.low %v1365_v9, %v1373_v11  ;;  %v758_v9 = vld [vmem:[%s9719_s20 + $0xba8] sm:$0xff] }
 0x2b8   : > { %7444 = vmatprep.subr.bf16.mxu1 %v9098_v50  ;;  %v1101_v17 = vld [vmem:[%s9719_s20 + $0x1660] sm:$0xff]  ;;  %v766_v11 = vld [vmem:[%s9719_s20 + $0xbe8] sm:$0xff] }
 0x2b9   : > { %7402 = vmatpush1.bf16.msra.mxu0 %v8841_v56  ;;  %v1349_v21 = vld [vmem:[%s9719_s20 + $0x1e20] sm:$0xff]  ;;  %v9034_v7 = vcombine.high %v1093_v15, %v1101_v17  ;;  %v9033_v18 = vcombine.low %v1093_v15, %v1101_v17  ;;  %v486_v15 = vld [vmem:[%s9719_s20 + $0x328] sm:$0xff] }
 0x2ba   : > { %7403 = vmatprep.subr.bf16.mxu0 %v9082_v57  ;;  %v1357_v23 = vld [vmem:[%s9719_s20 + $0x1e60] sm:$0xff]  ;;  %v494_v17 = vld [vmem:[%s9719_s20 + $0x368] sm:$0xff] }
 0x2bb   : > { %7445 = vmatpush1.bf16.msra.mxu1 %v9097_v55  ;;  %v9290_v29 = vcombine.high %v1349_v21, %v1357_v23  ;;  %v1077_v30 = vld [vmem:[%s9719_s20 + $0x15a0] sm:$0xff]  ;;  %v9289_v34 = vcombine.low %v1349_v21, %v1357_v23  ;;  %v742_v21 = vld [vmem:[%s9719_s20 + $0xb28] sm:$0xff] }
 0x2bc   : > { %7446 = vmatprep.subr.bf16.mxu1 %v9338_v58  ;;  %v1085_v47 = vld [vmem:[%s9719_s20 + $0x15e0] sm:$0xff]  ;;  %v750_v23 = vld [vmem:[%s9719_s20 + $0xb68] sm:$0xff] }
 0x2bd   : > { %7404 = vmatpush2.bf16.msra.mxu0 %v9081_v63  ;;  %v1333_v31 = vld [vmem:[%s9719_s20 + $0x1da0] sm:$0xff]  ;;  %v9018_v36 = vcombine.high %v1077_v30, %v1085_v47  ;;  %v9017_v1 = vcombine.low %v1077_v30, %v1085_v47  ;;  %v470_v30 = vld [vmem:[%s9719_s20 + $0x2a8] sm:$0xff] }
 0x2be   : > { %7405 = vmatprep.subr.bf16.mxu0 %v9066_v2  ;;  %v1341_v32 = vld [vmem:[%s9719_s20 + $0x1de0] sm:$0xff]  ;;  %v478_v47 = vld [vmem:[%s9719_s20 + $0x2e8] sm:$0xff] }
 0x2bf   : > { %7447 = vmatpush2.bf16.msra.mxu1 %v9337_v52  ;;  %v9274_v39 = vcombine.high %v1333_v31, %v1341_v32  ;;  %v1061_v27 = vld [vmem:[%s9719_s20 + $0x1520] sm:$0xff]  ;;  %v9273_v49 = vcombine.low %v1333_v31, %v1341_v32  ;;  %v726_v31 = vld [vmem:[%s9719_s20 + $0xaa8] sm:$0xff] }
 0x2c0   : > { %7448 = vmatprep.subr.bf16.mxu1 %v9322_v3  ;;  %v1069_v40 = vld [vmem:[%s9719_s20 + $0x1560] sm:$0xff]  ;;  %v734_v32 = vld [vmem:[%s9719_s20 + $0xae8] sm:$0xff] }
 0x2c1   : > { %7406 = vmatpush2.bf16.msra.mxu0 %v9065_v62  ;;  %v1317_v42 = vld [vmem:[%s9719_s20 + $0x1d20] sm:$0xff]  ;;  %v9002_v16 = vcombine.high %v1061_v27, %v1069_v40  ;;  %v9001_v56 = vcombine.low %v1061_v27, %v1069_v40  ;;  %v454_v27 = vld [vmem:[%s9719_s20 + $0x228] sm:$0xff] }
 0x2c2   : > { %7407 = vmatprep.subr.bf16.mxu0 %v9050_v12  ;;  %v1325_v44 = vld [vmem:[%s9719_s20 + $0x1d60] sm:$0xff]  ;;  %v8444_v12 = vcombine.high %v502_v4, %v510_v6  ;;  %v462_v40 = vld [vmem:[%s9719_s20 + $0x268] sm:$0xff] }
 0x2c3   : > { %7449 = vmatpush2.bf16.msra.mxu1 %v9321_v10  ;;  %v9258_v50 = vcombine.high %v1317_v42, %v1325_v44  ;;  %v1045_v51 = vld [vmem:[%s9719_s20 + $0x14a0] sm:$0xff]  ;;  %v9257_v55 = vcombine.low %v1317_v42, %v1325_v44  ;;  %v710_v42 = vld [vmem:[%s9719_s20 + $0xa28] sm:$0xff] }
 0x2c4   : > { %7450 = vmatprep.subr.bf16.mxu1 %v9306_v13  ;;  %v1053_v53 = vld [vmem:[%s9719_s20 + $0x14e0] sm:$0xff]  ;;  %v8700_v13 = vcombine.high %v758_v9, %v766_v11  ;;  %v718_v44 = vld [vmem:[%s9719_s20 + $0xa68] sm:$0xff] }
 0x2c5   : > { %7408 = vmatpush2.bf16.msra.mxu0 %v9049_v24  ;;  %v1301_v54 = vld [vmem:[%s9719_s20 + $0x1ca0] sm:$0xff]  ;;  %v8986_v57 = vcombine.high %v1045_v51, %v1053_v53  ;;  %v8985_v63 = vcombine.low %v1045_v51, %v1053_v53  ;;  %v8443_v24 = vcombine.low %v502_v4, %v510_v6  ;;  %v438_v51 = vld [vmem:[%s9719_s20 + $0x1a8] sm:$0xff] }
 0x2c6   : > { %7409 = vmatprep.subr.bf16.mxu0 %v9034_v7  ;;  %v1309_v33 = vld [vmem:[%s9719_s20 + $0x1ce0] sm:$0xff]  ;;  %v8428_v7 = vcombine.high %v486_v15, %v494_v17  ;;  %v446_v53 = vld [vmem:[%s9719_s20 + $0x1e8] sm:$0xff] }
 0x2c7   : > { %7451 = vmatpush2.bf16.msra.mxu1 %v9305_v28  ;;  %v9242_v58 = vcombine.high %v1301_v54, %v1309_v33  ;;  %v1029_v60 = vld [vmem:[%s9719_s20 + $0x1420] sm:$0xff]  ;;  %v9241_v52 = vcombine.low %v1301_v54, %v1309_v33  ;;  %v8699_v28 = vcombine.low %v758_v9, %v766_v11  ;;  %v694_v54 = vld [vmem:[%s9719_s20 + $0x9a8] sm:$0xff] }
 0x2c8   : > { %7452 = vmatprep.subr.bf16.mxu1 %v9290_v29  ;;  %v1037_v61 = vld [vmem:[%s9719_s20 + $0x1460] sm:$0xff]  ;;  %v8684_v29 = vcombine.high %v742_v21, %v750_v23  ;;  %v702_v33 = vld [vmem:[%s9719_s20 + $0x9e8] sm:$0xff] }
 0x2c9   : > { %7410 = vmatpush2.bf16.msra.mxu0 %v9033_v18  ;;  %v1285_v8 = vld [vmem:[%s9719_s20 + $0x1c20] sm:$0xff]  ;;  %v8970_v2 = vcombine.high %v1029_v60, %v1037_v61  ;;  %v8969_v62 = vcombine.low %v1029_v60, %v1037_v61  ;;  %v8427_v18 = vcombine.low %v486_v15, %v494_v17  ;;  %v422_v60 = vld [vmem:[%s9719_s20 + $0x128] sm:$0xff] }
 0x2ca   : > { %7411 = vmatprep.subr.bf16.mxu0 %v9018_v36  ;;  %v1293_v43 = vld [vmem:[%s9719_s20 + $0x1c60] sm:$0xff]  ;;  %v8412_v36 = vcombine.high %v470_v30, %v478_v47  ;;  %v430_v61 = vld [vmem:[%s9719_s20 + $0x168] sm:$0xff] }
 0x2cb   : > { %7453 = vmatpush2.bf16.msra.mxu1 %v9289_v34  ;;  %v9226_v3 = vcombine.high %v1285_v8, %v1293_v43  ;;  %v9225_v10 = vcombine.low %v1285_v8, %v1293_v43  ;;  %v8683_v34 = vcombine.low %v742_v21, %v750_v23  ;;  %v678_v8 = vld [vmem:[%s9719_s20 + $0x928] sm:$0xff] }
 0x2cc   : > { %7454 = vmatprep.subr.bf16.mxu1 %v9274_v39  ;;  %v8668_v39 = vcombine.high %v726_v31, %v734_v32  ;;  %v686_v43 = vld [vmem:[%s9719_s20 + $0x968] sm:$0xff] }
 0x2cd   : > { %7412 = vmatpush2.bf16.msra.mxu0 %v9017_v1  ;;  %v8411_v1 = vcombine.low %v470_v30, %v478_v47  ;;  %v406_v4 = vld [vmem:[%s9719_s20 + $0xa8] sm:$0xff] }
 0x2ce   : > { %7413 = vmatprep.subr.bf16.mxu0 %v9002_v16  ;;  %v8396_v16 = vcombine.high %v454_v27, %v462_v40  ;;  %v414_v6 = vld [vmem:[%s9719_s20 + $0xe8] sm:$0xff] }
 0x2cf   : > { %7455 = vmatpush2.bf16.msra.mxu1 %v9273_v49  ;;  %v8667_v49 = vcombine.low %v726_v31, %v734_v32  ;;  %v662_v9 = vld [vmem:[%s9719_s20 + $0x8a8] sm:$0xff] }
 0x2d0   : > { %7456 = vmatprep.subr.bf16.mxu1 %v9258_v50  ;;  %v8652_v50 = vcombine.high %v710_v42, %v718_v44  ;;  %v670_v11 = vld [vmem:[%s9719_s20 + $0x8e8] sm:$0xff] }
 0x2d1   : > { %7414 = vmatpush2.bf16.msra.mxu0 %v9001_v56  ;;  %v8395_v56 = vcombine.low %v454_v27, %v462_v40  ;;  %v390_v15 = vld [vmem:[%s9719_s20 + $0x28] sm:$0xff] }
 0x2d2   : > { %7415 = vmatprep.subr.bf16.mxu0 %v8986_v57  ;;  %v8380_v57 = vcombine.high %v438_v51, %v446_v53  ;;  %v398_v17 = vld [vmem:[%s9719_s20 + $0x68] sm:$0xff] }
 0x2d3   : > { %7457 = vmatpush2.bf16.msra.mxu1 %v9257_v55  ;;  %v8651_v55 = vcombine.low %v710_v42, %v718_v44  ;;  %v646_v21 = vld [vmem:[%s9719_s20 + $0x828] sm:$0xff] }
 0x2d4   : > { %7458 = vmatprep.subr.bf16.mxu1 %v9242_v58  ;;  %v8636_v58 = vcombine.high %v694_v54, %v702_v33  ;;  %v654_v23 = vld [vmem:[%s9719_s20 + $0x868] sm:$0xff] }
 0x2d5   : > { %7416 = vmatpush2.bf16.msra.mxu0 %v8985_v63  ;;  %v8379_v63 = vcombine.low %v438_v51, %v446_v53  ;;  %v630_v30 = vld [vmem:[%s9719_s20 + $0x7a8] sm:$0xff] }
 0x2d6   : > { %7417 = vmatprep.subr.bf16.mxu0 %v8970_v2  ;;  %v8364_v2 = vcombine.high %v422_v60, %v430_v61  ;;  %v638_v47 = vld [vmem:[%s9719_s20 + $0x7e8] sm:$0xff] }
 0x2d7   : > { %7459 = vmatpush2.bf16.msra.mxu1 %v9241_v52  ;;  %v8635_v52 = vcombine.low %v694_v54, %v702_v33  ;;  %v886_v31 = vld [vmem:[%s9719_s20 + $0xfa8] sm:$0xff] }
 0x2d8   : > { %7460 = vmatprep.subr.bf16.mxu1 %v9226_v3  ;;  %v8620_v3 = vcombine.high %v678_v8, %v686_v43  ;;  %v894_v32 = vld [vmem:[%s9719_s20 + $0xfe8] sm:$0xff] }
 0x2d9   : > { %7418 = vmatpush2.bf16.msra.mxu0 %v8969_v62  ;;  %v8363_v62 = vcombine.low %v422_v60, %v430_v61  ;;  %v614_v27 = vld [vmem:[%s9719_s20 + $0x728] sm:$0xff] }
 0x2da   : > { %7473 = vmatprep.subr.bf16.mxu0 %v8444_v12  ;;  %v8348_v12 = vcombine.high %v406_v4, %v414_v6  ;;  %v622_v40 = vld [vmem:[%s9719_s20 + $0x768] sm:$0xff] }
 0x2db   : > { %7461 = vmatpush2.bf16.msra.mxu1 %v9225_v10  ;;  %v8619_v10 = vcombine.low %v678_v8, %v686_v43  ;;  %v870_v42 = vld [vmem:[%s9719_s20 + $0xf28] sm:$0xff] }
 0x2dc   : > { %7516 = vmatprep.subr.bf16.mxu1 %v8700_v13  ;;  %7420 = vmatmul.mubr.bf16.vlgmr.msra.gmra.mxu0 %v9936_v45  ;;  %v8604_v13 = vcombine.high %v662_v9, %v670_v11  ;;  %v878_v44 = vld [vmem:[%s9719_s20 + $0xf68] sm:$0xff] }
 0x2dd   : > { %7474 = vmatpush1.bf16.msra.mxu0 %v8443_v24  ;;  %7505 = vmatprep.mubr.bf16.mxu0 %v9772_v59  ;;  %v8347_v24 = vcombine.low %v406_v4, %v414_v6  ;;  %v598_v51 = vld [vmem:[%s9719_s20 + $0x6a8] sm:$0xff] }
 0x2de   : > { %7463 = vmatmul.mubr.bf16.vlgmr.msra.gmra.mxu1 %v9940_v48  ;;  %7475 = vmatprep.subr.bf16.mxu0 %v8428_v7  ;;  %v8332_v7 = vcombine.high %v390_v15, %v398_v17  ;;  %v606_v53 = vld [vmem:[%s9719_s20 + $0x6e8] sm:$0xff] }
 0x2df   : > { %7517 = vmatpush1.bf16.msra.mxu1 %v8699_v28  ;;  %7548 = vmatprep.mubr.bf16.mxu1 %v9782_v0  ;;  %v8603_v28 = vcombine.low %v662_v9, %v670_v11  ;;  %v854_v54 = vld [vmem:[%s9719_s20 + $0xea8] sm:$0xff] }
 0x2e0   : > { %7518 = vmatprep.subr.bf16.mxu1 %v8684_v29  ;;  %v8588_v29 = vcombine.high %v646_v21, %v654_v23  ;;  %v862_v33 = vld [vmem:[%s9719_s20 + $0xee8] sm:$0xff] }
 0x2e1   : > { %7476 = vmatpush1.bf16.msra.mxu0 %v8427_v18  ;;  %v8331_v18 = vcombine.low %v390_v15, %v398_v17  ;;  %v582_v60 = vld [vmem:[%s9719_s20 + $0x628] sm:$0xff] }
 0x2e2   : > { %7477 = vmatprep.subr.bf16.mxu0 %v8412_v36  ;;  %v8572_v36 = vcombine.high %v630_v30, %v638_v47  ;;  %v590_v61 = vld [vmem:[%s9719_s20 + $0x668] sm:$0xff] }
 0x2e3   : > { %7519 = vmatpush1.bf16.msra.mxu1 %v8683_v34  ;;  %v8587_v34 = vcombine.low %v646_v21, %v654_v23  ;;  %v838_v8 = vld [vmem:[%s9719_s20 + $0xe28] sm:$0xff] }
 0x2e4   : > { %7520 = vmatprep.subr.bf16.mxu1 %v8668_v39  ;;  %v8828_v39 = vcombine.high %v886_v31, %v894_v32  ;;  %v846_v43 = vld [vmem:[%s9719_s20 + $0xe68] sm:$0xff] }
 0x2e5   : > { %7478 = vmatpush1.bf16.msra.mxu0 %v8411_v1  ;;  %v8571_v1 = vcombine.low %v630_v30, %v638_v47  ;;  %v566_v4 = vld [vmem:[%s9719_s20 + $0x5a8] sm:$0xff] }
 0x2e6   : > { %7479 = vmatprep.subr.bf16.mxu0 %v8396_v16  ;;  %v8556_v16 = vcombine.high %v614_v27, %v622_v40  ;;  %v574_v6 = vld [vmem:[%s9719_s20 + $0x5e8] sm:$0xff] }
 0x2e7   : > { %7521 = vmatpush1.bf16.msra.mxu1 %v8667_v49  ;;  %v8827_v49 = vcombine.low %v886_v31, %v894_v32  ;;  %v822_v9 = vld [vmem:[%s9719_s20 + $0xda8] sm:$0xff] }
 0x2e8   : > { %7522 = vmatprep.subr.bf16.mxu1 %v8652_v50  ;;  %v8812_v50 = vcombine.high %v870_v42, %v878_v44  ;;  %v830_v11 = vld [vmem:[%s9719_s20 + $0xde8] sm:$0xff] }
 0x2e9   : > { %7480 = vmatpush1.bf16.msra.mxu0 %v8395_v56  ;;  %v8555_v56 = vcombine.low %v614_v27, %v622_v40  ;;  %v550_v15 = vld [vmem:[%s9719_s20 + $0x528] sm:$0xff] }
 0x2ea   : > { %7481 = vmatprep.subr.bf16.mxu0 %v8380_v57  ;;  %v8540_v57 = vcombine.high %v598_v51, %v606_v53  ;;  %v558_v17 = vld [vmem:[%s9719_s20 + $0x568] sm:$0xff] }
 0x2eb   : > { %7523 = vmatpush1.bf16.msra.mxu1 %v8651_v55  ;;  %v8811_v55 = vcombine.low %v870_v42, %v878_v44  ;;  %v806_v21 = vld [vmem:[%s9719_s20 + $0xd28] sm:$0xff] }
 0x2ec   : > { %7524 = vmatprep.subr.bf16.mxu1 %v8636_v58  ;;  %v8796_v58 = vcombine.high %v854_v54, %v862_v33  ;;  %v814_v23 = vld [vmem:[%s9719_s20 + $0xd68] sm:$0xff] }
 0x2ed   : > { %7482 = vmatpush1.bf16.msra.mxu0 %v8379_v63  ;;  %v8539_v63 = vcombine.low %v598_v51, %v606_v53  ;;  %v534_v30 = vld [vmem:[%s9719_s20 + $0x4a8] sm:$0xff] }
 0x2ee   : > { %7483 = vmatprep.subr.bf16.mxu0 %v8364_v2  ;;  %v8524_v2 = vcombine.high %v582_v60, %v590_v61  ;;  %v542_v47 = vld [vmem:[%s9719_s20 + $0x4e8] sm:$0xff] }
 0x2ef   : > { %7525 = vmatpush1.bf16.msra.mxu1 %v8635_v52  ;;  %v8795_v52 = vcombine.low %v854_v54, %v862_v33  ;;  %v790_v31 = vld [vmem:[%s9719_s20 + $0xca8] sm:$0xff] }
 0x2f0   : > { %7526 = vmatprep.subr.bf16.mxu1 %v8620_v3  ;;  %v8780_v3 = vcombine.high %v838_v8, %v846_v43  ;;  %v798_v32 = vld [vmem:[%s9719_s20 + $0xce8] sm:$0xff] }
 0x2f1   : > { %7484 = vmatpush1.bf16.msra.mxu0 %v8363_v62  ;;  %v8523_v62 = vcombine.low %v582_v60, %v590_v61  ;;  %v518_v27 = vld [vmem:[%s9719_s20 + $0x428] sm:$0xff] }
 0x2f2   : > { %7485 = vmatprep.subr.bf16.mxu0 %v8348_v12  ;;  %v8508_v12 = vcombine.high %v566_v4, %v574_v6  ;;  %v526_v40 = vld [vmem:[%s9719_s20 + $0x468] sm:$0xff] }
 0x2f3   : > { %7527 = vmatpush1.bf16.msra.mxu1 %v8619_v10  ;;  %v8779_v10 = vcombine.low %v838_v8, %v846_v43  ;;  %v774_v42 = vld [vmem:[%s9719_s20 + $0xc28] sm:$0xff] }
 0x2f4   : > { %7528 = vmatprep.subr.bf16.mxu1 %v8604_v13  ;;  %v8764_v13 = vcombine.high %v822_v9, %v830_v11  ;;  %v782_v44 = vld [vmem:[%s9719_s20 + $0xc68] sm:$0xff] }
 0x2f5   : > { %7486 = vmatpush1.bf16.msra.mxu0 %v8347_v24  ;;  %v8507_v24 = vcombine.low %v566_v4, %v574_v6  ;;  %v1014_v51 = vld [vmem:[%s9719_s20 + $0x13a8] sm:$0xff] }
 0x2f6   : > { %7487 = vmatprep.subr.bf16.mxu0 %v8332_v7  ;;  %v8492_v7 = vcombine.high %v550_v15, %v558_v17  ;;  %v1022_v53 = vld [vmem:[%s9719_s20 + $0x13e8] sm:$0xff] }
 0x2f7   : > { %7529 = vmatpush1.bf16.msra.mxu1 %v8603_v28  ;;  %v8763_v28 = vcombine.low %v822_v9, %v830_v11  ;;  %v1270_v54 = vld [vmem:[%s9719_s20 + $0x1ba8] sm:$0xff] }
 0x2f8   : > { %7530 = vmatprep.subr.bf16.mxu1 %v8588_v29  ;;  %v8748_v29 = vcombine.high %v806_v21, %v814_v23  ;;  %v1278_v33 = vld [vmem:[%s9719_s20 + $0x1be8] sm:$0xff] }
 0x2f9   : > { %7488 = vmatpush1.bf16.msra.mxu0 %v8331_v18  ;;  %v8491_v18 = vcombine.low %v550_v15, %v558_v17  ;;  %v998_v60 = vld [vmem:[%s9719_s20 + $0x1328] sm:$0xff] }
 0x2fa   : > { %7489 = vmatprep.subr.bf16.mxu0 %v8572_v36  ;;  %v8476_v36 = vcombine.high %v534_v30, %v542_v47  ;;  %v1006_v61 = vld [vmem:[%s9719_s20 + $0x1368] sm:$0xff] }
 0x2fb   : > { %7531 = vmatpush1.bf16.msra.mxu1 %v8587_v34  ;;  %v8747_v34 = vcombine.low %v806_v21, %v814_v23  ;;  %v1254_v8 = vld [vmem:[%s9719_s20 + $0x1b28] sm:$0xff] }
 0x2fc   : > { %7532 = vmatprep.subr.bf16.mxu1 %v8828_v39  ;;  %v8732_v39 = vcombine.high %v790_v31, %v798_v32  ;;  %v1262_v43 = vld [vmem:[%s9719_s20 + $0x1b68] sm:$0xff] }
 0x2fd   : > { %7490 = vmatpush2.bf16.msra.mxu0 %v8571_v1  ;;  %v8475_v1 = vcombine.low %v534_v30, %v542_v47  ;;  %v982_v4 = vld [vmem:[%s9719_s20 + $0x12a8] sm:$0xff] }
 0x2fe   : > { %7491 = vmatprep.subr.bf16.mxu0 %v8556_v16  ;;  %v8460_v16 = vcombine.high %v518_v27, %v526_v40  ;;  %v990_v6 = vld [vmem:[%s9719_s20 + $0x12e8] sm:$0xff] }
 0x2ff   : > { %7533 = vmatpush2.bf16.msra.mxu1 %v8827_v49  ;;  %v8731_v49 = vcombine.low %v790_v31, %v798_v32  ;;  %v1238_v9 = vld [vmem:[%s9719_s20 + $0x1aa8] sm:$0xff] }
 0x300   : > { %7534 = vmatprep.subr.bf16.mxu1 %v8812_v50  ;;  %v8716_v50 = vcombine.high %v774_v42, %v782_v44  ;;  %v1246_v11 = vld [vmem:[%s9719_s20 + $0x1ae8] sm:$0xff] }
 0x301   : > { %7492 = vmatpush2.bf16.msra.mxu0 %v8555_v56  ;;  %v8459_v56 = vcombine.low %v518_v27, %v526_v40  ;;  %v966_v15 = vld [vmem:[%s9719_s20 + $0x1228] sm:$0xff] }
 0x302   : > { %7493 = vmatprep.subr.bf16.mxu0 %v8540_v57  ;;  %v8956_v57 = vcombine.high %v1014_v51, %v1022_v53  ;;  %v974_v17 = vld [vmem:[%s9719_s20 + $0x1268] sm:$0xff] }
 0x303   : > { %7535 = vmatpush2.bf16.msra.mxu1 %v8811_v55  ;;  %v8715_v55 = vcombine.low %v774_v42, %v782_v44  ;;  %v1222_v21 = vld [vmem:[%s9719_s20 + $0x1a28] sm:$0xff] }
 0x304   : > { %7536 = vmatprep.subr.bf16.mxu1 %v8796_v58  ;;  %v9212_v58 = vcombine.high %v1270_v54, %v1278_v33  ;;  %v1230_v23 = vld [vmem:[%s9719_s20 + $0x1a68] sm:$0xff] }
 0x305   : > { %7494 = vmatpush2.bf16.msra.mxu0 %v8539_v63  ;;  %v8955_v63 = vcombine.low %v1014_v51, %v1022_v53  ;;  %v950_v30 = vld [vmem:[%s9719_s20 + $0x11a8] sm:$0xff] }
 0x306   : > { %7495 = vmatprep.subr.bf16.mxu0 %v8524_v2  ;;  %v8940_v2 = vcombine.high %v998_v60, %v1006_v61  ;;  %v958_v47 = vld [vmem:[%s9719_s20 + $0x11e8] sm:$0xff] }
 0x307   : > { %7537 = vmatpush2.bf16.msra.mxu1 %v8795_v52  ;;  %v9211_v52 = vcombine.low %v1270_v54, %v1278_v33  ;;  %v1206_v31 = vld [vmem:[%s9719_s20 + $0x19a8] sm:$0xff] }
 0x308   : > { %7538 = vmatprep.subr.bf16.mxu1 %v8780_v3  ;;  %v9196_v3 = vcombine.high %v1254_v8, %v1262_v43  ;;  %v1214_v32 = vld [vmem:[%s9719_s20 + $0x19e8] sm:$0xff] }
 0x309   : > { %7496 = vmatpush2.bf16.msra.mxu0 %v8523_v62  ;;  %v8939_v62 = vcombine.low %v998_v60, %v1006_v61  ;;  %v934_v27 = vld [vmem:[%s9719_s20 + $0x1128] sm:$0xff] }
 0x30a   : > { %7497 = vmatprep.subr.bf16.mxu0 %v8508_v12  ;;  %v8924_v12 = vcombine.high %v982_v4, %v990_v6  ;;  %v942_v40 = vld [vmem:[%s9719_s20 + $0x1168] sm:$0xff] }
 0x30b   : > { %7539 = vmatpush2.bf16.msra.mxu1 %v8779_v10  ;;  %v9195_v10 = vcombine.low %v1254_v8, %v1262_v43  ;;  %v1190_v42 = vld [vmem:[%s9719_s20 + $0x1928] sm:$0xff] }
 0x30c   : > { %7540 = vmatprep.subr.bf16.mxu1 %v8764_v13  ;;  %v9180_v13 = vcombine.high %v1238_v9, %v1246_v11  ;;  %v1198_v44 = vld [vmem:[%s9719_s20 + $0x1968] sm:$0xff] }
 0x30d   : > { %7498 = vmatpush2.bf16.msra.mxu0 %v8507_v24  ;;  %v8923_v24 = vcombine.low %v982_v4, %v990_v6  ;;  %v918_v51 = vld [vmem:[%s9719_s20 + $0x10a8] sm:$0xff] }
 0x30e   : > { %7499 = vmatprep.subr.bf16.mxu0 %v8492_v7  ;;  %v8908_v7 = vcombine.high %v966_v15, %v974_v17  ;;  %v926_v53 = vld [vmem:[%s9719_s20 + $0x10e8] sm:$0xff] }
 0x30f   : > { %7541 = vmatpush2.bf16.msra.mxu1 %v8763_v28  ;;  %v9179_v28 = vcombine.low %v1238_v9, %v1246_v11  ;;  %v1174_v54 = vld [vmem:[%s9719_s20 + $0x18a8] sm:$0xff] }
 0x310   : > { %7542 = vmatprep.subr.bf16.mxu1 %v8748_v29  ;;  %v9164_v29 = vcombine.high %v1222_v21, %v1230_v23  ;;  %v1182_v33 = vld [vmem:[%s9719_s20 + $0x18e8] sm:$0xff] }
 0x311   : > { %7500 = vmatpush2.bf16.msra.mxu0 %v8491_v18  ;;  %v8907_v18 = vcombine.low %v966_v15, %v974_v17  ;;  %v902_v60 = vld [vmem:[%s9719_s20 + $0x1028] sm:$0xff] }
 0x312   : > { %7501 = vmatprep.subr.bf16.mxu0 %v8476_v36  ;;  %v8892_v36 = vcombine.high %v950_v30, %v958_v47  ;;  %v910_v61 = vld [vmem:[%s9719_s20 + $0x1068] sm:$0xff] }
 0x313   : > { %7543 = vmatpush2.bf16.msra.mxu1 %v8747_v34  ;;  %v9163_v34 = vcombine.low %v1222_v21, %v1230_v23  ;;  %v1158_v8 = vld [vmem:[%s9719_s20 + $0x1828] sm:$0xff] }
 0x314   : > { %7544 = vmatprep.subr.bf16.mxu1 %v8732_v39  ;;  %v9148_v39 = vcombine.high %v1206_v31, %v1214_v32  ;;  %v1166_v43 = vld [vmem:[%s9719_s20 + $0x1868] sm:$0xff] }
 0x315   : > { %7502 = vmatpush2.bf16.msra.mxu0 %v8475_v1  ;;  %v8891_v1 = vcombine.low %v950_v30, %v958_v47  ;;  %v1142_v4 = vld [vmem:[%s9719_s20 + $0x17a8] sm:$0xff] }
 0x316   : > { %7503 = vmatprep.subr.bf16.mxu0 %v8460_v16  ;;  %v8876_v16 = vcombine.high %v934_v27, %v942_v40  ;;  %v1150_v6 = vld [vmem:[%s9719_s20 + $0x17e8] sm:$0xff] }
 0x317   : > { %7545 = vmatpush2.bf16.msra.mxu1 %v8731_v49  ;;  %v9147_v49 = vcombine.low %v1206_v31, %v1214_v32  ;;  %v1398_v9 = vld [vmem:[%s9719_s20 + $0x1fa8] sm:$0xff] }
 0x318   : > { %7546 = vmatprep.subr.bf16.mxu1 %v8716_v50  ;;  %v9132_v50 = vcombine.high %v1190_v42, %v1198_v44  ;;  %v1406_v11 = vld [vmem:[%s9719_s20 + $0x1fe8] sm:$0xff] }
 0x319   : > { %7504 = vmatpush2.bf16.msra.mxu0 %v8459_v56  ;;  %v8875_v56 = vcombine.low %v934_v27, %v942_v40  ;;  %v1126_v15 = vld [vmem:[%s9719_s20 + $0x1728] sm:$0xff] }
 0x31a   : > { %7559 = vmatprep.subr.bf16.mxu0 %v8956_v57  ;;  %v8860_v57 = vcombine.high %v918_v51, %v926_v53  ;;  %v1134_v17 = vld [vmem:[%s9719_s20 + $0x1768] sm:$0xff] }
 0x31b   : > { %7547 = vmatpush2.bf16.msra.mxu1 %v8715_v55  ;;  %v9131_v55 = vcombine.low %v1190_v42, %v1198_v44  ;;  %v1382_v21 = vld [vmem:[%s9719_s20 + $0x1f28] sm:$0xff] }
 0x31c   : > { %7602 = vmatprep.subr.bf16.mxu1 %v9212_v58  ;;  %7506 = vmatmul.mubr.bf16.vlgmr.msra.gmra.mxu0 %v9837_v22  ;;  %v9116_v58 = vcombine.high %v1174_v54, %v1182_v33  ;;  %v1390_v23 = vld [vmem:[%s9719_s20 + $0x1f68] sm:$0xff] }
 0x31d   : > { %7560 = vmatpush1.bf16.msra.mxu0 %v8955_v63  ;;  %7591 = vmatprep.mubr.bf16.mxu0 %v9856_v35  ;;  %v8859_v63 = vcombine.low %v918_v51, %v926_v53  ;;  %v1110_v30 = vld [vmem:[%s9719_s20 + $0x16a8] sm:$0xff] }
 0x31e   : > { %7549 = vmatmul.mubr.bf16.vlgmr.msra.gmra.mxu1 %v9846_v26  ;;  %7561 = vmatprep.subr.bf16.mxu0 %v8940_v2  ;;  %v8844_v2 = vcombine.high %v902_v60, %v910_v61  ;;  %v1118_v47 = vld [vmem:[%s9719_s20 + $0x16e8] sm:$0xff] }
 0x31f   : > { %7603 = vmatpush1.bf16.msra.mxu1 %v9211_v52  ;;  %7634 = vmatprep.mubr.bf16.mxu1 %v9861_v38  ;;  %v9115_v52 = vcombine.low %v1174_v54, %v1182_v33  ;;  %v1366_v31 = vld [vmem:[%s9719_s20 + $0x1ea8] sm:$0xff] }
 0x320   : > { %7604 = vmatprep.subr.bf16.mxu1 %v9196_v3  ;;  %v9100_v3 = vcombine.high %v1158_v8, %v1166_v43  ;;  %v1374_v32 = vld [vmem:[%s9719_s20 + $0x1ee8] sm:$0xff] }
 0x321   : > { %7562 = vmatpush1.bf16.msra.mxu0 %v8939_v62  ;;  %v8843_v62 = vcombine.low %v902_v60, %v910_v61  ;;  %v1094_v27 = vld [vmem:[%s9719_s20 + $0x1628] sm:$0xff] }
 0x322   : > { %7563 = vmatprep.subr.bf16.mxu0 %v8924_v12  ;;  %v9084_v12 = vcombine.high %v1142_v4, %v1150_v6  ;;  %v1102_v40 = vld [vmem:[%s9719_s20 + $0x1668] sm:$0xff] }
 0x323   : > { %7605 = vmatpush1.bf16.msra.mxu1 %v9195_v10  ;;  %v9099_v10 = vcombine.low %v1158_v8, %v1166_v43  ;;  %v1350_v42 = vld [vmem:[%s9719_s20 + $0x1e28] sm:$0xff] }
 0x324   : > { %7606 = vmatprep.subr.bf16.mxu1 %v9180_v13  ;;  %v9340_v13 = vcombine.high %v1398_v9, %v1406_v11  ;;  %v1358_v44 = vld [vmem:[%s9719_s20 + $0x1e68] sm:$0xff] }
 0x325   : > { %7564 = vmatpush1.bf16.msra.mxu0 %v8923_v24  ;;  %v9083_v24 = vcombine.low %v1142_v4, %v1150_v6  ;;  %v1078_v51 = vld [vmem:[%s9719_s20 + $0x15a8] sm:$0xff] }
 0x326   : > { %7565 = vmatprep.subr.bf16.mxu0 %v8908_v7  ;;  %v9068_v7 = vcombine.high %v1126_v15, %v1134_v17  ;;  %v1086_v53 = vld [vmem:[%s9719_s20 + $0x15e8] sm:$0xff] }
 0x327   : > { %7607 = vmatpush1.bf16.msra.mxu1 %v9179_v28  ;;  %v9339_v28 = vcombine.low %v1398_v9, %v1406_v11  ;;  %v1334_v54 = vld [vmem:[%s9719_s20 + $0x1da8] sm:$0xff] }
 0x328   : > { %7608 = vmatprep.subr.bf16.mxu1 %v9164_v29  ;;  %v9324_v29 = vcombine.high %v1382_v21, %v1390_v23  ;;  %v1342_v33 = vld [vmem:[%s9719_s20 + $0x1de8] sm:$0xff] }
 0x329   : > { %7566 = vmatpush1.bf16.msra.mxu0 %v8907_v18  ;;  %v9067_v18 = vcombine.low %v1126_v15, %v1134_v17  ;;  %v1062_v60 = vld [vmem:[%s9719_s20 + $0x1528] sm:$0xff] }
 0x32a   : > { %7567 = vmatprep.subr.bf16.mxu0 %v8892_v36  ;;  %v9052_v36 = vcombine.high %v1110_v30, %v1118_v47  ;;  %v1070_v61 = vld [vmem:[%s9719_s20 + $0x1568] sm:$0xff] }
 0x32b   : > { %7609 = vmatpush1.bf16.msra.mxu1 %v9163_v34  ;;  %v9323_v34 = vcombine.low %v1382_v21, %v1390_v23  ;;  %v1318_v8 = vld [vmem:[%s9719_s20 + $0x1d28] sm:$0xff] }
 0x32c   : > { %7610 = vmatprep.subr.bf16.mxu1 %v9148_v39  ;;  %v9308_v39 = vcombine.high %v1366_v31, %v1374_v32  ;;  %v1326_v43 = vld [vmem:[%s9719_s20 + $0x1d68] sm:$0xff] }
 0x32d   : > { %7568 = vmatpush1.bf16.msra.mxu0 %v8891_v1  ;;  %v9051_v1 = vcombine.low %v1110_v30, %v1118_v47  ;;  %v1046_v4 = vld [vmem:[%s9719_s20 + $0x14a8] sm:$0xff]  ;;  %v503_v30 = vld [vmem:[%s9719_s20 + $0x3b0] sm:$0xff] }
 0x32e   : > { %7569 = vmatprep.subr.bf16.mxu0 %v8876_v16  ;;  %v9036_v16 = vcombine.high %v1094_v27, %v1102_v40  ;;  %v1054_v6 = vld [vmem:[%s9719_s20 + $0x14e8] sm:$0xff]  ;;  %v511_v47 = vld [vmem:[%s9719_s20 + $0x3f0] sm:$0xff] }
 0x32f   : > { %7611 = vmatpush1.bf16.msra.mxu1 %v9147_v49  ;;  %v9307_v49 = vcombine.low %v1366_v31, %v1374_v32  ;;  %v1302_v9 = vld [vmem:[%s9719_s20 + $0x1ca8] sm:$0xff]  ;;  %v759_v31 = vld [vmem:[%s9719_s20 + $0xbb0] sm:$0xff] }
 0x330   : > { %7612 = vmatprep.subr.bf16.mxu1 %v9132_v50  ;;  %v9292_v50 = vcombine.high %v1350_v42, %v1358_v44  ;;  %v1310_v11 = vld [vmem:[%s9719_s20 + $0x1ce8] sm:$0xff]  ;;  %v767_v32 = vld [vmem:[%s9719_s20 + $0xbf0] sm:$0xff] }
 0x331   : > { %7570 = vmatpush1.bf16.msra.mxu0 %v8875_v56  ;;  %v9035_v56 = vcombine.low %v1094_v27, %v1102_v40  ;;  %v1030_v15 = vld [vmem:[%s9719_s20 + $0x1428] sm:$0xff]  ;;  %v487_v27 = vld [vmem:[%s9719_s20 + $0x330] sm:$0xff] }
 0x332   : > { %7571 = vmatprep.subr.bf16.mxu0 %v8860_v57  ;;  %v9020_v57 = vcombine.high %v1078_v51, %v1086_v53  ;;  %v1038_v17 = vld [vmem:[%s9719_s20 + $0x1468] sm:$0xff]  ;;  %v495_v40 = vld [vmem:[%s9719_s20 + $0x370] sm:$0xff] }
 0x333   : > { %7613 = vmatpush1.bf16.msra.mxu1 %v9131_v55  ;;  %v9291_v55 = vcombine.low %v1350_v42, %v1358_v44  ;;  %v1286_v21 = vld [vmem:[%s9719_s20 + $0x1c28] sm:$0xff]  ;;  %v743_v42 = vld [vmem:[%s9719_s20 + $0xb30] sm:$0xff] }
 0x334   : > { %7614 = vmatprep.subr.bf16.mxu1 %v9116_v58  ;;  %v9276_v58 = vcombine.high %v1334_v54, %v1342_v33  ;;  %v1294_v23 = vld [vmem:[%s9719_s20 + $0x1c68] sm:$0xff]  ;;  %v751_v44 = vld [vmem:[%s9719_s20 + $0xb70] sm:$0xff] }
 0x335   : > { %7572 = vmatpush1.bf16.msra.mxu0 %v8859_v63  ;;  %v9019_v63 = vcombine.low %v1078_v51, %v1086_v53  ;;  %v471_v51 = vld [vmem:[%s9719_s20 + $0x2b0] sm:$0xff] }
 0x336   : > { %7573 = vmatprep.subr.bf16.mxu0 %v8844_v2  ;;  %v9004_v2 = vcombine.high %v1062_v60, %v1070_v61  ;;  %v479_v53 = vld [vmem:[%s9719_s20 + $0x2f0] sm:$0xff] }
 0x337   : > { %7615 = vmatpush1.bf16.msra.mxu1 %v9115_v52  ;;  %v9275_v52 = vcombine.low %v1334_v54, %v1342_v33  ;;  %v727_v54 = vld [vmem:[%s9719_s20 + $0xab0] sm:$0xff] }
 0x338   : > { %7616 = vmatprep.subr.bf16.mxu1 %v9100_v3  ;;  %v9260_v3 = vcombine.high %v1318_v8, %v1326_v43  ;;  %v735_v33 = vld [vmem:[%s9719_s20 + $0xaf0] sm:$0xff] }
 0x339   : > { %7574 = vmatpush1.bf16.msra.mxu0 %v8843_v62  ;;  %v9003_v62 = vcombine.low %v1062_v60, %v1070_v61  ;;  %v455_v60 = vld [vmem:[%s9719_s20 + $0x230] sm:$0xff] }
 0x33a   : > { %7575 = vmatprep.subr.bf16.mxu0 %v9084_v12  ;;  %v8988_v12 = vcombine.high %v1046_v4, %v1054_v6  ;;  %v463_v61 = vld [vmem:[%s9719_s20 + $0x270] sm:$0xff] }
 0x33b   : > { %7617 = vmatpush1.bf16.msra.mxu1 %v9099_v10  ;;  %v9259_v10 = vcombine.low %v1318_v8, %v1326_v43  ;;  %v711_v8 = vld [vmem:[%s9719_s20 + $0xa30] sm:$0xff] }
 0x33c   : > { %7618 = vmatprep.subr.bf16.mxu1 %v9340_v13  ;;  %v9244_v13 = vcombine.high %v1302_v9, %v1310_v11  ;;  %v719_v43 = vld [vmem:[%s9719_s20 + $0xa70] sm:$0xff] }
 0x33d   : > { %7576 = vmatpush2.bf16.msra.mxu0 %v9083_v24  ;;  %v8987_v24 = vcombine.low %v1046_v4, %v1054_v6  ;;  %v439_v4 = vld [vmem:[%s9719_s20 + $0x1b0] sm:$0xff] }
 0x33e   : > { %7577 = vmatprep.subr.bf16.mxu0 %v9068_v7  ;;  %v8972_v7 = vcombine.high %v1030_v15, %v1038_v17  ;;  %v447_v6 = vld [vmem:[%s9719_s20 + $0x1f0] sm:$0xff] }
 0x33f   : > { %7619 = vmatpush2.bf16.msra.mxu1 %v9339_v28  ;;  %v9243_v28 = vcombine.low %v1302_v9, %v1310_v11  ;;  %v695_v9 = vld [vmem:[%s9719_s20 + $0x9b0] sm:$0xff] }
 0x340   : > { %7620 = vmatprep.subr.bf16.mxu1 %v9324_v29  ;;  %v9228_v29 = vcombine.high %v1286_v21, %v1294_v23  ;;  %v703_v11 = vld [vmem:[%s9719_s20 + $0x9f0] sm:$0xff] }
 0x341   : > { %7578 = vmatpush2.bf16.msra.mxu0 %v9067_v18  ;;  %v8971_v18 = vcombine.low %v1030_v15, %v1038_v17  ;;  %v423_v15 = vld [vmem:[%s9719_s20 + $0x130] sm:$0xff] }
 0x342   : > { %7579 = vmatprep.subr.bf16.mxu0 %v9052_v36  ;;  %v8446_v36 = vcombine.high %v503_v30, %v511_v47  ;;  %v431_v17 = vld [vmem:[%s9719_s20 + $0x170] sm:$0xff] }
 0x343   : > { %7621 = vmatpush2.bf16.msra.mxu1 %v9323_v34  ;;  %v9227_v34 = vcombine.low %v1286_v21, %v1294_v23  ;;  %v679_v21 = vld [vmem:[%s9719_s20 + $0x930] sm:$0xff] }
 0x344   : > { %7622 = vmatprep.subr.bf16.mxu1 %v9308_v39  ;;  %v8702_v39 = vcombine.high %v759_v31, %v767_v32  ;;  %v687_v23 = vld [vmem:[%s9719_s20 + $0x970] sm:$0xff] }
 0x345   : > { %7580 = vmatpush2.bf16.msra.mxu0 %v9051_v1  ;;  %v8445_v1 = vcombine.low %v503_v30, %v511_v47  ;;  %v407_v30 = vld [vmem:[%s9719_s20 + $0xb0] sm:$0xff] }
 0x346   : > { %7581 = vmatprep.subr.bf16.mxu0 %v9036_v16  ;;  %v8430_v16 = vcombine.high %v487_v27, %v495_v40  ;;  %v415_v47 = vld [vmem:[%s9719_s20 + $0xf0] sm:$0xff] }
 0x347   : > { %7623 = vmatpush2.bf16.msra.mxu1 %v9307_v49  ;;  %v8701_v49 = vcombine.low %v759_v31, %v767_v32  ;;  %v663_v31 = vld [vmem:[%s9719_s20 + $0x8b0] sm:$0xff] }
 0x348   : > { %7624 = vmatprep.subr.bf16.mxu1 %v9292_v50  ;;  %v8686_v50 = vcombine.high %v743_v42, %v751_v44  ;;  %v671_v32 = vld [vmem:[%s9719_s20 + $0x8f0] sm:$0xff] }
 0x349   : > { %7582 = vmatpush2.bf16.msra.mxu0 %v9035_v56  ;;  %v8429_v56 = vcombine.low %v487_v27, %v495_v40  ;;  %v391_v27 = vld [vmem:[%s9719_s20 + $0x30] sm:$0xff] }
 0x34a   : > { %7583 = vmatprep.subr.bf16.mxu0 %v9020_v57  ;;  %v8414_v57 = vcombine.high %v471_v51, %v479_v53  ;;  %v399_v40 = vld [vmem:[%s9719_s20 + $0x70] sm:$0xff] }
 0x34b   : > { %7625 = vmatpush2.bf16.msra.mxu1 %v9291_v55  ;;  %v8685_v55 = vcombine.low %v743_v42, %v751_v44  ;;  %v647_v42 = vld [vmem:[%s9719_s20 + $0x830] sm:$0xff] }
 0x34c   : > { %7626 = vmatprep.subr.bf16.mxu1 %v9276_v58  ;;  %v8670_v58 = vcombine.high %v727_v54, %v735_v33  ;;  %v655_v44 = vld [vmem:[%s9719_s20 + $0x870] sm:$0xff] }
 0x34d   : > { %7584 = vmatpush2.bf16.msra.mxu0 %v9019_v63  ;;  %v8413_v63 = vcombine.low %v471_v51, %v479_v53  ;;  %v631_v51 = vld [vmem:[%s9719_s20 + $0x7b0] sm:$0xff] }
 0x34e   : > { %7585 = vmatprep.subr.bf16.mxu0 %v9004_v2  ;;  %v8398_v2 = vcombine.high %v455_v60, %v463_v61  ;;  %v639_v53 = vld [vmem:[%s9719_s20 + $0x7f0] sm:$0xff] }
 0x34f   : > { %7627 = vmatpush2.bf16.msra.mxu1 %v9275_v52  ;;  %v8669_v52 = vcombine.low %v727_v54, %v735_v33  ;;  %v887_v54 = vld [vmem:[%s9719_s20 + $0xfb0] sm:$0xff] }
 0x350   : > { %7628 = vmatprep.subr.bf16.mxu1 %v9260_v3  ;;  %v8654_v3 = vcombine.high %v711_v8, %v719_v43  ;;  %v895_v33 = vld [vmem:[%s9719_s20 + $0xff0] sm:$0xff] }
 0x351   : > { %7586 = vmatpush2.bf16.msra.mxu0 %v9003_v62  ;;  %v8397_v62 = vcombine.low %v455_v60, %v463_v61  ;;  %v615_v60 = vld [vmem:[%s9719_s20 + $0x730] sm:$0xff] }
 0x352   : > { %7587 = vmatprep.subr.bf16.mxu0 %v8988_v12  ;;  %v8382_v12 = vcombine.high %v439_v4, %v447_v6  ;;  %v623_v61 = vld [vmem:[%s9719_s20 + $0x770] sm:$0xff] }
 0x353   : > { %7629 = vmatpush2.bf16.msra.mxu1 %v9259_v10  ;;  %v8653_v10 = vcombine.low %v711_v8, %v719_v43  ;;  %v871_v8 = vld [vmem:[%s9719_s20 + $0xf30] sm:$0xff] }
 0x354   : > { %7630 = vmatprep.subr.bf16.mxu1 %v9244_v13  ;;  %v8638_v13 = vcombine.high %v695_v9, %v703_v11  ;;  %v879_v43 = vld [vmem:[%s9719_s20 + $0xf70] sm:$0xff] }
 0x355   : > { %7588 = vmatpush2.bf16.msra.mxu0 %v8987_v24  ;;  %v8381_v24 = vcombine.low %v439_v4, %v447_v6  ;;  %v599_v4 = vld [vmem:[%s9719_s20 + $0x6b0] sm:$0xff] }
 0x356   : > { %7589 = vmatprep.subr.bf16.mxu0 %v8972_v7  ;;  %v8366_v7 = vcombine.high %v423_v15, %v431_v17  ;;  %v607_v6 = vld [vmem:[%s9719_s20 + $0x6f0] sm:$0xff] }
 0x357   : > { %7631 = vmatpush2.bf16.msra.mxu1 %v9243_v28  ;;  %v8637_v28 = vcombine.low %v695_v9, %v703_v11  ;;  %v855_v9 = vld [vmem:[%s9719_s20 + $0xeb0] sm:$0xff] }
 0x358   : > { %7632 = vmatprep.subr.bf16.mxu1 %v9228_v29  ;;  %v8622_v29 = vcombine.high %v679_v21, %v687_v23  ;;  %v863_v11 = vld [vmem:[%s9719_s20 + $0xef0] sm:$0xff] }
 0x359   : > { %7590 = vmatpush2.bf16.msra.mxu0 %v8971_v18  ;;  %v8365_v18 = vcombine.low %v423_v15, %v431_v17  ;;  %v583_v15 = vld [vmem:[%s9719_s20 + $0x630] sm:$0xff] }
 0x35a   : > { %7645 = vmatprep.subr.bf16.mxu0 %v8446_v36  ;;  %v8350_v36 = vcombine.high %v407_v30, %v415_v47  ;;  %v591_v17 = vld [vmem:[%s9719_s20 + $0x670] sm:$0xff] }
 0x35b   : > { %7633 = vmatpush2.bf16.msra.mxu1 %v9227_v34  ;;  %v8621_v34 = vcombine.low %v679_v21, %v687_v23  ;;  %v839_v21 = vld [vmem:[%s9719_s20 + $0xe30] sm:$0xff] }
 0x35c   : > { %7688 = vmatprep.subr.bf16.mxu1 %v8702_v39  ;;  %7592 = vmatmul.mubr.bf16.vlgmr.msra.gmra.mxu0 %v9936_v45  ;;  %v8606_v39 = vcombine.high %v663_v31, %v671_v32  ;;  %v847_v23 = vld [vmem:[%s9719_s20 + $0xe70] sm:$0xff] }
 0x35d   : > { %7646 = vmatpush1.bf16.msra.mxu0 %v8445_v1  ;;  %7677 = vmatprep.mubr.bf16.mxu0 %v9772_v59  ;;  %v8349_v1 = vcombine.low %v407_v30, %v415_v47  ;;  %v567_v30 = vld [vmem:[%s9719_s20 + $0x5b0] sm:$0xff] }
 0x35e   : > { %7635 = vmatmul.mubr.bf16.vlgmr.msra.gmra.mxu1 %v9940_v48  ;;  %7647 = vmatprep.subr.bf16.mxu0 %v8430_v16  ;;  %v8334_v16 = vcombine.high %v391_v27, %v399_v40  ;;  %v575_v47 = vld [vmem:[%s9719_s20 + $0x5f0] sm:$0xff] }
 0x35f   : > { %7689 = vmatpush1.bf16.msra.mxu1 %v8701_v49  ;;  %7720 = vmatprep.mubr.bf16.mxu1 %v9782_v0  ;;  %v8605_v49 = vcombine.low %v663_v31, %v671_v32  ;;  %v823_v31 = vld [vmem:[%s9719_s20 + $0xdb0] sm:$0xff] }
 0x360   : > { %7690 = vmatprep.subr.bf16.mxu1 %v8686_v50  ;;  %v8590_v50 = vcombine.high %v647_v42, %v655_v44  ;;  %v831_v32 = vld [vmem:[%s9719_s20 + $0xdf0] sm:$0xff] }
 0x361   : > { %7648 = vmatpush1.bf16.msra.mxu0 %v8429_v56  ;;  %v8333_v56 = vcombine.low %v391_v27, %v399_v40  ;;  %v551_v27 = vld [vmem:[%s9719_s20 + $0x530] sm:$0xff] }
 0x362   : > { %7649 = vmatprep.subr.bf16.mxu0 %v8414_v57  ;;  %v8574_v57 = vcombine.high %v631_v51, %v639_v53  ;;  %v559_v40 = vld [vmem:[%s9719_s20 + $0x570] sm:$0xff] }
 0x363   : > { %7691 = vmatpush1.bf16.msra.mxu1 %v8685_v55  ;;  %v8589_v55 = vcombine.low %v647_v42, %v655_v44  ;;  %v807_v42 = vld [vmem:[%s9719_s20 + $0xd30] sm:$0xff] }
 0x364   : > { %7692 = vmatprep.subr.bf16.mxu1 %v8670_v58  ;;  %v8830_v58 = vcombine.high %v887_v54, %v895_v33  ;;  %v815_v44 = vld [vmem:[%s9719_s20 + $0xd70] sm:$0xff] }
 0x365   : > { %7650 = vmatpush1.bf16.msra.mxu0 %v8413_v63  ;;  %v8573_v63 = vcombine.low %v631_v51, %v639_v53  ;;  %v535_v51 = vld [vmem:[%s9719_s20 + $0x4b0] sm:$0xff] }
 0x366   : > { %7651 = vmatprep.subr.bf16.mxu0 %v8398_v2  ;;  %v8558_v2 = vcombine.high %v615_v60, %v623_v61  ;;  %v543_v53 = vld [vmem:[%s9719_s20 + $0x4f0] sm:$0xff] }
 0x367   : > { %7693 = vmatpush1.bf16.msra.mxu1 %v8669_v52  ;;  %v8829_v52 = vcombine.low %v887_v54, %v895_v33  ;;  %v791_v54 = vld [vmem:[%s9719_s20 + $0xcb0] sm:$0xff] }
 0x368   : > { %7694 = vmatprep.subr.bf16.mxu1 %v8654_v3  ;;  %v8814_v3 = vcombine.high %v871_v8, %v879_v43  ;;  %v799_v33 = vld [vmem:[%s9719_s20 + $0xcf0] sm:$0xff] }
 0x369   : > { %7652 = vmatpush1.bf16.msra.mxu0 %v8397_v62  ;;  %v8557_v62 = vcombine.low %v615_v60, %v623_v61  ;;  %v519_v60 = vld [vmem:[%s9719_s20 + $0x430] sm:$0xff] }
 0x36a   : > { %7653 = vmatprep.subr.bf16.mxu0 %v8382_v12  ;;  %v8542_v12 = vcombine.high %v599_v4, %v607_v6  ;;  %v527_v61 = vld [vmem:[%s9719_s20 + $0x470] sm:$0xff] }
 0x36b   : > { %7695 = vmatpush1.bf16.msra.mxu1 %v8653_v10  ;;  %v8813_v10 = vcombine.low %v871_v8, %v879_v43  ;;  %v775_v8 = vld [vmem:[%s9719_s20 + $0xc30] sm:$0xff] }
 0x36c   : > { %7696 = vmatprep.subr.bf16.mxu1 %v8638_v13  ;;  %v8798_v13 = vcombine.high %v855_v9, %v863_v11  ;;  %v783_v43 = vld [vmem:[%s9719_s20 + $0xc70] sm:$0xff] }
 0x36d   : > { %7654 = vmatpush1.bf16.msra.mxu0 %v8381_v24  ;;  %v8541_v24 = vcombine.low %v599_v4, %v607_v6  ;;  %v1015_v4 = vld [vmem:[%s9719_s20 + $0x13b0] sm:$0xff] }
 0x36e   : > { %7655 = vmatprep.subr.bf16.mxu0 %v8366_v7  ;;  %v8526_v7 = vcombine.high %v583_v15, %v591_v17  ;;  %v1023_v6 = vld [vmem:[%s9719_s20 + $0x13f0] sm:$0xff] }
 0x36f   : > { %7697 = vmatpush1.bf16.msra.mxu1 %v8637_v28  ;;  %v8797_v28 = vcombine.low %v855_v9, %v863_v11  ;;  %v1271_v9 = vld [vmem:[%s9719_s20 + $0x1bb0] sm:$0xff] }
 0x370   : > { %7698 = vmatprep.subr.bf16.mxu1 %v8622_v29  ;;  %v8782_v29 = vcombine.high %v839_v21, %v847_v23  ;;  %v1279_v11 = vld [vmem:[%s9719_s20 + $0x1bf0] sm:$0xff] }
 0x371   : > { %7656 = vmatpush1.bf16.msra.mxu0 %v8365_v18  ;;  %v8525_v18 = vcombine.low %v583_v15, %v591_v17  ;;  %v999_v15 = vld [vmem:[%s9719_s20 + $0x1330] sm:$0xff] }
 0x372   : > { %7657 = vmatprep.subr.bf16.mxu0 %v8350_v36  ;;  %v8510_v36 = vcombine.high %v567_v30, %v575_v47  ;;  %v1007_v17 = vld [vmem:[%s9719_s20 + $0x1370] sm:$0xff] }
 0x373   : > { %7699 = vmatpush1.bf16.msra.mxu1 %v8621_v34  ;;  %v8781_v34 = vcombine.low %v839_v21, %v847_v23  ;;  %v1255_v21 = vld [vmem:[%s9719_s20 + $0x1b30] sm:$0xff] }
 0x374   : > { %7700 = vmatprep.subr.bf16.mxu1 %v8606_v39  ;;  %v8766_v39 = vcombine.high %v823_v31, %v831_v32  ;;  %v1263_v23 = vld [vmem:[%s9719_s20 + $0x1b70] sm:$0xff] }
 0x375   : > { %7658 = vmatpush1.bf16.msra.mxu0 %v8349_v1  ;;  %v8509_v1 = vcombine.low %v567_v30, %v575_v47  ;;  %v983_v30 = vld [vmem:[%s9719_s20 + $0x12b0] sm:$0xff] }
 0x376   : > { %7659 = vmatprep.subr.bf16.mxu0 %v8334_v16  ;;  %v8494_v16 = vcombine.high %v551_v27, %v559_v40  ;;  %v991_v47 = vld [vmem:[%s9719_s20 + $0x12f0] sm:$0xff] }
 0x377   : > { %7701 = vmatpush1.bf16.msra.mxu1 %v8605_v49  ;;  %v8765_v49 = vcombine.low %v823_v31, %v831_v32  ;;  %v1239_v31 = vld [vmem:[%s9719_s20 + $0x1ab0] sm:$0xff] }
 0x378   : > { %7702 = vmatprep.subr.bf16.mxu1 %v8590_v50  ;;  %v8750_v50 = vcombine.high %v807_v42, %v815_v44  ;;  %v1247_v32 = vld [vmem:[%s9719_s20 + $0x1af0] sm:$0xff] }
 0x379   : > { %7660 = vmatpush1.bf16.msra.mxu0 %v8333_v56  ;;  %v8493_v56 = vcombine.low %v551_v27, %v559_v40  ;;  %v967_v27 = vld [vmem:[%s9719_s20 + $0x1230] sm:$0xff] }
 0x37a   : > { %7661 = vmatprep.subr.bf16.mxu0 %v8574_v57  ;;  %v8478_v57 = vcombine.high %v535_v51, %v543_v53  ;;  %v975_v40 = vld [vmem:[%s9719_s20 + $0x1270] sm:$0xff] }
 0x37b   : > { %7703 = vmatpush1.bf16.msra.mxu1 %v8589_v55  ;;  %v8749_v55 = vcombine.low %v807_v42, %v815_v44  ;;  %v1223_v42 = vld [vmem:[%s9719_s20 + $0x1a30] sm:$0xff] }
 0x37c   : > { %7704 = vmatprep.subr.bf16.mxu1 %v8830_v58  ;;  %v8734_v58 = vcombine.high %v791_v54, %v799_v33  ;;  %v1231_v44 = vld [vmem:[%s9719_s20 + $0x1a70] sm:$0xff] }
 0x37d   : > { %7662 = vmatpush2.bf16.msra.mxu0 %v8573_v63  ;;  %v8477_v63 = vcombine.low %v535_v51, %v543_v53  ;;  %v951_v51 = vld [vmem:[%s9719_s20 + $0x11b0] sm:$0xff] }
 0x37e   : > { %7663 = vmatprep.subr.bf16.mxu0 %v8558_v2  ;;  %v8462_v2 = vcombine.high %v519_v60, %v527_v61  ;;  %v959_v53 = vld [vmem:[%s9719_s20 + $0x11f0] sm:$0xff] }
 0x37f   : > { %7705 = vmatpush2.bf16.msra.mxu1 %v8829_v52  ;;  %v8733_v52 = vcombine.low %v791_v54, %v799_v33  ;;  %v1207_v54 = vld [vmem:[%s9719_s20 + $0x19b0] sm:$0xff] }
 0x380   : > { %7706 = vmatprep.subr.bf16.mxu1 %v8814_v3  ;;  %v8718_v3 = vcombine.high %v775_v8, %v783_v43  ;;  %v1215_v33 = vld [vmem:[%s9719_s20 + $0x19f0] sm:$0xff] }
 0x381   : > { %7664 = vmatpush2.bf16.msra.mxu0 %v8557_v62  ;;  %v8461_v62 = vcombine.low %v519_v60, %v527_v61  ;;  %v935_v60 = vld [vmem:[%s9719_s20 + $0x1130] sm:$0xff] }
 0x382   : > { %7665 = vmatprep.subr.bf16.mxu0 %v8542_v12  ;;  %v8958_v12 = vcombine.high %v1015_v4, %v1023_v6  ;;  %v943_v61 = vld [vmem:[%s9719_s20 + $0x1170] sm:$0xff] }
 0x383   : > { %7707 = vmatpush2.bf16.msra.mxu1 %v8813_v10  ;;  %v8717_v10 = vcombine.low %v775_v8, %v783_v43  ;;  %v1191_v8 = vld [vmem:[%s9719_s20 + $0x1930] sm:$0xff] }
 0x384   : > { %7708 = vmatprep.subr.bf16.mxu1 %v8798_v13  ;;  %v9214_v13 = vcombine.high %v1271_v9, %v1279_v11  ;;  %v1199_v43 = vld [vmem:[%s9719_s20 + $0x1970] sm:$0xff] }
 0x385   : > { %7666 = vmatpush2.bf16.msra.mxu0 %v8541_v24  ;;  %v8957_v24 = vcombine.low %v1015_v4, %v1023_v6  ;;  %v919_v4 = vld [vmem:[%s9719_s20 + $0x10b0] sm:$0xff] }
 0x386   : > { %7667 = vmatprep.subr.bf16.mxu0 %v8526_v7  ;;  %v8942_v7 = vcombine.high %v999_v15, %v1007_v17  ;;  %v927_v6 = vld [vmem:[%s9719_s20 + $0x10f0] sm:$0xff] }
 0x387   : > { %7709 = vmatpush2.bf16.msra.mxu1 %v8797_v28  ;;  %v9213_v28 = vcombine.low %v1271_v9, %v1279_v11  ;;  %v1175_v9 = vld [vmem:[%s9719_s20 + $0x18b0] sm:$0xff] }
 0x388   : > { %7710 = vmatprep.subr.bf16.mxu1 %v8782_v29  ;;  %v9198_v29 = vcombine.high %v1255_v21, %v1263_v23  ;;  %v1183_v11 = vld [vmem:[%s9719_s20 + $0x18f0] sm:$0xff] }
 0x389   : > { %7668 = vmatpush2.bf16.msra.mxu0 %v8525_v18  ;;  %v8941_v18 = vcombine.low %v999_v15, %v1007_v17  ;;  %v903_v15 = vld [vmem:[%s9719_s20 + $0x1030] sm:$0xff] }
 0x38a   : > { %7669 = vmatprep.subr.bf16.mxu0 %v8510_v36  ;;  %v8926_v36 = vcombine.high %v983_v30, %v991_v47  ;;  %v911_v17 = vld [vmem:[%s9719_s20 + $0x1070] sm:$0xff] }
 0x38b   : > { %7711 = vmatpush2.bf16.msra.mxu1 %v8781_v34  ;;  %v9197_v34 = vcombine.low %v1255_v21, %v1263_v23  ;;  %v1159_v21 = vld [vmem:[%s9719_s20 + $0x1830] sm:$0xff] }
 0x38c   : > { %7712 = vmatprep.subr.bf16.mxu1 %v8766_v39  ;;  %v9182_v39 = vcombine.high %v1239_v31, %v1247_v32  ;;  %v1167_v23 = vld [vmem:[%s9719_s20 + $0x1870] sm:$0xff] }
 0x38d   : > { %7670 = vmatpush2.bf16.msra.mxu0 %v8509_v1  ;;  %v8925_v1 = vcombine.low %v983_v30, %v991_v47  ;;  %v1143_v30 = vld [vmem:[%s9719_s20 + $0x17b0] sm:$0xff] }
 0x38e   : > { %7671 = vmatprep.subr.bf16.mxu0 %v8494_v16  ;;  %v8910_v16 = vcombine.high %v967_v27, %v975_v40  ;;  %v1151_v47 = vld [vmem:[%s9719_s20 + $0x17f0] sm:$0xff] }
 0x38f   : > { %7713 = vmatpush2.bf16.msra.mxu1 %v8765_v49  ;;  %v9181_v49 = vcombine.low %v1239_v31, %v1247_v32  ;;  %v1399_v31 = vld [vmem:[%s9719_s20 + $0x1fb0] sm:$0xff] }
 0x390   : > { %7714 = vmatprep.subr.bf16.mxu1 %v8750_v50  ;;  %v9166_v50 = vcombine.high %v1223_v42, %v1231_v44  ;;  %v1407_v32 = vld [vmem:[%s9719_s20 + $0x1ff0] sm:$0xff] }
 0x391   : > { %7672 = vmatpush2.bf16.msra.mxu0 %v8493_v56  ;;  %v8909_v56 = vcombine.low %v967_v27, %v975_v40  ;;  %v1127_v27 = vld [vmem:[%s9719_s20 + $0x1730] sm:$0xff] }
 0x392   : > { %7673 = vmatprep.subr.bf16.mxu0 %v8478_v57  ;;  %v8894_v57 = vcombine.high %v951_v51, %v959_v53  ;;  %v1135_v40 = vld [vmem:[%s9719_s20 + $0x1770] sm:$0xff] }
 0x393   : > { %7715 = vmatpush2.bf16.msra.mxu1 %v8749_v55  ;;  %v9165_v55 = vcombine.low %v1223_v42, %v1231_v44  ;;  %v1383_v42 = vld [vmem:[%s9719_s20 + $0x1f30] sm:$0xff] }
 0x394   : > { %7716 = vmatprep.subr.bf16.mxu1 %v8734_v58  ;;  %v9150_v58 = vcombine.high %v1207_v54, %v1215_v33  ;;  %v1391_v44 = vld [vmem:[%s9719_s20 + $0x1f70] sm:$0xff] }
 0x395   : > { %7674 = vmatpush2.bf16.msra.mxu0 %v8477_v63  ;;  %v8893_v63 = vcombine.low %v951_v51, %v959_v53  ;;  %v1111_v51 = vld [vmem:[%s9719_s20 + $0x16b0] sm:$0xff] }
 0x396   : > { %7675 = vmatprep.subr.bf16.mxu0 %v8462_v2  ;;  %v8878_v2 = vcombine.high %v935_v60, %v943_v61  ;;  %v1119_v53 = vld [vmem:[%s9719_s20 + $0x16f0] sm:$0xff] }
 0x397   : > { %7717 = vmatpush2.bf16.msra.mxu1 %v8733_v52  ;;  %v9149_v52 = vcombine.low %v1207_v54, %v1215_v33  ;;  %v1367_v54 = vld [vmem:[%s9719_s20 + $0x1eb0] sm:$0xff] }
 0x398   : > { %7718 = vmatprep.subr.bf16.mxu1 %v8718_v3  ;;  %v9134_v3 = vcombine.high %v1191_v8, %v1199_v43  ;;  %v1375_v33 = vld [vmem:[%s9719_s20 + $0x1ef0] sm:$0xff] }
 0x399   : > { %7676 = vmatpush2.bf16.msra.mxu0 %v8461_v62  ;;  %v8877_v62 = vcombine.low %v935_v60, %v943_v61  ;;  %v1095_v60 = vld [vmem:[%s9719_s20 + $0x1630] sm:$0xff] }
 0x39a   : > { %7731 = vmatprep.subr.bf16.mxu0 %v8958_v12  ;;  %v8862_v12 = vcombine.high %v919_v4, %v927_v6  ;;  %v1103_v61 = vld [vmem:[%s9719_s20 + $0x1670] sm:$0xff] }
 0x39b   : > { %7719 = vmatpush2.bf16.msra.mxu1 %v8717_v10  ;;  %v9133_v10 = vcombine.low %v1191_v8, %v1199_v43  ;;  %v1351_v8 = vld [vmem:[%s9719_s20 + $0x1e30] sm:$0xff] }
 0x39c   : > { %7774 = vmatprep.subr.bf16.mxu1 %v9214_v13  ;;  %7678 = vmatmul.mubr.bf16.vlgmr.msra.gmra.mxu0 %v9837_v22  ;;  %v9118_v13 = vcombine.high %v1175_v9, %v1183_v11  ;;  %v1359_v43 = vld [vmem:[%s9719_s20 + $0x1e70] sm:$0xff] }
 0x39d   : > { %7732 = vmatpush1.bf16.msra.mxu0 %v8957_v24  ;;  %7763 = vmatprep.mubr.bf16.mxu0 %v9856_v35  ;;  %v8861_v24 = vcombine.low %v919_v4, %v927_v6  ;;  %v1079_v4 = vld [vmem:[%s9719_s20 + $0x15b0] sm:$0xff] }
 0x39e   : > { %7721 = vmatmul.mubr.bf16.vlgmr.msra.gmra.mxu1 %v9846_v26  ;;  %7733 = vmatprep.subr.bf16.mxu0 %v8942_v7  ;;  %v8846_v7 = vcombine.high %v903_v15, %v911_v17  ;;  %v1087_v6 = vld [vmem:[%s9719_s20 + $0x15f0] sm:$0xff] }
 0x39f   : > { %7775 = vmatpush1.bf16.msra.mxu1 %v9213_v28  ;;  %7806 = vmatprep.mubr.bf16.mxu1 %v9861_v38  ;;  %v9117_v28 = vcombine.low %v1175_v9, %v1183_v11  ;;  %v1335_v9 = vld [vmem:[%s9719_s20 + $0x1db0] sm:$0xff] }
 0x3a0   : > { %7776 = vmatprep.subr.bf16.mxu1 %v9198_v29  ;;  %v9102_v29 = vcombine.high %v1159_v21, %v1167_v23  ;;  %v1343_v11 = vld [vmem:[%s9719_s20 + $0x1df0] sm:$0xff] }
 0x3a1   : > { %7734 = vmatpush1.bf16.msra.mxu0 %v8941_v18  ;;  %v8845_v18 = vcombine.low %v903_v15, %v911_v17  ;;  %v1063_v15 = vld [vmem:[%s9719_s20 + $0x1530] sm:$0xff] }
 0x3a2   : > { %7735 = vmatprep.subr.bf16.mxu0 %v8926_v36  ;;  %v9086_v36 = vcombine.high %v1143_v30, %v1151_v47  ;;  %v1071_v17 = vld [vmem:[%s9719_s20 + $0x1570] sm:$0xff] }
 0x3a3   : > { %7777 = vmatpush1.bf16.msra.mxu1 %v9197_v34  ;;  %v9101_v34 = vcombine.low %v1159_v21, %v1167_v23  ;;  %v1319_v21 = vld [vmem:[%s9719_s20 + $0x1d30] sm:$0xff] }
 0x3a4   : > { %7778 = vmatprep.subr.bf16.mxu1 %v9182_v39  ;;  %v9342_v39 = vcombine.high %v1399_v31, %v1407_v32  ;;  %v1327_v23 = vld [vmem:[%s9719_s20 + $0x1d70] sm:$0xff] }
 0x3a5   : > { %7736 = vmatpush1.bf16.msra.mxu0 %v8925_v1  ;;  %v9085_v1 = vcombine.low %v1143_v30, %v1151_v47  ;;  %v1047_v30 = vld [vmem:[%s9719_s20 + $0x14b0] sm:$0xff] }
 0x3a6   : > { %7737 = vmatprep.subr.bf16.mxu0 %v8910_v16  ;;  %v9070_v16 = vcombine.high %v1127_v27, %v1135_v40  ;;  %v1055_v47 = vld [vmem:[%s9719_s20 + $0x14f0] sm:$0xff] }
 0x3a7   : > { %7779 = vmatpush1.bf16.msra.mxu1 %v9181_v49  ;;  %v9341_v49 = vcombine.low %v1399_v31, %v1407_v32  ;;  %v1303_v31 = vld [vmem:[%s9719_s20 + $0x1cb0] sm:$0xff] }
 0x3a8   : > { %7780 = vmatprep.subr.bf16.mxu1 %v9166_v50  ;;  %v9326_v50 = vcombine.high %v1383_v42, %v1391_v44  ;;  %v1311_v32 = vld [vmem:[%s9719_s20 + $0x1cf0] sm:$0xff] }
 0x3a9   : > { %7738 = vmatpush1.bf16.msra.mxu0 %v8909_v56  ;;  %v9069_v56 = vcombine.low %v1127_v27, %v1135_v40  ;;  %v1031_v27 = vld [vmem:[%s9719_s20 + $0x1430] sm:$0xff] }
 0x3aa   : > { %7739 = vmatprep.subr.bf16.mxu0 %v8894_v57  ;;  %v9054_v57 = vcombine.high %v1111_v51, %v1119_v53  ;;  %v1039_v40 = vld [vmem:[%s9719_s20 + $0x1470] sm:$0xff] }
 0x3ab   : > { %7781 = vmatpush1.bf16.msra.mxu1 %v9165_v55  ;;  %v9325_v55 = vcombine.low %v1383_v42, %v1391_v44  ;;  %v1287_v42 = vld [vmem:[%s9719_s20 + $0x1c30] sm:$0xff] }
 0x3ac   : > { %7782 = vmatprep.subr.bf16.mxu1 %v9150_v58  ;;  %v9310_v58 = vcombine.high %v1367_v54, %v1375_v33  ;;  %v1295_v44 = vld [vmem:[%s9719_s20 + $0x1c70] sm:$0xff] }
 0x3ad   : > { %7740 = vmatpush1.bf16.msra.mxu0 %v8893_v63  ;;  %v9053_v63 = vcombine.low %v1111_v51, %v1119_v53  ;;  %v504_v51 = vld [vmem:[%s9719_s20 + $0x3b8] sm:$0xff] }
 0x3ae   : > { %7741 = vmatprep.subr.bf16.mxu0 %v8878_v2  ;;  %v9038_v2 = vcombine.high %v1095_v60, %v1103_v61  ;;  %v512_v53 = vld [vmem:[%s9719_s20 + $0x3f8] sm:$0xff] }
 0x3af   : > { %7783 = vmatpush1.bf16.msra.mxu1 %v9149_v52  ;;  %v9309_v52 = vcombine.low %v1367_v54, %v1375_v33  ;;  %v760_v54 = vld [vmem:[%s9719_s20 + $0xbb8] sm:$0xff] }
 0x3b0   : > { %7784 = vmatprep.subr.bf16.mxu1 %v9134_v3  ;;  %v9294_v3 = vcombine.high %v1351_v8, %v1359_v43  ;;  %v768_v33 = vld [vmem:[%s9719_s20 + $0xbf8] sm:$0xff] }
 0x3b1   : > { %7742 = vmatpush1.bf16.msra.mxu0 %v8877_v62  ;;  %v9037_v62 = vcombine.low %v1095_v60, %v1103_v61  ;;  %v488_v60 = vld [vmem:[%s9719_s20 + $0x338] sm:$0xff] }
 0x3b2   : > { %7743 = vmatprep.subr.bf16.mxu0 %v8862_v12  ;;  %v9022_v12 = vcombine.high %v1079_v4, %v1087_v6  ;;  %v496_v61 = vld [vmem:[%s9719_s20 + $0x378] sm:$0xff] }
 0x3b3   : > { %7785 = vmatpush1.bf16.msra.mxu1 %v9133_v10  ;;  %v9293_v10 = vcombine.low %v1351_v8, %v1359_v43  ;;  %v744_v8 = vld [vmem:[%s9719_s20 + $0xb38] sm:$0xff] }
 0x3b4   : > { %7786 = vmatprep.subr.bf16.mxu1 %v9118_v13  ;;  %v9278_v13 = vcombine.high %v1335_v9, %v1343_v11  ;;  %v752_v43 = vld [vmem:[%s9719_s20 + $0xb78] sm:$0xff] }
 0x3b5   : > { %7744 = vmatpush1.bf16.msra.mxu0 %v8861_v24  ;;  %v9021_v24 = vcombine.low %v1079_v4, %v1087_v6  ;;  %v472_v4 = vld [vmem:[%s9719_s20 + $0x2b8] sm:$0xff] }
 0x3b6   : > { %7745 = vmatprep.subr.bf16.mxu0 %v8846_v7  ;;  %v9006_v7 = vcombine.high %v1063_v15, %v1071_v17  ;;  %v480_v6 = vld [vmem:[%s9719_s20 + $0x2f8] sm:$0xff] }
 0x3b7   : > { %7787 = vmatpush1.bf16.msra.mxu1 %v9117_v28  ;;  %v9277_v28 = vcombine.low %v1335_v9, %v1343_v11  ;;  %v728_v9 = vld [vmem:[%s9719_s20 + $0xab8] sm:$0xff] }
 0x3b8   : > { %7788 = vmatprep.subr.bf16.mxu1 %v9102_v29  ;;  %v9262_v29 = vcombine.high %v1319_v21, %v1327_v23  ;;  %v736_v11 = vld [vmem:[%s9719_s20 + $0xaf8] sm:$0xff] }
 0x3b9   : > { %7746 = vmatpush1.bf16.msra.mxu0 %v8845_v18  ;;  %v9005_v18 = vcombine.low %v1063_v15, %v1071_v17  ;;  %v456_v15 = vld [vmem:[%s9719_s20 + $0x238] sm:$0xff] }
 0x3ba   : > { %7747 = vmatprep.subr.bf16.mxu0 %v9086_v36  ;;  %v8990_v36 = vcombine.high %v1047_v30, %v1055_v47  ;;  %v464_v17 = vld [vmem:[%s9719_s20 + $0x278] sm:$0xff] }
 0x3bb   : > { %7789 = vmatpush1.bf16.msra.mxu1 %v9101_v34  ;;  %v9261_v34 = vcombine.low %v1319_v21, %v1327_v23  ;;  %v712_v21 = vld [vmem:[%s9719_s20 + $0xa38] sm:$0xff] }
 0x3bc   : > { %7790 = vmatprep.subr.bf16.mxu1 %v9342_v39  ;;  %v9246_v39 = vcombine.high %v1303_v31, %v1311_v32  ;;  %v720_v23 = vld [vmem:[%s9719_s20 + $0xa78] sm:$0xff] }
 0x3bd   : > { %7748 = vmatpush2.bf16.msra.mxu0 %v9085_v1  ;;  %v8989_v1 = vcombine.low %v1047_v30, %v1055_v47  ;;  %v440_v30 = vld [vmem:[%s9719_s20 + $0x1b8] sm:$0xff] }
 0x3be   : > { %7749 = vmatprep.subr.bf16.mxu0 %v9070_v16  ;;  %v8974_v16 = vcombine.high %v1031_v27, %v1039_v40  ;;  %v448_v47 = vld [vmem:[%s9719_s20 + $0x1f8] sm:$0xff] }
 0x3bf   : > { %7791 = vmatpush2.bf16.msra.mxu1 %v9341_v49  ;;  %v9245_v49 = vcombine.low %v1303_v31, %v1311_v32  ;;  %v696_v31 = vld [vmem:[%s9719_s20 + $0x9b8] sm:$0xff]  ;;  %v8399_v32 = vcombine.low %v456_v15, %v464_v17 }
 0x3c0   : > { %7792 = vmatprep.subr.bf16.mxu1 %v9326_v50  ;;  %v9230_v50 = vcombine.high %v1287_v42, %v1295_v44 }
 0x3c1   : > { %7750 = vmatpush2.bf16.msra.mxu0 %v9069_v56  ;;  %v8973_v56 = vcombine.low %v1031_v27, %v1039_v40  ;;  %v680_v27 = vld [vmem:[%s9719_s20 + $0x938] sm:$0xff] }
 0x3c2   : > { %7751 = vmatprep.subr.bf16.mxu0 %v9054_v57  ;;  %v8448_v57 = vcombine.high %v504_v51, %v512_v53  ;;  %v688_v40 = vld [vmem:[%s9719_s20 + $0x978] sm:$0xff] }
 0x3c3   : > { %7793 = vmatpush2.bf16.msra.mxu1 %v9325_v55  ;;  %v9229_v55 = vcombine.low %v1287_v42, %v1295_v44  ;;  %v8383_v42 = vcombine.low %v440_v30, %v448_v47 }
 0x3c4   : > { %7794 = vmatprep.subr.bf16.mxu1 %v9310_v58  ;;  %v8704_v58 = vcombine.high %v760_v54, %v768_v33 }
 0x3c5   : > { %7752 = vmatpush2.bf16.msra.mxu0 %v9053_v63  ;;  %v8447_v63 = vcombine.low %v504_v51, %v512_v53  ;;  %v664_v51 = vld [vmem:[%s9719_s20 + $0x8b8] sm:$0xff] }
 0x3c6   : > { %7753 = vmatprep.subr.bf16.mxu0 %v9038_v2  ;;  %v8432_v2 = vcombine.high %v488_v60, %v496_v61  ;;  %v672_v53 = vld [vmem:[%s9719_s20 + $0x8f8] sm:$0xff] }
 0x3c7   : > { %7795 = vmatpush2.bf16.msra.mxu1 %v9309_v52  ;;  %v8703_v52 = vcombine.low %v760_v54, %v768_v33  ;;  %v8623_v33 = vcombine.low %v680_v27, %v688_v40 }
 0x3c8   : > { %7796 = vmatprep.subr.bf16.mxu1 %v9294_v3  ;;  %v8688_v3 = vcombine.high %v744_v8, %v752_v43 }
 0x3c9   : > { %7754 = vmatpush2.bf16.msra.mxu0 %v9037_v62  ;;  %v8431_v62 = vcombine.low %v488_v60, %v496_v61  ;;  %v648_v60 = vld [vmem:[%s9719_s20 + $0x838] sm:$0xff] }
 0x3ca   : > { %7755 = vmatprep.subr.bf16.mxu0 %v9022_v12  ;;  %v8416_v12 = vcombine.high %v472_v4, %v480_v6  ;;  %v656_v61 = vld [vmem:[%s9719_s20 + $0x878] sm:$0xff] }
 0x3cb   : > { %7797 = vmatpush2.bf16.msra.mxu1 %v9293_v10  ;;  %v8687_v10 = vcombine.low %v744_v8, %v752_v43  ;;  %v8607_v43 = vcombine.low %v664_v51, %v672_v53 }
 0x3cc   : > { %7798 = vmatprep.subr.bf16.mxu1 %v9278_v13  ;;  %v8672_v13 = vcombine.high %v728_v9, %v736_v11 }
 0x3cd   : > { %7756 = vmatpush2.bf16.msra.mxu0 %v9021_v24  ;;  %v8415_v24 = vcombine.low %v472_v4, %v480_v6  ;;  %v888_v4 = vld [vmem:[%s9719_s20 + $0xfb8] sm:$0xff] }
 0x3ce   : > { %7757 = vmatprep.subr.bf16.mxu0 %v9006_v7  ;;  %v8400_v7 = vcombine.high %v456_v15, %v464_v17  ;;  %v896_v6 = vld [vmem:[%s9719_s20 + $0xff8] sm:$0xff] }
 0x3cf   : > { %7799 = vmatpush2.bf16.msra.mxu1 %v9277_v28  ;;  %v8671_v28 = vcombine.low %v728_v9, %v736_v11  ;;  %v8591_v11 = vcombine.low %v648_v60, %v656_v61  ;;  %v872_v15 = vld [vmem:[%s9719_s20 + $0xf38] sm:$0xff] }
 0x3d0   : > { %7800 = vmatprep.subr.bf16.mxu1 %v9262_v29  ;;  %v8656_v29 = vcombine.high %v712_v21, %v720_v23  ;;  %v880_v17 = vld [vmem:[%s9719_s20 + $0xf78] sm:$0xff] }
 0x3d1   : > { %7758 = vmatpush2.bf16.msra.mxu0 %v9005_v18  ;;  %v8384_v18 = vcombine.high %v440_v30, %v448_v47  ;;  %v856_v30 = vld [vmem:[%s9719_s20 + $0xeb8] sm:$0xff] }
 0x3d2   : > { %7759 = vmatprep.subr.bf16.mxu0 %v8990_v36  ;;  %v424_v36 = vld [vmem:[%s9719_s20 + $0x138] sm:$0xff] }
 0x3d3   : > { %7801 = vmatpush2.bf16.msra.mxu1 %v9261_v34  ;;  %v864_v47 = vld [vmem:[%s9719_s20 + $0xef8] sm:$0xff] }
 0x3d4   : > { %7802 = vmatprep.subr.bf16.mxu1 %v9246_v39  ;;  %v432_v39 = vld [vmem:[%s9719_s20 + $0x178] sm:$0xff] }
 0x3d5   : > { %7760 = vmatpush2.bf16.msra.mxu0 %v8989_v1  ;;  %v8368_v1 = vcombine.high %v424_v36, %v432_v39  ;;  %v8367_v54 = vcombine.low %v424_v36, %v432_v39  ;;  %v840_v36 = vld [vmem:[%s9719_s20 + $0xe38] sm:$0xff] }
 0x3d6   : > { %7761 = vmatprep.subr.bf16.mxu0 %v8974_v16  ;;  %v408_v16 = vld [vmem:[%s9719_s20 + $0xb8] sm:$0xff] }
 0x3d7   : > { %7803 = vmatpush2.bf16.msra.mxu1 %v9245_v49  ;;  %v8624_v49 = vcombine.high %v680_v27, %v688_v40  ;;  %v848_v39 = vld [vmem:[%s9719_s20 + $0xe78] sm:$0xff]  ;;  %v8799_v40 = vcombine.low %v856_v30, %v864_v47 }
 0x3d8   : > { %7804 = vmatprep.subr.bf16.mxu1 %v9230_v50  ;;  %v416_v50 = vld [vmem:[%s9719_s20 + $0xf8] sm:$0xff] }
 0x3d9   : > { %7762 = vmatpush2.bf16.msra.mxu0 %v8973_v56  ;;  %v8352_v56 = vcombine.high %v408_v16, %v416_v50  ;;  %v8351_v8 = vcombine.low %v408_v16, %v416_v50  ;;  %v824_v16 = vld [vmem:[%s9719_s20 + $0xdb8] sm:$0xff] }
 0x3da   : > { %7817 = vmatprep.subr.bf16.mxu0 %v8448_v57  ;;  %v392_v57 = vld [vmem:[%s9719_s20 + $0x38] sm:$0xff] }
 0x3db   : > { %7805 = vmatpush2.bf16.msra.mxu1 %v9229_v55  ;;  %v8608_v55 = vcombine.high %v664_v51, %v672_v53  ;;  %v832_v50 = vld [vmem:[%s9719_s20 + $0xdf8] sm:$0xff]  ;;  %v8783_v53 = vcombine.low %v840_v36, %v848_v39 }
 0x3dc   : > { %7860 = vmatprep.subr.bf16.mxu1 %v8704_v58  ;;  %7764 = vmatmul.mubr.bf16.vlgmr.msra.gmra.mxu0 %v9936_v45  ;;  %v400_v58 = vld [vmem:[%s9719_s20 + $0x78] sm:$0xff] }
 0x3dd   : > { %7818 = vmatpush1.bf16.msra.mxu0 %v8447_v63  ;;  %7849 = vmatprep.mubr.bf16.mxu0 %v9772_v59  ;;  %v704_v59 = vld [vmem:[%s9719_s20 + $0x9f8] sm:$0xff]  ;;  %v8336_v63 = vcombine.high %v392_v57, %v400_v58  ;;  %v8335_v9 = vcombine.low %v392_v57, %v400_v58 }
 0x3de   : > { %7807 = vmatmul.mubr.bf16.vlgmr.msra.gmra.mxu1 %v9940_v48  ;;  %7819 = vmatprep.subr.bf16.mxu0 %v8432_v2  ;;  %v8640_v34 = vcombine.high %v696_v31, %v704_v59  ;;  %v8639_v44 = vcombine.low %v696_v31, %v704_v59  ;;  %v632_v2 = vld [vmem:[%s9719_s20 + $0x7b8] sm:$0xff]  ;;  %v8815_v59 = vcombine.low %v872_v15, %v880_v17 }
 0x3df   : > { %7861 = vmatpush1.bf16.msra.mxu1 %v8703_v52  ;;  %7892 = vmatprep.mubr.bf16.mxu1 %v9782_v0  ;;  %v8655_v0 = vcombine.low %v712_v21, %v720_v23  ;;  %v8592_v52 = vcombine.high %v648_v60, %v656_v61  ;;  %v8831_v23 = vcombine.low %v888_v4, %v896_v6  ;;  %v808_v57 = vld [vmem:[%s9719_s20 + $0xd38] sm:$0xff] }
 0x3e0   : > { %7862 = vmatprep.subr.bf16.mxu1 %v8688_v3  ;;  %v640_v3 = vld [vmem:[%s9719_s20 + $0x7f8] sm:$0xff]  ;;  %v8767_v61 = vcombine.low %v824_v16, %v832_v50 }
 0x3e1   : > { %7820 = vmatpush1.bf16.msra.mxu0 %v8431_v62  ;;  %v8576_v62 = vcombine.high %v632_v2, %v640_v3  ;;  %v8575_v21 = vcombine.low %v632_v2, %v640_v3  ;;  %v816_v58 = vld [vmem:[%s9719_s20 + $0xd78] sm:$0xff] }
 0x3e2   : > { %7821 = vmatprep.subr.bf16.mxu0 %v8416_v12  ;;  %v616_v12 = vld [vmem:[%s9719_s20 + $0x738] sm:$0xff] }
 0x3e3   : > { %7863 = vmatpush1.bf16.msra.mxu1 %v8687_v10  ;;  %v8832_v10 = vcombine.high %v888_v4, %v896_v6  ;;  %v792_v2 = vld [vmem:[%s9719_s20 + $0xcb8] sm:$0xff]  ;;  %v8751_v6 = vcombine.low %v808_v57, %v816_v58 }
 0x3e4   : > { %7864 = vmatprep.subr.bf16.mxu1 %v8672_v13  ;;  %v624_v13 = vld [vmem:[%s9719_s20 + $0x778] sm:$0xff] }
 0x3e5   : > { %7822 = vmatpush1.bf16.msra.mxu0 %v8415_v24  ;;  %v8560_v24 = vcombine.high %v616_v12, %v624_v13  ;;  %v8559_v31 = vcombine.low %v616_v12, %v624_v13  ;;  %v800_v3 = vld [vmem:[%s9719_s20 + $0xcf8] sm:$0xff] }
 0x3e6   : > { %7823 = vmatprep.subr.bf16.mxu0 %v8400_v7  ;;  %v600_v7 = vld [vmem:[%s9719_s20 + $0x6b8] sm:$0xff] }
 0x3e7   : > { %7865 = vmatpush1.bf16.msra.mxu1 %v8671_v28  ;;  %v8816_v28 = vcombine.high %v872_v15, %v880_v17  ;;  %v776_v12 = vld [vmem:[%s9719_s20 + $0xc38] sm:$0xff]  ;;  %v8735_v17 = vcombine.low %v792_v2, %v800_v3 }
 0x3e8   : > { %7866 = vmatprep.subr.bf16.mxu1 %v8656_v29  ;;  %v608_v29 = vld [vmem:[%s9719_s20 + $0x6f8] sm:$0xff] }
 0x3e9   : > { %7824 = vmatpush1.bf16.msra.mxu0 %v8399_v32  ;;  %v8544_v32 = vcombine.high %v600_v7, %v608_v29  ;;  %v8543_v27 = vcombine.low %v600_v7, %v608_v29  ;;  %v784_v13 = vld [vmem:[%s9719_s20 + $0xc78] sm:$0xff] }
 0x3ea   : > { %7825 = vmatprep.subr.bf16.mxu0 %v8384_v18  ;;  %v584_v18 = vld [vmem:[%s9719_s20 + $0x638] sm:$0xff] }
 0x3eb   : > { %7867 = vmatpush1.bf16.msra.mxu1 %v8655_v0  ;;  %v8800_v0 = vcombine.high %v856_v30, %v864_v47  ;;  %v1272_v7 = vld [vmem:[%s9719_s20 + $0x1bb8] sm:$0xff]  ;;  %v8719_v47 = vcombine.low %v776_v12, %v784_v13 }
 0x3ec   : > { %7868 = vmatprep.subr.bf16.mxu1 %v8640_v34  ;;  %v592_v34 = vld [vmem:[%s9719_s20 + $0x678] sm:$0xff] }
 0x3ed   : > { %7826 = vmatpush1.bf16.msra.mxu0 %v8383_v42  ;;  %v8528_v42 = vcombine.high %v584_v18, %v592_v34  ;;  %v8527_v51 = vcombine.low %v584_v18, %v592_v34  ;;  %v1280_v29 = vld [vmem:[%s9719_s20 + $0x1bf8] sm:$0xff] }
 0x3ee   : > { %7827 = vmatprep.subr.bf16.mxu0 %v8368_v1  ;;  %v568_v1 = vld [vmem:[%s9719_s20 + $0x5b8] sm:$0xff] }
 0x3ef   : > { %7869 = vmatpush1.bf16.msra.mxu1 %v8639_v44  ;;  %v8784_v44 = vcombine.high %v840_v36, %v848_v39  ;;  %v1256_v18 = vld [vmem:[%s9719_s20 + $0x1b38] sm:$0xff]  ;;  %v9215_v39 = vcombine.low %v1272_v7, %v1280_v29 }
 0x3f0   : > { %7870 = vmatprep.subr.bf16.mxu1 %v8624_v49  ;;  %v576_v49 = vld [vmem:[%s9719_s20 + $0x5f8] sm:$0xff] }
 0x3f1   : > { %7828 = vmatpush1.bf16.msra.mxu0 %v8367_v54  ;;  %v8512_v54 = vcombine.high %v568_v1, %v576_v49  ;;  %v8511_v60 = vcombine.low %v568_v1, %v576_v49  ;;  %v1264_v34 = vld [vmem:[%s9719_s20 + $0x1b78] sm:$0xff] }
 0x3f2   : > { %7829 = vmatprep.subr.bf16.mxu0 %v8352_v56  ;;  %v552_v56 = vld [vmem:[%s9719_s20 + $0x538] sm:$0xff] }
 0x3f3   : > { %7871 = vmatpush1.bf16.msra.mxu1 %v8623_v33  ;;  %v8768_v33 = vcombine.high %v824_v16, %v832_v50  ;;  %v1240_v1 = vld [vmem:[%s9719_s20 + $0x1ab8] sm:$0xff]  ;;  %v9199_v50 = vcombine.low %v1256_v18, %v1264_v34 }
 0x3f4   : > { %7872 = vmatprep.subr.bf16.mxu1 %v8608_v55  ;;  %v560_v55 = vld [vmem:[%s9719_s20 + $0x578] sm:$0xff] }
 0x3f5   : > { %7830 = vmatpush1.bf16.msra.mxu0 %v8351_v8  ;;  %v8496_v8 = vcombine.high %v552_v56, %v560_v55  ;;  %v8495_v4 = vcombine.low %v552_v56, %v560_v55  ;;  %v1248_v49 = vld [vmem:[%s9719_s20 + $0x1af8] sm:$0xff] }
 0x3f6   : > { %7831 = vmatprep.subr.bf16.mxu0 %v8336_v63  ;;  %v536_v63 = vld [vmem:[%s9719_s20 + $0x4b8] sm:$0xff]  ;;  %v9183_v55 = vcombine.low %v1240_v1, %v1248_v49 }
 0x3f7   : > { %7873 = vmatpush1.bf16.msra.mxu1 %v8607_v43  ;;  %v8752_v43 = vcombine.high %v808_v57, %v816_v58  ;;  %v1232_v56 = vld [vmem:[%s9719_s20 + $0x1a78] sm:$0xff] }
 0x3f8   : > { %7874 = vmatprep.subr.bf16.mxu1 %v8592_v52  ;;  %v544_v52 = vld [vmem:[%s9719_s20 + $0x4f8] sm:$0xff] }
 0x3f9   : > { %7832 = vmatpush1.bf16.msra.mxu0 %v8335_v9  ;;  %v8480_v9 = vcombine.high %v536_v63, %v544_v52  ;;  %v8479_v15 = vcombine.low %v536_v63, %v544_v52 }
 0x3fa   : > { %7833 = vmatprep.subr.bf16.mxu0 %v8576_v62  ;;  %v520_v62 = vld [vmem:[%s9719_s20 + $0x438] sm:$0xff] }
 0x3fb   : > { %7875 = vmatpush1.bf16.msra.mxu1 %v8591_v11  ;;  %v8736_v11 = vcombine.high %v792_v2, %v800_v3  ;;  %v936_v2 = vld [vmem:[%s9719_s20 + $0x1138] sm:$0xff] }
 0x3fc   : > { %7876 = vmatprep.subr.bf16.mxu1 %v8832_v10  ;;  %v528_v10 = vld [vmem:[%s9719_s20 + $0x478] sm:$0xff] }
 0x3fd   : > { %7834 = vmatpush2.bf16.msra.mxu0 %v8575_v21  ;;  %v8464_v21 = vcombine.high %v520_v62, %v528_v10  ;;  %v8463_v30 = vcombine.low %v520_v62, %v528_v10  ;;  %v944_v3 = vld [vmem:[%s9719_s20 + $0x1178] sm:$0xff] }
 0x3fe   : > { %7835 = vmatprep.subr.bf16.mxu0 %v8560_v24  ;;  %v1016_v24 = vld [vmem:[%s9719_s20 + $0x13b8] sm:$0xff]  ;;  %v8880_v62 = vcombine.high %v936_v2, %v944_v3 }
 0x3ff   : > { %7877 = vmatpush2.bf16.msra.mxu1 %v8831_v23  ;;  %v8720_v23 = vcombine.high %v776_v12, %v784_v13  ;;  %v920_v12 = vld [vmem:[%s9719_s20 + $0x10b8] sm:$0xff] }
 0x400   : > { %7878 = vmatprep.subr.bf16.mxu1 %v8816_v28  ;;  %v1024_v28 = vld [vmem:[%s9719_s20 + $0x13f8] sm:$0xff] }
 0x401   : > { %7836 = vmatpush2.bf16.msra.mxu0 %v8559_v31  ;;  %v8960_v31 = vcombine.high %v1016_v24, %v1024_v28  ;;  %v8959_v36 = vcombine.low %v1016_v24, %v1024_v28  ;;  %v928_v13 = vld [vmem:[%s9719_s20 + $0x10f8] sm:$0xff] }
 0x402   : > { %7837 = vmatprep.subr.bf16.mxu0 %v8544_v32  ;;  %v1000_v32 = vld [vmem:[%s9719_s20 + $0x1338] sm:$0xff]  ;;  %v8864_v24 = vcombine.high %v920_v12, %v928_v13 }
 0x403   : > { %7879 = vmatpush2.bf16.msra.mxu1 %v8815_v59  ;;  %v9216_v59 = vcombine.high %v1272_v7, %v1280_v29  ;;  %v904_v7 = vld [vmem:[%s9719_s20 + $0x1038] sm:$0xff] }
 0x404   : > { %7880 = vmatprep.subr.bf16.mxu1 %v8800_v0  ;;  %v1008_v0 = vld [vmem:[%s9719_s20 + $0x1378] sm:$0xff] }
 0x405   : > { %7838 = vmatpush2.bf16.msra.mxu0 %v8543_v27  ;;  %v8944_v27 = vcombine.high %v1000_v32, %v1008_v0  ;;  %v8943_v16 = vcombine.low %v1000_v32, %v1008_v0  ;;  %v912_v29 = vld [vmem:[%s9719_s20 + $0x1078] sm:$0xff] }
 0x406   : > { %7839 = vmatprep.subr.bf16.mxu0 %v8528_v42  ;;  %v984_v42 = vld [vmem:[%s9719_s20 + $0x12b8] sm:$0xff]  ;;  %v8848_v32 = vcombine.high %v904_v7, %v912_v29 }
 0x407   : > { %7881 = vmatpush2.bf16.msra.mxu1 %v8799_v40  ;;  %v9200_v40 = vcombine.high %v1256_v18, %v1264_v34  ;;  %v1144_v18 = vld [vmem:[%s9719_s20 + $0x17b8] sm:$0xff] }
 0x408   : > { %7882 = vmatprep.subr.bf16.mxu1 %v8784_v44  ;;  %v992_v44 = vld [vmem:[%s9719_s20 + $0x12f8] sm:$0xff] }
 0x409   : > { %7840 = vmatpush2.bf16.msra.mxu0 %v8527_v51  ;;  %v8928_v51 = vcombine.high %v984_v42, %v992_v44  ;;  %v1152_v34 = vld [vmem:[%s9719_s20 + $0x17f8] sm:$0xff] }
 0x40a   : > { %7841 = vmatprep.subr.bf16.mxu0 %v8512_v54  ;;  %v968_v54 = vld [vmem:[%s9719_s20 + $0x1238] sm:$0xff] }
 0x40b   : > { %7883 = vmatpush2.bf16.msra.mxu1 %v8783_v53  ;;  %v9184_v53 = vcombine.high %v1240_v1, %v1248_v49  ;;  %v1128_v1 = vld [vmem:[%s9719_s20 + $0x1738] sm:$0xff] }
 0x40c   : > { %7884 = vmatprep.subr.bf16.mxu1 %v8768_v33  ;;  %v976_v33 = vld [vmem:[%s9719_s20 + $0x1278] sm:$0xff] }
 0x40d   : > { %7842 = vmatpush2.bf16.msra.mxu0 %v8511_v60  ;;  %v8912_v57 = vcombine.high %v968_v54, %v976_v33  ;;  %v952_v60 = vld [vmem:[%s9719_s20 + $0x11b8] sm:$0xff] }
 0x40e   : > { %7843 = vmatprep.subr.bf16.mxu0 %v8496_v8  ;;  %v1208_v8 = vld [vmem:[%s9719_s20 + $0x19b8] sm:$0xff] }
 0x40f   : > { %7885 = vmatpush2.bf16.msra.mxu1 %v8767_v61  ;;  %v960_v61 = vld [vmem:[%s9719_s20 + $0x11f8] sm:$0xff] }
 0x410   : > { %7886 = vmatprep.subr.bf16.mxu1 %v8752_v43  ;;  %v8911_v43 = vcombine.low %v968_v54, %v976_v33  ;;  %v8896_v63 = vcombine.high %v952_v60, %v960_v61  ;;  %v1136_v49 = vld [vmem:[%s9719_s20 + $0x1778] sm:$0xff] }
 0x411   : > { %7844 = vmatpush2.bf16.msra.mxu0 %v8495_v4  ;;  %v1192_v4 = vld [vmem:[%s9719_s20 + $0x1938] sm:$0xff]  ;;  %v9072_v54 = vcombine.high %v1128_v1, %v1136_v49 }
 0x412   : > { %7845 = vmatprep.subr.bf16.mxu0 %v8480_v9  ;;  %v8895_v9 = vcombine.low %v952_v60, %v960_v61 }
 0x413   : > { %7887 = vmatpush2.bf16.msra.mxu1 %v8751_v6  ;;  %v1200_v6 = vld [vmem:[%s9719_s20 + $0x1978] sm:$0xff] }
 0x414   : > { %7888 = vmatprep.subr.bf16.mxu1 %v8736_v11  ;;  %v9136_v10 = vcombine.high %v1192_v4, %v1200_v6 }
 0x415   : > { %7846 = vmatpush2.bf16.msra.mxu0 %v8479_v15  ;;  %v1176_v15 = vld [vmem:[%s9719_s20 + $0x18b8] sm:$0xff] }
 0x416   : > { %7847 = vmatprep.subr.bf16.mxu0 %v8464_v21  ;;  %v8879_v21 = vcombine.low %v936_v2, %v944_v3 }
 0x417   : > { %7889 = vmatpush2.bf16.msra.mxu1 %v8735_v17  ;;  %v1184_v17 = vld [vmem:[%s9719_s20 + $0x18f8] sm:$0xff] }
 0x418   : > { %7890 = vmatprep.subr.bf16.mxu1 %v8720_v23  ;;  %v9135_v23 = vcombine.low %v1192_v4, %v1200_v6  ;;  %v9120_v28 = vcombine.high %v1176_v15, %v1184_v17  ;;  %v1080_v4 = vld [vmem:[%s9719_s20 + $0x15b8] sm:$0xff] }
 0x419   : > { %7848 = vmatpush2.bf16.msra.mxu0 %v8463_v30  ;;  %v1160_v30 = vld [vmem:[%s9719_s20 + $0x1838] sm:$0xff] }
 0x41a   : > { %7903 = vmatprep.subr.bf16.mxu0 %v8960_v31  ;;  %v8863_v31 = vcombine.low %v920_v12, %v928_v13  ;;  %v1088_v6 = vld [vmem:[%s9719_s20 + $0x15f8] sm:$0xff] }
 0x41b   : > { %7891 = vmatpush2.bf16.msra.mxu1 %v8719_v47  ;;  %v1168_v47 = vld [vmem:[%s9719_s20 + $0x1878] sm:$0xff]  ;;  %v9024_v12 = vcombine.high %v1080_v4, %v1088_v6 }
 0x41c   : > { %7946 = vmatprep.subr.bf16.mxu1 %v9216_v59  ;;  %7850 = vmatmul.mubr.bf16.vlgmr.msra.gmra.mxu0 %v9837_v22  ;;  %v1224_v22 = vld [vmem:[%s9719_s20 + $0x1a38] sm:$0xff]  ;;  %v9119_v59 = vcombine.low %v1176_v15, %v1184_v17  ;;  %v9104_v0 = vcombine.high %v1160_v30, %v1168_v47 }
 0x41d   : > { %7904 = vmatpush1.bf16.msra.mxu0 %v8959_v36  ;;  %7935 = vmatprep.mubr.bf16.mxu0 %v9856_v35  ;;  %v9168_v58 = vcombine.high %v1224_v22, %v1232_v56  ;;  %v1216_v35 = vld [vmem:[%s9719_s20 + $0x19f8] sm:$0xff] }
 0x41e   : > { %7893 = vmatmul.mubr.bf16.vlgmr.msra.gmra.mxu1 %v9846_v26  ;;  %7905 = vmatprep.subr.bf16.mxu0 %v8944_v27  ;;  %v8927_v26 = vcombine.low %v984_v42, %v992_v44  ;;  %v9152_v52 = vcombine.high %v1208_v8, %v1216_v35  ;;  %v9151_v11 = vcombine.low %v1208_v8, %v1216_v35  ;;  %v1400_v36 = vld [vmem:[%s9719_s20 + $0x1fb8] sm:$0xff] }
 0x41f   : > { %7947 = vmatpush1.bf16.msra.mxu1 %v9215_v39  ;;  %7978 = vmatprep.mubr.bf16.mxu1 %v9861_v38  ;;  %v9167_v38 = vcombine.low %v1224_v22, %v1232_v56  ;;  %v1408_v39 = vld [vmem:[%s9719_s20 + $0x1ff8] sm:$0xff]  ;;  %v8847_v27 = vcombine.low %v904_v7, %v912_v29  ;;  %v9088_v42 = vcombine.high %v1144_v18, %v1152_v34 }
 0x420   : > { %7948 = vmatprep.subr.bf16.mxu1 %v9200_v40  ;;  %v9103_v40 = vcombine.low %v1160_v30, %v1168_v47  ;;  %v9344_v44 = vcombine.high %v1400_v36, %v1408_v39  ;;  %v1112_v22 = vld [vmem:[%s9719_s20 + $0x16b8] sm:$0xff] }
 0x421   : > { %7906 = vmatpush1.bf16.msra.mxu0 %v8943_v16  ;;  %v1384_v16 = vld [vmem:[%s9719_s20 + $0x1f38] sm:$0xff] }
 0x422   : > { %7907 = vmatprep.subr.bf16.mxu0 %v8928_v51  ;;  %v9087_v51 = vcombine.low %v1144_v18, %v1152_v34  ;;  %v1120_v56 = vld [vmem:[%s9719_s20 + $0x16f8] sm:$0xff] }
 0x423   : > { %7949 = vmatpush1.bf16.msra.mxu1 %v9199_v50  ;;  %v1392_v50 = vld [vmem:[%s9719_s20 + $0x1f78] sm:$0xff]  ;;  %v9056_v60 = vcombine.high %v1112_v22, %v1120_v56 }
 0x424   : > { %7950 = vmatprep.subr.bf16.mxu1 %v9184_v53  ;;  %v9343_v53 = vcombine.low %v1400_v36, %v1408_v39  ;;  %v9328_v33 = vcombine.high %v1384_v16, %v1392_v50  ;;  %v1096_v8 = vld [vmem:[%s9719_s20 + $0x1638] sm:$0xff] }
 0x425   : > { %7908 = vmatpush1.bf16.msra.mxu0 %v8927_v26  ;;  %v1368_v26 = vld [vmem:[%s9719_s20 + $0x1eb8] sm:$0xff] }
 0x426   : > { %7909 = vmatprep.subr.bf16.mxu0 %v8912_v57  ;;  %v9071_v57 = vcombine.low %v1128_v1, %v1136_v49  ;;  %v1104_v35 = vld [vmem:[%s9719_s20 + $0x1678] sm:$0xff] }
 0x427   : > { %7951 = vmatpush1.bf16.msra.mxu1 %v9183_v55  ;;  %v1376_v55 = vld [vmem:[%s9719_s20 + $0x1ef8] sm:$0xff]  ;;  %v9040_v2 = vcombine.high %v1096_v8, %v1104_v35 }
 0x428   : > { %7952 = vmatprep.subr.bf16.mxu1 %v9168_v58  ;;  %v9327_v58 = vcombine.low %v1384_v16, %v1392_v50  ;;  %v9312_v61 = vcombine.high %v1368_v26, %v1376_v55  ;;  %v1064_v15 = vld [vmem:[%s9719_s20 + $0x1538] sm:$0xff] }
 0x429   : > { %7910 = vmatpush1.bf16.msra.mxu0 %v8911_v43  ;;  %v1352_v43 = vld [vmem:[%s9719_s20 + $0x1e38] sm:$0xff] }
 0x42a   : > { %7911 = vmatprep.subr.bf16.mxu0 %v8896_v63  ;;  %v9055_v63 = vcombine.low %v1112_v22, %v1120_v56  ;;  %v1072_v17 = vld [vmem:[%s9719_s20 + $0x1578] sm:$0xff] }
 0x42b   : > { %7953 = vmatpush1.bf16.msra.mxu1 %v9167_v38  ;;  %v1360_v38 = vld [vmem:[%s9719_s20 + $0x1e78] sm:$0xff]  ;;  %v9008_v7 = vcombine.high %v1064_v15, %v1072_v17 }
 0x42c   : > { %7954 = vmatprep.subr.bf16.mxu1 %v9152_v52  ;;  %v9311_v52 = vcombine.low %v1368_v26, %v1376_v55  ;;  %v9296_v3 = vcombine.high %v1352_v43, %v1360_v38  ;;  %v1048_v30 = vld [vmem:[%s9719_s20 + $0x14b8] sm:$0xff] }
 0x42d   : > { %7912 = vmatpush1.bf16.msra.mxu0 %v8895_v9  ;;  %v1336_v9 = vld [vmem:[%s9719_s20 + $0x1db8] sm:$0xff] }
 0x42e   : > { %7913 = vmatprep.subr.bf16.mxu0 %v8880_v62  ;;  %v9039_v62 = vcombine.low %v1096_v8, %v1104_v35  ;;  %v1056_v47 = vld [vmem:[%s9719_s20 + $0x14f8] sm:$0xff] }
 0x42f   : > { %7955 = vmatpush1.bf16.msra.mxu1 %v9151_v11  ;;  %v1344_v11 = vld [vmem:[%s9719_s20 + $0x1df8] sm:$0xff]  ;;  %v8992_v18 = vcombine.high %v1048_v30, %v1056_v47 }
 0x430   : > { %7956 = vmatprep.subr.bf16.mxu1 %v9136_v10  ;;  %v9295_v10 = vcombine.low %v1352_v43, %v1360_v38  ;;  %v9280_v13 = vcombine.high %v1336_v9, %v1344_v11  ;;  %v1032_v36 = vld [vmem:[%s9719_s20 + $0x1438] sm:$0xff] }
 0x431   : > { %7914 = vmatpush1.bf16.msra.mxu0 %v8879_v21  ;;  %v1320_v21 = vld [vmem:[%s9719_s20 + $0x1d38] sm:$0xff] }
 0x432   : > { %7915 = vmatprep.subr.bf16.mxu0 %v8864_v24  ;;  %v9023_v24 = vcombine.low %v1080_v4, %v1088_v6  ;;  %v1040_v39 = vld [vmem:[%s9719_s20 + $0x1478] sm:$0xff] }
 0x433   : > { %7957 = vmatpush1.bf16.msra.mxu1 %v9135_v23  ;;  %v1328_v23 = vld [vmem:[%s9719_s20 + $0x1d78] sm:$0xff]  ;;  %v8976_v1 = vcombine.high %v1032_v36, %v1040_v39  ;;  %v8975_v16 = vcombine.low %v1032_v36, %v1040_v39 }
 0x434   : > { %7958 = vmatprep.subr.bf16.mxu1 %v9120_v28  ;;  %v9279_v28 = vcombine.low %v1336_v9, %v1344_v11  ;;  %v9264_v29 = vcombine.high %v1320_v21, %v1328_v23 }
 0x435   : > { %7916 = vmatpush1.bf16.msra.mxu0 %v8863_v31  ;;  %v1304_v31 = vld [vmem:[%s9719_s20 + $0x1cb8] sm:$0xff] }
 0x436   : > { %7917 = vmatprep.subr.bf16.mxu0 %v8848_v32  ;;  %v9007_v32 = vcombine.low %v1064_v15, %v1072_v17 }
 0x437   : > { %7959 = vmatpush1.bf16.msra.mxu1 %v9119_v59  ;;  %v1312_v59 = vld [vmem:[%s9719_s20 + $0x1cf8] sm:$0xff] }
 0x438   : > { %7960 = vmatprep.subr.bf16.mxu1 %v9104_v0  ;;  %v9263_v0 = vcombine.low %v1320_v21, %v1328_v23  ;;  %v9248_v34 = vcombine.high %v1304_v31, %v1312_v59 }
 0x439   : > { %7918 = vmatpush1.bf16.msra.mxu0 %v8847_v27  ;;  %v1288_v27 = vld [vmem:[%s9719_s20 + $0x1c38] sm:$0xff] }
 0x43a   : > { %7919 = vmatprep.subr.bf16.mxu0 %v9088_v42  ;;  %v8991_v42 = vcombine.low %v1048_v30, %v1056_v47 }
 0x43b   : > { %7961 = vmatpush1.bf16.msra.mxu1 %v9103_v40  ;;  %v1296_v40 = vld [vmem:[%s9719_s20 + $0x1c78] sm:$0xff]  ;;  %s8179_s20 = sld [smem:[#allocation3]] (!%p9345_p7) }
 0x43c   : > { %7962 = vmatprep.subr.bf16.mxu1 %v9344_v44  ;;  %v9247_v44 = vcombine.low %v1304_v31, %v1312_v59  ;;  %v9232_v49 = vcombine.high %v1288_v27, %v1296_v40  ;;  %v9231_v50 = vcombine.low %v1288_v27, %v1296_v40  ;;  %v9423_v27 = vld [vmem:[%s9727_s28] sm:$0xff] }
 0x43d   : > { %7920 = vmatpush2.bf16.msra.mxu0 %v9087_v51  ;;  %v7163_v51 = vpop.f32.mrf.mxu0 }
 0x43e   : > { %7921 = vmatprep.subr.bf16.mxu0 %v9072_v54 }
 0x43f   : > { %7963 = vmatpush2.bf16.msra.mxu1 %v9343_v53  ;;  %v7206_v53 = vpop.f32.mrf.mxu1  ;;  %v10980_v54 = vpop.f32.mrf.mxu0 }
 0x440   : > { %7964 = vmatprep.subr.bf16.mxu1 %v9328_v33 }
 0x441   : > { %7922 = vmatpush2.bf16.msra.mxu0 %v9071_v57  ;;  %v10982_v33 = vpop.f32.mrf.mxu1  ;;  %v7167_v22 = vpop.f32.mrf.mxu0 }
 0x442   : > { %7923 = vmatprep.subr.bf16.mxu0 %v9056_v60 }
 0x443   : > { %7965 = vmatpush2.bf16.msra.mxu1 %v9327_v58  ;;  %v7210_v56 = vpop.f32.mrf.mxu1  ;;  %v7169_v26 = vpop.f32.mrf.mxu0 }
 0x444   : > { %7966 = vmatprep.subr.bf16.mxu1 %v9312_v61 }
 0x445   : > { %7924 = vmatpush2.bf16.msra.mxu0 %v9055_v63  ;;  %v10984_v55 = vpop.f32.mrf.mxu1  ;;  %v7249_v57 = vpop.f32.mrf.mxu0 }
 0x446   : > { %7925 = vmatprep.subr.bf16.mxu0 %v9040_v2 }
 0x447   : > { %7967 = vmatpush2.bf16.msra.mxu1 %v9311_v52  ;;  %v10986_v58 = vpop.f32.mrf.mxu1  ;;  %v10988_v60 = vpop.f32.mrf.mxu0 }
 0x448   : > { %7968 = vmatprep.subr.bf16.mxu1 %v9296_v3 }
 0x449   : > { %7926 = vmatpush2.bf16.msra.mxu0 %v9039_v62  ;;  %v10990_v61 = vpop.f32.mrf.mxu1 }
 0x44a   : > { %7927 = vmatprep.subr.bf16.mxu0 %v9024_v12 }
 0x44b   : > { %7969 = vmatpush2.bf16.msra.mxu1 %v9295_v10 }
 0x44c   : > { %7970 = vmatprep.subr.bf16.mxu1 %v9280_v13 }
 0x44d   : > { %7928 = vmatpush2.bf16.msra.mxu0 %v9023_v24 }
 0x44e   : > { %7929 = vmatprep.subr.bf16.mxu0 %v9008_v7 }
 0x44f   : > { %7971 = vmatpush2.bf16.msra.mxu1 %v9279_v28 }
 0x450   : > { %7972 = vmatprep.subr.bf16.mxu1 %v9264_v29 }
 0x451   : > { %7930 = vmatpush2.bf16.msra.mxu0 %v9007_v32 }
 0x452   : > { %7931 = vmatprep.subr.bf16.mxu0 %v8992_v18 }
 0x453   : > { %7973 = vmatpush2.bf16.msra.mxu1 %v9263_v0 }
 0x454   : > { %7974 = vmatprep.subr.bf16.mxu1 %v9248_v34  ;;  %v11043_v34 = vsub.s32 6, %v10070_v5 }
 0x455   : > { %7932 = vmatpush2.bf16.msra.mxu0 %v8991_v42 }
 0x456   : > { %7933 = vmatprep.subr.bf16.mxu0 %v8976_v1  ;;  %v1440_v40 = vrot.slane %v9423_v27, %v11043_v34 }
 0x457   : > { %7975 = vmatpush2.bf16.msra.mxu1 %v9247_v44  ;;  %v11054_v44 = vsub.s32 7, %v10070_v5  ;;  %v1448_v5 = vrot.slane %v11062_v37, %v10077_v14 }
 0x458   : > { %7976 = vmatprep.subr.bf16.mxu1 %v9232_v49  ;;  %v7168_v49 = vadd.f32 %v7167_v22, %v1440_v40 }
 0x459   : > { %7934 = vmatpush2.bf16.msra.mxu0 %v8975_v16  ;;  %11207 = vst [vmem:[#allocation21_spill] sm:$0xff] %v11054_v44 }
 0x45b   : > { %7977 = vmatpush2.bf16.msra.mxu1 %v9231_v50  ;;  %v7164_v50 = vadd.f32 %v7163_v51, %v1440_v40 }
 0x45c   : > { %7936 = vmatmul.mubr.bf16.vlgmr.msra.gmra.mxu0 %v9936_v45  ;;  %v7253_v45 = vpop.f32.mrf.mxu0 }
 0x45e   : > { %7979 = vmatmul.mubr.bf16.vlgmr.msra.gmra.mxu1 %v9940_v48  ;;  %v7296_v48 = vpop.f32.mrf.mxu1  ;;  %v10992_v8 = vpop.f32.mrf.mxu0 }
 0x460   : > { %v10994_v35 = vpop.f32.mrf.mxu1  ;;  %v7335_v43 = vpop.f32.mrf.mxu0 }
 0x462   : > { %v10996_v38 = vpop.f32.mrf.mxu1  ;;  %v10998_v63 = vpop.f32.mrf.mxu0 }
 0x464   : > { %v11000_v52 = vpop.f32.mrf.mxu1  ;;  %v7339_v2 = vpop.f32.mrf.mxu0 }
 0x465   : > { %v7340_v51 = vadd.f32 %v7339_v2, %v1448_v5 }
 0x466   : > { %v7382_v3 = vpop.f32.mrf.mxu1  ;;  %v7341_v4 = vpop.f32.mrf.mxu0 }
 0x468   : > { %v11002_v6 = vpop.f32.mrf.mxu1  ;;  %v11004_v9 = vpop.f32.mrf.mxu0 }
 0x46a   : > { %v11006_v11 = vpop.f32.mrf.mxu1  ;;  %v11008_v62 = vpop.f32.mrf.mxu0 }
 0x46c   : > { %v11010_v10 = vpop.f32.mrf.mxu1  ;;  %v7425_v12 = vpop.f32.mrf.mxu0 }
 0x46d   : > { %11199 = vst [vmem:[#allocation13_spill] sm:$0xff] %v11010_v10  ;;  %v7336_v10 = vadd.f32 %v7335_v43, %v1448_v5 }
 0x46e   : > { %v11012_v13 = vpop.f32.mrf.mxu1  ;;  %v11014_v15 = vpop.f32.mrf.mxu0 }
 0x46f   : > { %v7379_v2 = vadd.f32 %v10996_v38, %v7336_v10  ;;  %v1460_v38 = vrot.slane %v11062_v37, %v10250_v25 }
 0x470   : > { %v11016_v17 = vpop.f32.mrf.mxu1  ;;  %v11018_v21 = vpop.f32.mrf.mxu0 }
 0x472   : > { %v11020_v23 = vpop.f32.mrf.mxu1  ;;  %v11022_v24 = vpop.f32.mrf.mxu0 }
 0x474   : > { %v11024_v28 = vpop.f32.mrf.mxu1  ;;  %v7511_v7 = vpop.f32.mrf.mxu0 }
 0x475   : > { %11200 = vst [vmem:[#allocation14_spill] sm:$0xff] %v11024_v28 }
 0x476   : > { %v11026_v29 = vpop.f32.mrf.mxu1  ;;  %v11028_v30 = vpop.f32.mrf.mxu0 }
 0x478   : > { %v11030_v47 = vpop.f32.mrf.mxu1  ;;  %v11032_v31 = vpop.f32.mrf.mxu0 }
 0x47a   : > { %v11034_v59 = vpop.f32.mrf.mxu1  ;;  %v11036_v32 = vpop.f32.mrf.mxu0 }
 0x47b   : > { %11201 = vst [vmem:[#allocation15_spill] sm:$0xff] %v11034_v59  ;;  %11202 = vst [vmem:[#allocation16_spill] sm:$0xff] %v11036_v32  ;;  %v7211_v59 = vadd.f32 %v7210_v56, %v7168_v49  ;;  %v1452_v56 = vrot.slane %v11062_v37, %v10083_v19  ;;  %v7383_v49 = vadd.f32 %v7382_v3, %v7340_v51 }
 0x47c   : > { %v11038_v0 = vpop.f32.mrf.mxu1  ;;  %v11040_v18 = vpop.f32.mrf.mxu0 }
 0x47d   : > { %11203 = vst [vmem:[#allocation17_spill] sm:$0xff] %v11038_v0  ;;  %v1444_v0 = vrot.slane %v9423_v27, %v11054_v44  ;;  %v7254_v28 = vadd.f32 %v7253_v45, %v7211_v59 }
 0x47e   : > { %v11045_v36 = vpop.f32.mrf.mxu1  ;;  %v11047_v39 = vpop.f32.mrf.mxu0 }
 0x47f   : > { %11204 = vst [vmem:[#allocation18_spill] sm:$0xff] %v11045_v36  ;;  %11205 = vst [vmem:[#allocation19_spill] sm:$0xff] %v11047_v39  ;;  %v7207_v36 = vadd.f32 %v7206_v53, %v7164_v50  ;;  %v7166_v22 = vadd.f32 %v10980_v54, %v1444_v0  ;;  %v7297_v44 = vadd.f32 %v7296_v48, %v7254_v28 }
 0x480   : > { %v11051_v42 = vpop.f32.mrf.mxu1  ;;  %v11056_v1 = vpop.f32.mrf.mxu0  ;;  %v7342_v54 = vadd.f32 %v7341_v4, %v1452_v56  ;;  %v7426_v28 = vadd.f32 %v7425_v12, %v7383_v49 }
 0x481   : > { %11206 = vst [vmem:[#allocation20_spill] sm:$0xff] %v11051_v42  ;;  %v7170_v42 = vadd.f32 %v7169_v26, %v1444_v0  ;;  %v7209_v53 = vadd.f32 %v10982_v33, %v7166_v22  ;;  %v8011_v43 = vmax.f32 %v7297_v44, 0.0  ;;  %v7338_v33 = vadd.f32 %v10998_v63, %v1452_v56 }
 0x482   : > { %v11058_v16 = vpop.f32.mrf.mxu1  ;;  %v11064_v32 = vpop.f32.mrf.mxu0 }
 0x483   : > { %11208 = vst [vmem:[#allocation22_spill] sm:$0xff] %v11058_v16  ;;  %v7250_v16 = vadd.f32 %v7249_v57, %v7207_v36  ;;  %v7213_v27 = vadd.f32 %v10984_v55, %v7170_v42  ;;  %v7252_v57 = vadd.f32 %v10988_v60, %v7209_v53  ;;  %v1456_v55 = vrot.slane %v11062_v37, %v10247_v20 }
 0x484   : > { %v11066_v39 = vpop.f32.mrf.mxu1  ;;  %v7683_v46 = vpop.f32.mrf.mxu0  ;;  %v7385_v60 = vadd.f32 %v11002_v6, %v7342_v54  ;;  %v7422_v36 = vadd.f32 %v11004_v9, %v7379_v2  ;;  %v7381_v12 = vadd.f32 %v11000_v52, %v7338_v33  ;;  %v1464_v9 = vrot.slane %v11062_v37, %v10412_v41 }
 0x485   : > { %v7293_v45 = vadd.f32 %v10986_v58, %v7250_v16  ;;  %v7256_v59 = vadd.f32 %v10992_v8, %v7213_v27  ;;  %v7512_v8 = vadd.f32 %v7511_v7, %v1456_v55  ;;  %v7295_v42 = vadd.f32 %v10990_v61, %v7252_v57 }
 0x486   : > { %v7726_v40 = vpop.f32.mrf.mxu1  ;;  %v7685_v26 = vpop.f32.mrf.mxu0  ;;  %v7508_v44 = vadd.f32 %v11018_v21, %v1456_v55  ;;  %v7469_v7 = vadd.f32 %v11012_v13, %v7426_v28  ;;  %v7514_v61 = vadd.f32 %v11028_v30, %v1460_v38  ;;  %v9424_v21 = vld [vmem:[%s9733_s13] sm:$0xff]  ;;  %v7465_v22 = vadd.f32 %v11006_v11, %v7422_v36  ;;  %v11211_v55 = vld [vmem:[#allocation14_spill] sm:$0xff] }
 0x487   : > { %v7995_v3 = vmax.f32 %v7293_v45, 0.0  ;;  %v7299_v4 = vadd.f32 %v10994_v35, %v7256_v59  ;;  %v7428_v35 = vadd.f32 %v11014_v15, %v7385_v60  ;;  %v7555_v6 = vadd.f32 %v11026_v29, %v7512_v8  ;;  %v11212_v2 = vld [vmem:[#allocation18_spill] sm:$0xff] }
 0x488   : > { %v11077_v0 = vpop.f32.mrf.mxu1  ;;  %v8084_v50 = vrot.slane %v9424_v21, %v11043_v34  ;;  %v7424_v52 = vadd.f32 %v11008_v62, %v7381_v12  ;;  %v7551_v13 = vadd.f32 %v11020_v23, %v7508_v44  ;;  %v7510_v15 = vadd.f32 %v11022_v24, %v1460_v38  ;;  %v11209_v24 = vld [vmem:[#allocation13_spill] sm:$0xff]  ;;  %v11124_v36 = vld [vmem:[%s9733_s13 + $0x8] sm:$0xff] }
 0x489   : > { %v8027_v10 = vsub.f32 %v7995_v3, %v8011_v43  ;;  %v8012_v5 = vmax.f32 %v7299_v4, 0.0  ;;  %v7598_v51 = vadd.f32 %v11040_v18, %v7555_v6  ;;  %v7684_v29 = vadd.f32 %v7683_v46, %v1464_v9  ;;  %v11210_v18 = vld [vmem:[#allocation11_spill] sm:$0xff]  ;;  %v11215_v38 = vld [vmem:[#allocation16_spill] sm:$0xff] }
 0x48a   : > { %v7996_v30 = vmax.f32 %v7295_v42, 0.0  ;;  %v8013_v53 = vmax.f32 %v7469_v7, 0.0  ;;  %v7471_v45 = vadd.f32 %v11016_v17, %v7428_v35  ;;  %v7557_v49 = vadd.f32 %v11030_v47, %v7514_v61  ;;  %v11213_v17 = vld [vmem:[#allocation19_spill] sm:$0xff]  ;;  %v11216_v12 = vld [vmem:[#allocation22_spill] sm:$0xff] }
 0x48b   : > { %v8043_v56 = vand.u32 2147483647, %v8027_v10  ;;  %v7594_v11 = vadd.f32 %v11032_v31, %v7551_v13  ;;  %v7680_v62 = vadd.f32 %v11056_v1, %v1464_v9  ;;  %v7997_v54 = vmax.f32 %v7465_v22, 0.0  ;;  %v11214_v42 = vld [vmem:[#allocation15_spill] sm:$0xff]  ;;  %v11217_v9 = vld [vmem:[#allocation21_spill] sm:$0xff] }
 0x48c   : > { %v8028_v23 = vsub.f32 %v7996_v30, %v8012_v5  ;;  %v7467_v57 = vadd.f32 %v11209_v24, %v7424_v52  ;;  %v1468_v46 = vrot.slane %v11062_v37, %v11210_v18  ;;  %v7553_v43 = vadd.f32 %v11211_v55, %v7510_v15 }
 0x48d   : > { %v7641_v33 = vadd.f32 %v11212_v2, %v7598_v51  ;;  %v7600_v28 = vadd.f32 %v11213_v17, %v7557_v49  ;;  %v7727_v8 = vadd.f32 %v7726_v40, %v7684_v29  ;;  %v8143_v3 = vmul.f32 %v8084_v50, %v8043_v56  ;;  %v11219_v51 = vld [vmem:[#allocation12_spill] sm:$0xff] }
 0x48e   : > { %v8029_v31 = vsub.f32 %v7997_v54, %v8013_v53  ;;  %v8014_v4 = vmax.f32 %v7471_v45, 0.0  ;;  %v7686_v60 = vadd.f32 %v7685_v26, %v1468_v46  ;;  %v7637_v44 = vadd.f32 %v11214_v42, %v7594_v11  ;;  %v11218_v26 = vld [vmem:[#allocation20_spill] sm:$0xff] }
 0x48f   : > { %v7596_v10 = vadd.f32 %v11215_v38, %v7553_v43  ;;  %v7723_v7 = vadd.f32 %v11216_v12, %v7680_v62  ;;  %v8044_v61 = vand.u32 2147483647, %v8028_v23  ;;  %v8088_v5 = vrot.slane %v9424_v21, %v11217_v9  ;;  %v11220_v21 = vld [vmem:[#allocation17_spill] sm:$0xff] }
 0x490   : > { %v7682_v40 = vadd.f32 %v11064_v32, %v1468_v46  ;;  %v7998_v22 = vmax.f32 %v7467_v57, 0.0  ;;  %v8015_v52 = vmax.f32 %v7641_v33, 0.0  ;;  %v7643_v13 = vadd.f32 %v11218_v26, %v7600_v28 }
 0x491   : > { %v8158_v29 = vadd.f32 %v11219_v51, %v8143_v3  ;;  %v8045_v30 = vand.u32 2147483647, %v8029_v31  ;;  %v8092_v56 = vrot.slane %v11124_v36, %v10077_v14  ;;  %v7999_v45 = vmax.f32 %v7637_v44, 0.0 }
 0x492   : > { %v8030_v53 = vsub.f32 %v7998_v22, %v8014_v4  ;;  %v7639_v49 = vadd.f32 %v11220_v21, %v7596_v10  ;;  %v8144_v62 = vmul.f32 %v8088_v5, %v8044_v61  ;;  %v7725_v23 = vadd.f32 %v11066_v39, %v7682_v40 }
 0x493   : > { %v8031_v57 = vsub.f32 %v7999_v45, %v8015_v52  ;;  %v8016_v46 = vmax.f32 %v7643_v13, 0.0  ;;  %v8145_v43 = vmul.f32 %v8092_v56, %v8045_v30  ;;  %v8104_v61 = vrot.slane %v11124_v36, %v10250_v25 }
 0x494   : > { %v8046_v2 = vand.u32 2147483647, %v8030_v53  ;;  %v8000_v39 = vmax.f32 %v7639_v49, 0.0  ;;  %v8159_v28 = vadd.f32 %v8158_v29, %v8144_v62  ;;  %v8112_v62 = vrot.slane %v11124_v36, %v11210_v18 }
 0x495   : > { %v8047_v31 = vand.u32 2147483647, %v8031_v57 }
 0x496   : > { %v8032_v4 = vsub.f32 %v8000_v39, %v8016_v46  ;;  %v8160_v42 = vadd.f32 %v8159_v28, %v8145_v43  ;;  %v8116_v43 = vrot.slane %v11124_v36, %v11043_v34 }
 0x49c   : > { %v11082_v48 = vpop.f32.mrf.mxu0 }
 0x49d   : > { %v7766_v15 = vadd.f32 %v11082_v48, %v7723_v7  ;;  %v1472_v48 = vrot.slane %v11062_v37, %v11043_v34 }
 0x49e   : > { %v11086_v58 = vpop.f32.mrf.mxu1  ;;  %v11095_v63 = vpop.f32.mrf.mxu0 }
 0x49f   : > { %v7809_v14 = vadd.f32 %v11086_v58, %v7766_v15  ;;  %v7768_v55 = vadd.f32 %v11095_v63, %v7725_v23  ;;  %v8100_v58 = vrot.slane %v11124_v36, %v10247_v20  ;;  %v8108_v15 = vrot.slane %v11124_v36, %v10412_v41 }
 0x4a0   : > { %v11100_v16 = vpop.f32.mrf.mxu1  ;;  %v7769_v27 = vpop.f32.mrf.mxu0 }
 0x4a1   : > { %v7770_v35 = vadd.f32 %v7769_v27, %v7727_v8  ;;  %v7729_v27 = vadd.f32 %v11077_v0, %v7686_v60  ;;  %v8096_v0 = vrot.slane %v11124_v36, %v10083_v19  ;;  %v8001_v19 = vmax.f32 %v7809_v14, 0.0 }
 0x4a2   : > { %v7812_v59 = vpop.f32.mrf.mxu1  ;;  %v7771_v47 = vpop.f32.mrf.mxu0  ;;  %v7811_v63 = vadd.f32 %v11100_v16, %v7768_v55 }
 0x4a3   : > { %v7813_v32 = vadd.f32 %v7812_v59, %v7770_v35  ;;  %v7772_v54 = vadd.f32 %v7771_v47, %v7729_v27  ;;  %v1476_v59 = vrot.slane %v11062_v37, %v11217_v9  ;;  %v8146_v37 = vmul.f32 %v8096_v0, %v8046_v2 }
 0x4a4   : > { %v7814_v1 = vpop.f32.mrf.mxu1  ;;  %v8002_v20 = vmax.f32 %v7811_v63, 0.0 }
 0x4a5   : > { %v8017_v33 = vmax.f32 %v7813_v32, 0.0  ;;  %v7815_v8 = vadd.f32 %v7814_v1, %v7772_v54  ;;  %v8147_v1 = vmul.f32 %v8100_v58, %v8047_v31  ;;  %v8161_v26 = vadd.f32 %v8160_v42, %v8146_v37 }
 0x4a7   : > { %v8033_v44 = vsub.f32 %v8001_v19, %v8017_v33  ;;  %v8018_v10 = vmax.f32 %v7815_v8, 0.0  ;;  %v8162_v27 = vadd.f32 %v8161_v26, %v8147_v1  ;;  %v8120_v8 = vrot.slane %v11124_v36, %v11217_v9  ;;  %v8168_v19 = vld [vmem:[#allocation2] sm:$0xff] }
 0x4a9   : > { %v8049_v13 = vand.u32 2147483647, %v8033_v44 }
 0x4dc   : > { %v7851_v6 = vpop.f32.mrf.mxu0 }
 0x4dd   : > { %v7852_v47 = vadd.f32 %v7851_v6, %v1472_v48  ;;  %v8048_v6 = vand.u32 2147483647, %v8032_v4 }
 0x4de   : > { %v7894_v50 = vpop.f32.mrf.mxu1  ;;  %v7853_v11 = vpop.f32.mrf.mxu0 }
 0x4df   : > { %v7854_v60 = vadd.f32 %v7853_v11, %v1476_v59  ;;  %v7895_v12 = vadd.f32 %v7894_v50, %v7852_v47  ;;  %v8034_v50 = vsub.f32 %v8002_v20, %v8018_v10  ;;  %v8148_v53 = vmul.f32 %v8104_v61, %v8048_v6 }
 0x4e0   : > { %v7896_v24 = vpop.f32.mrf.mxu1  ;;  %v7855_v17 = vpop.f32.mrf.mxu0  ;;  %v8149_v11 = vmul.f32 %v8108_v15, %v8049_v13 }
 0x4e1   : > { %v7856_v7 = vadd.f32 %v7855_v17, %v1472_v48  ;;  %v7897_v40 = vadd.f32 %v7896_v24, %v7854_v60  ;;  %v8050_v54 = vand.u32 2147483647, %v8034_v50  ;;  %v8163_v57 = vadd.f32 %v8162_v27, %v8148_v53 }
 0x4e2   : > { %v7898_v3 = vpop.f32.mrf.mxu1  ;;  %v7857_v38 = vpop.f32.mrf.mxu0 }
 0x4e3   : > { %v7858_v22 = vadd.f32 %v7857_v38, %v1476_v59  ;;  %v7899_v29 = vadd.f32 %v7898_v3, %v7856_v7  ;;  %v8164_v59 = vadd.f32 %v8163_v57, %v8149_v11  ;;  %v8150_v2 = vmul.f32 %v8112_v62, %v8050_v54 }
 0x4e4   : > { %v7900_v35 = vpop.f32.mrf.mxu1 }
 0x4e5   : > { %v7901_v25 = vadd.f32 %v7900_v35, %v7858_v22  ;;  %v8165_v47 = vadd.f32 %v8164_v59, %v8150_v2 }
 0x51c   : > { %v7937_v5 = vpop.f32.mrf.mxu0 }
 0x51d   : > { %v7938_v52 = vadd.f32 %v7937_v5, %v7895_v12 }
 0x51e   : > { %v7980_v16 = vpop.f32.mrf.mxu1  ;;  %v7939_v51 = vpop.f32.mrf.mxu0 }
 0x51f   : > { %v7940_v30 = vadd.f32 %v7939_v51, %v7897_v40  ;;  %v7981_v21 = vadd.f32 %v7980_v16, %v7938_v52 }
 0x520   : > { %v7982_v56 = vpop.f32.mrf.mxu1  ;;  %v7941_v45 = vpop.f32.mrf.mxu0 }
 0x521   : > { %v7942_v49 = vadd.f32 %v7941_v45, %v7899_v29  ;;  %v7983_v48 = vadd.f32 %v7982_v56, %v7940_v30  ;;  %v8003_v14 = vmax.f32 %v7981_v21, 0.0 }
 0x522   : > { %v7984_v32 = vpop.f32.mrf.mxu1  ;;  %v7943_v23 = vpop.f32.mrf.mxu0 }
 0x523   : > { %v7985_v41 = vadd.f32 %v7984_v32, %v7942_v49  ;;  %v7944_v24 = vadd.f32 %v7943_v23, %v7901_v25  ;;  %v8004_v39 = vmax.f32 %v7983_v48, 0.0 }
 0x524   : > { %v7986_v46 = vpop.f32.mrf.mxu1 }
 0x525   : > { %v8019_v0 = vmax.f32 %v7985_v41, 0.0  ;;  %v7987_v55 = vadd.f32 %v7986_v46, %v7944_v24 }
 0x527   : > { %v8035_v33 = vsub.f32 %v8003_v14, %v8019_v0  ;;  %v8020_v17 = vmax.f32 %v7987_v55, 0.0 }
 0x529   : > { %v8051_v28 = vand.u32 2147483647, %v8035_v33  ;;  %v8036_v18 = vsub.f32 %v8004_v39, %v8020_v17 }
 0x52b   : > { %v8151_v3 = vmul.f32 %v8116_v43, %v8051_v28  ;;  %v8052_v31 = vand.u32 2147483647, %v8036_v18 }
 0x52d   : > { %v8166_v58 = vadd.f32 %v8165_v47, %v8151_v3  ;;  %v8152_v4 = vmul.f32 %v8120_v8, %v8052_v31 }
 0x52f   : > { %v8167_v63 = vadd.f32 %v8166_v58, %v8152_v4  ;;  %8174 = sbr.rel (%p9345_p7) target bundleno = 1480 (0x5c8), region = 60 }
 0x531   : > { %v8169_v60 = vadd.f32 %v8168_v19, %v8167_v63 }
 0x533   : > { %8170 = vst [vmem:[#allocation2] sm:$0xff] %v8169_v60 }
 0x534   : > { %v8181_v42 = vstv %s8179_s20  ;;  %vm8183_vm0 = vcmask 7168  }
 0x53a   : > { %v8175_v34 = vld [vmem:[#allocation2] sm:$0xff] }
 0x53b   : > { %8176 = vadd.xlane.f32.xlu0 %v8175_v34 }
 0x5c4   : > { %v8177_v37 = vpop.xlane.xlu0 %8176 }
 0x5c5   : > { %v8182_v44 = vadd.f32 %v8181_v42, %v8177_v37 }
 0x5c7   : > { %8184 = vst.msk [vmem:[%s11187_s5] sm:$0xff] %vm8183_vm0, %v8182_v44 }
 0x5c8 PF: > { %s22_s25 = sadd.s32 1, %s9563_s25   ;;  %s11221_s20 = smov %s9547_s21 }
 0x5c9   : > { %p19_p10 = scmp.ge.s32.totalorder %s22_s25, 4   ;;  %s11222_s21 = smov %s9551_s22 }
 0x5ca   : > { %s11223_s22 = smov %s9652_s30  ;;  %s11224_s23 = smov %s9559_s24 }
 0x5cb   : > { %s11225_s24 = smov %s11227_s26  ;;  %21 = sbr.rel (!%p19_p10) target bundleno = 8 (0x8), region = 112 }
 0x5d0   :  { %8204 = vsyncpa [#allocation5], 1 }
 0x5d1   :  { %8206 = vsyncpa [#allocation5 + $0x1], 1 }
 0x5d2   :  { %8207 = vsyncpa [#allocation7], 1 }
 0x5d3   :  { %8209 = vsyncpa [#allocation7 + $0x1], 1 }

</bundles_post_ra>
